<compile_context>
chip_gen: v5e
topology: v5e:2x2
jax: 0.10.0
libtpu: 0.0.40
codegen_flags: <defaults>
</compile_context>

<pallas_src>
import numpy as np

import jax
import jax.numpy as jnp
from jax.experimental import pallas as pl
from jax.experimental.pallas import tpu as pltpu


# ----------------------------------------------------------------------------
# Pallas kernel: full teacher-forced decode for one batch block.
# ----------------------------------------------------------------------------
def _decoder_kernel(
    tok_ref,        # (Bb, T, 1) int32  teacher-forced tokens
    emb_ref,        # (V, H)      embedding table
    wih0_ref,       # (H, 4H)     layer-0 input->hidden, gate cols (i,f,o,g)
    whh0_ref,       # (H, 4H)     layer-0 hidden->hidden
    wcat_ref,       # (max(L-1,1), 2H, 4H)  layers>=1 fused [W_ih; W_hh]
    b_ref,          # (L, 1, 4H)  folded b_ih + b_hh
    watt_mix_ref,   # (H, H)      linear_out weight applied to attention mix
    watt_out_ref,   # (H, H)      linear_out weight applied to rnn output
    batt_ref,       # (1, H)
    wout_ref,       # (H, V)      output projection (transposed)
    bout_ref,       # (1, V)
    amask_ref,      # (Bb*T, Bb*S) additive block-diagonal mask (0 / -1e30)
    h0_ref,         # (Bb, L, H)
    c0_ref,         # (Bb, L, H)
    ctx_ref,        # (Bb, S, H)  encoder outputs (attention context)
    # outputs
    logp_ref,       # (Bb, T, V)  log_softmax over vocab, all steps
    attn_ref,       # (Bb, T, S)  attention weights, all steps
    hN_ref,         # (Bb, L, H)  final hidden state
    cN_ref,         # (Bb, L, H)  final cell state
):
    Bb, L, H = h0_ref.shape
    T, V = logp_ref.shape[1], logp_ref.shape[2]
    S = ctx_ref.shape[1]
    N = Bb * T
    f32 = jnp.float32

    # ---------------- hoisted prologue (off the recurrent critical path) -----
    tok = tok_ref[...]                                             # (Bb, T, 1)
    col = jax.lax.broadcasted_iota(jnp.int32, (Bb, T, V), 2)
    onehot = (col == tok).astype(f32).reshape(N, V)                # batch-major rows (b*T + di)
    x_all = jnp.dot(onehot, emb_ref[...], preferred_element_type=f32)   # (N, H)
    # TODO(synk): nn.Dropout with p > 0 (training mode) not implemented; p = 0 / eval.

    b_all = b_ref[...]
    bias = [b_all[l] for l in range(L)]                            # each (1, 4H)
    pre_g0 = (jnp.dot(x_all, wih0_ref[...], preferred_element_type=f32)
              + bias[0]).reshape(Bb, T, 4 * H)                     # layer-0 input term

    whh0 = whh0_ref[...]
    wcat_all = wcat_ref[...]
    wcat = [wcat_all[l - 1] for l in range(1, L)]                  # each (2H, 4H)

    h0_full = h0_ref[...]
    c0_full = c0_ref[...]
    h = [h0_full[:, l, :] for l in range(L)]                       # each (Bb, H)
    c = [c0_full[:, l, :] for l in range(L)]

    def _cell(gates, c_prev):
        # gate columns pre-ordered (i, f, o, g): one contiguous sigmoid slice + tanh tail
        sig = jax.nn.sigmoid(gates[:, :3 * H])
        g_g = jnp.tanh(gates[:, 3 * H:])
        i_g = sig[:, 0:H]
        f_g = sig[:, H:2 * H]
        o_g = sig[:, 2 * H:3 * H]
        c_new = f_g * c_prev + i_g * g_g
        h_new = o_g * jnp.tanh(c_new)
        return h_new, c_new

    # ---------------- recurrent loop (only the LSTM recurrence) --------------
    outs = []
    for di in range(T):
        g0 = pre_g0[:, di, :] + jnp.dot(h[0], whh0, preferred_element_type=f32)
        h[0], c[0] = _cell(g0, c[0])
        inp = h[0]
        for layer in range(1, L):
            xh = jnp.concatenate([inp, h[layer]], axis=-1)         # (Bb, 2H)
            gates = (jnp.dot(xh, wcat[layer - 1], preferred_element_type=f32)
                     + bias[layer])
            h[layer], c[layer] = _cell(gates, c[layer])
            inp = h[layer]
        outs.append(inp)

    # Stack top-layer outputs batch-major: row index = b*T + di.
    out_all = jnp.concatenate(
        [outs[di][b:b + 1, :] for b in range(Bb) for di in range(T)], axis=0)  # (N, H)

    # ---------------- hoisted epilogue (one pass over all steps) -------------
    ctx_flat = ctx_ref[...].reshape(Bb * S, H)                     # (Bb*S, H)
    scores = jax.lax.dot_general(out_all, ctx_flat, (((1,), (1,)), ((), ())),
                                 preferred_element_type=f32)       # (N, Bb*S)
    scores = scores + amask_ref[...]                               # block-diag mask
    m = jnp.max(scores, axis=-1, keepdims=True)
    e = jnp.exp(scores - m)
    attn_full = e * pl.reciprocal(jnp.sum(e, axis=-1, keepdims=True), approx=True)
    mix = jnp.dot(attn_full, ctx_flat, preferred_element_type=f32)  # (N, H)

    # linear_out(cat([mix, out])) == mix @ W_mix + out @ W_out + b
    att = jnp.tanh(jnp.dot(mix, watt_mix_ref[...], preferred_element_type=f32)
                   + jnp.dot(out_all, watt_out_ref[...], preferred_element_type=f32)
                   + batt_ref[...])                                # (N, H)

    # Output projection + log_softmax over vocab.
    # TODO(synk): at realistic vocab sizes, tile W_out / logp over V with a streamed
    # (online max/sum) log-softmax and set vmem_limit_bytes (v7x has 64 MiB VMEM).
    logits = jnp.dot(att, wout_ref[...], preferred_element_type=f32) + bout_ref[...]
    lm = jnp.max(logits, axis=-1, keepdims=True)
    lse = jnp.log(jnp.sum(jnp.exp(logits - lm), axis=-1, keepdims=True)) + lm
    logp = logits - lse                                            # (N, V)

    # Single coalesced stores for every output.
    logp_ref[...] = logp.reshape(Bb, T, V)
    attn_rs = attn_full.reshape(Bb, T, Bb * S)
    attn_ref[...] = jnp.concatenate(
        [attn_rs[b:b + 1, :, b * S:(b + 1) * S] for b in range(Bb)], axis=0)
    hN_ref[...] = jnp.concatenate(
        [h[l][b:b + 1, :] for b in range(Bb) for l in range(L)], axis=0
    ).reshape(Bb, L, H)
    cN_ref[...] = jnp.concatenate(
        [c[l][b:b + 1, :] for b in range(Bb) for l in range(L)], axis=0
    ).reshape(Bb, L, H)


# ----------------------------------------------------------------------------
# Wrapper: weight prep, pallas_call, and post-processing (symbols / lengths).
# ----------------------------------------------------------------------------
def _tpu_cores_per_chip():
    # v7x has 2 TensorCores per chip; v5e / v6e have 1.
    try:
        kind = (jax.devices()[0].device_kind or "").lower()
        if "v7" in kind:
            return 2
    except Exception:
        pass
    return 1


def decoder_forward_pallas(x_tokens, encoder_hidden, encoder_outputs, weights, cfg,
                           *, num_batch_blocks=None):
    B, length = x_tokens.shape
    H = cfg["hidden_size"]
    V = cfg["vocab_size"]
    L = cfg["num_layers"]
    S = encoder_outputs.shape[1]
    n_nodes = cfg["num_intermediate_nodes"]
    T = length
    assert length == cfg["decoder_length"]
    # NOTE: token ids must lie in [0, V); out-of-range ids would embed as zeros.

    if num_batch_blocks is None:
        num_batch_blocks = 2 if (_tpu_cores_per_chip() >= 2 and B % 2 == 0) else 1
    assert B % num_batch_blocks == 0
    Bb = B // num_batch_blocks

    h0, c0 = encoder_hidden

    # Offline gate-column reorder: PyTorch (i, f, g, o) -> kernel (i, f, o, g).
    def _reorder(w):
        i, f, g, o = jnp.split(w, 4, axis=-1)
        return jnp.concatenate([i, f, o, g], axis=-1)

    wih = _reorder(weights["wih"])                       # (L, H, 4H)
    whh = _reorder(weights["whh"])                       # (L, H, 4H)
    bfold = _reorder(weights["bih"] + weights["bhh"])    # (L, 1, 4H) folded bias

    wih0 = wih[0]
    whh0 = whh[0]
    if L > 1:
        wcat = jnp.stack(
            [jnp.concatenate([wih[l], whh[l]], axis=0) for l in range(1, L)])
    else:
        wcat = jnp.zeros((1, 2 * H, 4 * H), jnp.float32)  # dummy, never read

    tok3 = x_tokens.astype(jnp.int32)[:, :, None]        # (B, T, 1)
    h0_b = jnp.transpose(h0, (1, 0, 2))                  # (B, L, H)  batch-leading
    c0_b = jnp.transpose(c0, (1, 0, 2))

    # Block-diagonal additive attention mask (batch-major rows within a block).
    amask_np = np.full((Bb * T, Bb * S), -1e30, dtype=np.float32)
    for b in range(Bb):
        amask_np[b * T:(b + 1) * T, b * S:(b + 1) * S] = 0.0
    amask = jnp.asarray(amask_np)

    wcat_blk = (max(L - 1, 1), 2 * H, 4 * H)

    out_shape = (
        jax.ShapeDtypeStruct((B, T, V), jnp.float32),
        jax.ShapeDtypeStruct((B, T, S), jnp.float32),
        jax.ShapeDtypeStruct((B, L, H), jnp.float32),
        jax.ShapeDtypeStruct((B, L, H), jnp.float32),
    )

    logp, attn, hN, cN = pl.pallas_call(
        _decoder_kernel,
        out_shape=out_shape,
        grid=(num_batch_blocks,),
        in_specs=[
            pl.BlockSpec((Bb, T, 1), lambda i: (i, 0, 0)),          # tokens
            pl.BlockSpec((V, H), lambda i: (0, 0)),                 # embedding
            pl.BlockSpec((H, 4 * H), lambda i: (0, 0)),             # W_ih layer 0
            pl.BlockSpec((H, 4 * H), lambda i: (0, 0)),             # W_hh layer 0
            pl.BlockSpec(wcat_blk, lambda i: (0, 0, 0)),            # fused W layers>=1
            pl.BlockSpec((L, 1, 4 * H), lambda i: (0, 0, 0)),       # folded bias
            pl.BlockSpec((H, H), lambda i: (0, 0)),                 # W_att_mix
            pl.BlockSpec((H, H), lambda i: (0, 0)),                 # W_att_out
            pl.BlockSpec((1, H), lambda i: (0, 0)),                 # b_att
            pl.BlockSpec((H, V), lambda i: (0, 0)),                 # W_out
            pl.BlockSpec((1, V), lambda i: (0, 0)),                 # b_out
            pl.BlockSpec((Bb * T, Bb * S), lambda i: (0, 0)),       # attention mask
            pl.BlockSpec((Bb, L, H), lambda i: (i, 0, 0)),          # h0
            pl.BlockSpec((Bb, L, H), lambda i: (i, 0, 0)),          # c0
            pl.BlockSpec((Bb, S, H), lambda i: (i, 0, 0)),          # encoder_outputs
        ],
        out_specs=[
            pl.BlockSpec((Bb, T, V), lambda i: (i, 0, 0)),          # log-probs
            pl.BlockSpec((Bb, T, S), lambda i: (i, 0, 0)),          # attention
            pl.BlockSpec((Bb, L, H), lambda i: (i, 0, 0)),          # h final
            pl.BlockSpec((Bb, L, H), lambda i: (i, 0, 0)),          # c final
        ],
        compiler_params=pltpu.CompilerParams(
            dimension_semantics=("parallel",)),
    )(
        tok3,
        weights["embedding"],
        wih0, whh0, wcat, bfold,
        weights["watt_mix"], weights["watt_out"], weights["batt"],
        weights["wout"], weights["bout"],
        amask,
        h0_b, c0_b, encoder_outputs,
    )

    h_fin = jnp.transpose(hN, (1, 0, 2))                 # back to (L, B, H)
    c_fin = jnp.transpose(cN, (1, 0, 2))

    # Post-processing glue (matches Decoder.decode): step-dependent top-1 slices.
    decoder_outputs = [logp[:, di, :] for di in range(T)]          # each (B, V)
    sequence_symbols = []
    for step in range(T):
        step_out = decoder_outputs[step]
        if step % 2 == 0:
            lo, hi = 1, step // 2 + 2
            sym = jnp.argmax(step_out[:, lo:hi], axis=-1, keepdims=True) + 1
        else:
            lo = n_nodes + 1
            sym = jnp.argmax(step_out[:, lo:], axis=-1, keepdims=True) + n_nodes + 1
        sequence_symbols.append(sym.astype(jnp.int32))

    # EOS is id 0 but emitted symbols are always >= 1, so lengths stay = length.
    lengths = [int(T)] * B

    ret_dict = {
        "attention_score": [attn[:, di, :][:, None, :] for di in range(T)],
        "sequence": sequence_symbols,
        "length": lengths,
    }
    return decoder_outputs, (h_fin, c_fin), ret_dict


# ----------------------------------------------------------------------------
# Pure-JAX reference (PyTorch gate order, same math) for correctness checking.
# ----------------------------------------------------------------------------
def decoder_forward_reference(x_tokens, encoder_hidden, encoder_outputs, weights, cfg):
    B, length = x_tokens.shape
    H = cfg["hidden_size"]
    L = cfg["num_layers"]
    h = encoder_hidden[0]
    c = encoder_hidden[1]
    emb = weights["embedding"]
    logps, attns = [], []
    for di in range(length):
        x_t = emb[x_tokens[:, di]]
        inp = x_t
        new_h, new_c = [], []
        for layer in range(L):
            gates = (inp @ weights["wih"][layer] + weights["bih"][layer]
                     + h[layer] @ weights["whh"][layer] + weights["bhh"][layer])
            i_g = jax.nn.sigmoid(gates[:, 0:H])
            f_g = jax.nn.sigmoid(gates[:, H:2 * H])
            g_g = jnp.tanh(gates[:, 2 * H:3 * H])
            o_g = jax.nn.sigmoid(gates[:, 3 * H:4 * H])
            cn = f_g * c[layer] + i_g * g_g
            hn = o_g * jnp.tanh(cn)
            new_h.append(hn); new_c.append(cn)
            inp = hn
        h = jnp.stack(new_h); c = jnp.stack(new_c)
        out = inp
        scores = jnp.einsum("bh,bsh->bs", out, encoder_outputs)
        attn_w = jax.nn.softmax(scores, axis=-1)
        mix = jnp.einsum("bs,bsh->bh", attn_w, encoder_outputs)
        att = jnp.tanh(mix @ weights["watt_mix"] + out @ weights["watt_out"]
                       + weights["batt"])
        logits = att @ weights["wout"] + weights["bout"]
        logps.append(jax.nn.log_softmax(logits, axis=-1))
        attns.append(attn_w)
    return logps, (h, c), attns


# ----------------------------------------------------------------------------
if __name__ == "__main__":
    # Small, deterministic config.
    B = 2
    num_intermediate_nodes = 4
    num_operations = 3
    H = 32
    L = 2
    V = num_intermediate_nodes + num_operations + 1          # 8
    length = num_intermediate_nodes * 2                      # decoder_length = 8
    S = length                                               # source_length = 8

    cfg = dict(hidden_size=H, vocab_size=V, num_layers=L,
               num_intermediate_nodes=num_intermediate_nodes,
               decoder_length=length)

    key = jax.random.PRNGKey(0)
    keys = jax.random.split(key, 32)
    kit = iter(keys)

    def rnd(shape, scale=0.1):
        return (scale * jax.random.normal(next(kit), shape)).astype(jnp.float32)

    # Parameters (PyTorch shapes, then transposed for x @ W use in-kernel).
    embedding = rnd((V, H))
    wih = jnp.stack([rnd((4 * H, H)).T for _ in range(L)])        # (L, H, 4H), cols (i,f,g,o)
    whh = jnp.stack([rnd((4 * H, H)).T for _ in range(L)])        # (L, H, 4H)
    bih = jnp.stack([rnd((4 * H,)).reshape(1, 4 * H) for _ in range(L)])
    bhh = jnp.stack([rnd((4 * H,)).reshape(1, 4 * H) for _ in range(L)])
    w_linear_out = rnd((H, 2 * H))                                # nn.Linear(2H, H)
    watt = w_linear_out.T                                         # (2H, H)
    watt_mix, watt_out = watt[:H], watt[H:]
    batt = rnd((H,)).reshape(1, H)
    w_out = rnd((V, H))                                           # nn.Linear(H, V)
    wout = w_out.T
    bout = rnd((V,)).reshape(1, V)

    weights = dict(embedding=embedding, wih=wih, whh=whh, bih=bih, bhh=bhh,
                   watt_mix=watt_mix, watt_out=watt_out, batt=batt,
                   wout=wout, bout=bout)

    # Inputs.
    x_tokens = jax.random.randint(next(kit), (B, length), 0, V, dtype=jnp.int32)
    encoder_outputs = rnd((B, S, H), scale=1.0)
    h0 = rnd((L, B, H), scale=0.5)
    c0 = rnd((L, B, H), scale=0.5)

    # Pure-JAX reference.
    ref_outs, (h_ref, c_ref), ref_attns = decoder_forward_reference(
        x_tokens, (h0, c0), encoder_outputs, weights, cfg)

    # Test both the single-block path (v5e/v6e default) and the batch-parallel
    # path (what the wrapper auto-selects on v7x to use both TensorCores).
    for nb in (1, 2):
        dec_outs, (h_fin, c_fin), ret_dict = decoder_forward_pallas(
            x_tokens, (h0, c0), encoder_outputs, weights, cfg, num_batch_blocks=nb)
        jax.block_until_ready(dec_outs)
        jax.block_until_ready((h_fin, c_fin))

        for di in range(length):
            np.testing.assert_allclose(np.asarray(dec_outs[di]), np.asarray(ref_outs[di]),
                                       rtol=1e-3, atol=1e-3)
            np.testing.assert_allclose(
                np.asarray(ret_dict["attention_score"][di][:, 0, :]),
                np.asarray(ref_attns[di]), rtol=1e-3, atol=1e-3)
        np.testing.assert_allclose(np.asarray(h_fin), np.asarray(h_ref),
                                   rtol=1e-3, atol=1e-3)
        np.testing.assert_allclose(np.asarray(c_fin), np.asarray(c_ref),
                                   rtol=1e-3, atol=1e-3)

    print("KERNEL_OK")
</pallas_src>

<mosaic_0001>
module attributes {stable_mosaic.version = 11 : i64} {
  func.func @_decoder_kernel(%arg0: i32, %arg1: memref<2x8x1xi32, #tpu.memory_space<vmem>>, %arg2: memref<8x32xf32, #tpu.memory_space<vmem>>, %arg3: memref<32x128xf32, #tpu.memory_space<vmem>>, %arg4: memref<32x128xf32, #tpu.memory_space<vmem>>, %arg5: memref<1x64x128xf32, #tpu.memory_space<vmem>>, %arg6: memref<2x1x128xf32, #tpu.memory_space<vmem>>, %arg7: memref<32x32xf32, #tpu.memory_space<vmem>>, %arg8: memref<32x32xf32, #tpu.memory_space<vmem>>, %arg9: memref<1x32xf32, #tpu.memory_space<vmem>>, %arg10: memref<32x8xf32, #tpu.memory_space<vmem>>, %arg11: memref<1x8xf32, #tpu.memory_space<vmem>>, %arg12: memref<16x16xf32, #tpu.memory_space<vmem>>, %arg13: memref<2x2x32xf32, #tpu.memory_space<vmem>>, %arg14: memref<2x2x32xf32, #tpu.memory_space<vmem>>, %arg15: memref<2x8x32xf32, #tpu.memory_space<vmem>>, %arg16: memref<2x8x8xf32, #tpu.memory_space<vmem>>, %arg17: memref<2x8x8xf32, #tpu.memory_space<vmem>>, %arg18: memref<2x2x32xf32, #tpu.memory_space<vmem>>, %arg19: memref<2x2x32xf32, #tpu.memory_space<vmem>>) attributes {dimension_semantics = [#tpu.dimension_semantics<parallel>], iteration_bounds = array<i64: 1>, scalar_prefetch = 0 : i64, scratch_operands = 0 : i64, tpu.core_type = #tpu.core_type<tc>, window_params = [{transform_indices = @transform_0, window_bounds = array<i64: 2, 8, 1>}, {pipeline_mode = #tpu.pipeline_mode<synchronous>, transform_indices = @transform_1, window_bounds = array<i64: 8, 32>}, {pipeline_mode = #tpu.pipeline_mode<synchronous>, transform_indices = @transform_2, window_bounds = array<i64: 32, 128>}, {pipeline_mode = #tpu.pipeline_mode<synchronous>, transform_indices = @transform_3, window_bounds = array<i64: 32, 128>}, {pipeline_mode = #tpu.pipeline_mode<synchronous>, transform_indices = @transform_4, window_bounds = array<i64: 1, 64, 128>}, {pipeline_mode = #tpu.pipeline_mode<synchronous>, transform_indices = @transform_5, window_bounds = array<i64: 2, 1, 128>}, {pipeline_mode = #tpu.pipeline_mode<synchronous>, transform_indices = @transform_6, window_bounds = array<i64: 32, 32>}, {pipeline_mode = #tpu.pipeline_mode<synchronous>, transform_indices = @transform_7, window_bounds = array<i64: 32, 32>}, {pipeline_mode = #tpu.pipeline_mode<synchronous>, transform_indices = @transform_8, window_bounds = array<i64: 1, 32>}, {pipeline_mode = #tpu.pipeline_mode<synchronous>, transform_indices = @transform_9, window_bounds = array<i64: 32, 8>}, {pipeline_mode = #tpu.pipeline_mode<synchronous>, transform_indices = @transform_10, window_bounds = array<i64: 1, 8>}, {pipeline_mode = #tpu.pipeline_mode<synchronous>, transform_indices = @transform_11, window_bounds = array<i64: 16, 16>}, {transform_indices = @transform_12, window_bounds = array<i64: 2, 2, 32>}, {transform_indices = @transform_13, window_bounds = array<i64: 2, 2, 32>}, {transform_indices = @transform_14, window_bounds = array<i64: 2, 8, 32>}, {transform_indices = @transform_15, window_bounds = array<i64: 2, 8, 8>}, {transform_indices = @transform_16, window_bounds = array<i64: 2, 8, 8>}, {transform_indices = @transform_17, window_bounds = array<i64: 2, 2, 32>}, {transform_indices = @transform_18, window_bounds = array<i64: 2, 2, 32>}]} {
    %c0 = arith.constant 0 : index
    %c0_0 = arith.constant 0 : index
    %c0_1 = arith.constant 0 : index
    %0 = vector.load %arg1[%c0, %c0_0, %c0_1] : memref<2x8x1xi32, #tpu.memory_space<vmem>>, vector<2x8x1xi32>
    %1 = tpu.iota {dimensions = array<i32: 2>} : vector<2x8x8xi32>
    %2 = vector.broadcast %0 : vector<2x8x1xi32> to vector<2x8x8xi32>
    %3 = arith.cmpi eq, %1, %2 : vector<2x8x8xi32>
    %4 = arith.extui %3 : vector<2x8x8xi1> to vector<2x8x8xi32>
    %5 = arith.sitofp %4 : vector<2x8x8xi32> to vector<2x8x8xf32>
    %6 = vector.shape_cast %5 : vector<2x8x8xf32> to vector<16x8xf32>
    %c0_2 = arith.constant 0 : index
    %c0_3 = arith.constant 0 : index
    %7 = vector.load %arg2[%c0_2, %c0_3] : memref<8x32xf32, #tpu.memory_space<vmem>>, vector<8x32xf32>
    %cst = arith.constant dense<0.000000e+00> : vector<16x32xf32>
    %8 = tpu.matmul %6, %7, %cst {dimension_numbers = #tpu.dot_dimension_numbers<[1], [0], [0], [1], [0, 0, 1, 1], [], []>} : vector<16x8xf32>, vector<8x32xf32>, vector<16x32xf32> -> vector<16x32xf32>
    %c0_4 = arith.constant 0 : index
    %c0_5 = arith.constant 0 : index
    %c0_6 = arith.constant 0 : index
    %9 = vector.load %arg6[%c0_4, %c0_5, %c0_6] : memref<2x1x128xf32, #tpu.memory_space<vmem>>, vector<2x1x128xf32>
    %10 = vector.extract_strided_slice %9 {offsets = [0, 0, 0], sizes = [1, 1, 128], strides = [1, 1, 1]} : vector<2x1x128xf32> to vector<1x1x128xf32>
    %11 = vector.shape_cast %10 : vector<1x1x128xf32> to vector<1x128xf32>
    %12 = vector.extract_strided_slice %9 {offsets = [1, 0, 0], sizes = [1, 1, 128], strides = [1, 1, 1]} : vector<2x1x128xf32> to vector<1x1x128xf32>
    %13 = vector.shape_cast %12 : vector<1x1x128xf32> to vector<1x128xf32>
    %c0_7 = arith.constant 0 : index
    %c0_8 = arith.constant 0 : index
    %14 = vector.load %arg3[%c0_7, %c0_8] : memref<32x128xf32, #tpu.memory_space<vmem>>, vector<32x128xf32>
    %cst_9 = arith.constant dense<0.000000e+00> : vector<16x128xf32>
    %15 = tpu.matmul %8, %14, %cst_9 {dimension_numbers = #tpu.dot_dimension_numbers<[1], [0], [0], [1], [0, 0, 1, 1], [], []>} : vector<16x32xf32>, vector<32x128xf32>, vector<16x128xf32> -> vector<16x128xf32>
    %16 = vector.broadcast %11 : vector<1x128xf32> to vector<16x128xf32>
    %17 = arith.addf %15, %16 : vector<16x128xf32>
    %18 = vector.shape_cast %17 : vector<16x128xf32> to vector<2x8x128xf32>
    %c0_10 = arith.constant 0 : index
    %c0_11 = arith.constant 0 : index
    %19 = vector.load %arg4[%c0_10, %c0_11] : memref<32x128xf32, #tpu.memory_space<vmem>>, vector<32x128xf32>
    %c0_12 = arith.constant 0 : index
    %c0_13 = arith.constant 0 : index
    %c0_14 = arith.constant 0 : index
    %20 = vector.load %arg5[%c0_12, %c0_13, %c0_14] : memref<1x64x128xf32, #tpu.memory_space<vmem>>, vector<1x64x128xf32>
    %21 = vector.shape_cast %20 : vector<1x64x128xf32> to vector<64x128xf32>
    %c0_15 = arith.constant 0 : index
    %c0_16 = arith.constant 0 : index
    %c0_17 = arith.constant 0 : index
    %22 = vector.load %arg13[%c0_15, %c0_16, %c0_17] : memref<2x2x32xf32, #tpu.memory_space<vmem>>, vector<2x2x32xf32>
    %c0_18 = arith.constant 0 : index
    %c0_19 = arith.constant 0 : index
    %c0_20 = arith.constant 0 : index
    %23 = vector.load %arg14[%c0_18, %c0_19, %c0_20] : memref<2x2x32xf32, #tpu.memory_space<vmem>>, vector<2x2x32xf32>
    %24 = vector.extract_strided_slice %22 {offsets = [0, 0, 0], sizes = [2, 1, 32], strides = [1, 1, 1]} : vector<2x2x32xf32> to vector<2x1x32xf32>
    %25 = vector.shape_cast %24 : vector<2x1x32xf32> to vector<2x32xf32>
    %26 = vector.extract_strided_slice %22 {offsets = [0, 1, 0], sizes = [2, 1, 32], strides = [1, 1, 1]} : vector<2x2x32xf32> to vector<2x1x32xf32>
    %27 = vector.shape_cast %26 : vector<2x1x32xf32> to vector<2x32xf32>
    %28 = vector.extract_strided_slice %23 {offsets = [0, 0, 0], sizes = [2, 1, 32], strides = [1, 1, 1]} : vector<2x2x32xf32> to vector<2x1x32xf32>
    %29 = vector.shape_cast %28 : vector<2x1x32xf32> to vector<2x32xf32>
    %30 = vector.extract_strided_slice %23 {offsets = [0, 1, 0], sizes = [2, 1, 32], strides = [1, 1, 1]} : vector<2x2x32xf32> to vector<2x1x32xf32>
    %31 = vector.shape_cast %30 : vector<2x1x32xf32> to vector<2x32xf32>
    %32 = vector.extract_strided_slice %18 {offsets = [0, 0, 0], sizes = [2, 1, 128], strides = [1, 1, 1]} : vector<2x8x128xf32> to vector<2x1x128xf32>
    %33 = vector.shape_cast %32 : vector<2x1x128xf32> to vector<2x128xf32>
    %cst_21 = arith.constant dense<0.000000e+00> : vector<2x128xf32>
    %34 = tpu.matmul %25, %19, %cst_21 {dimension_numbers = #tpu.dot_dimension_numbers<[1], [0], [0], [1], [0, 0, 1, 1], [], []>} : vector<2x32xf32>, vector<32x128xf32>, vector<2x128xf32> -> vector<2x128xf32>
    %35 = arith.addf %33, %34 : vector<2x128xf32>
    %36 = vector.extract_strided_slice %35 {offsets = [0, 0], sizes = [2, 96], strides = [1, 1]} : vector<2x128xf32> to vector<2x96xf32>
    %37 = arith.negf %36 : vector<2x96xf32>
    %38 = math.exp %37 : vector<2x96xf32>
    %cst_22 = arith.constant 1.000000e+00 : f32
    %39 = vector.broadcast %cst_22 : f32 to vector<2x96xf32>
    %40 = arith.addf %39, %38 : vector<2x96xf32>
    %41 = arith.divf %39, %40 : vector<2x96xf32>
    %42 = vector.extract_strided_slice %35 {offsets = [0, 96], sizes = [2, 32], strides = [1, 1]} : vector<2x128xf32> to vector<2x32xf32>
    %43 = math.tanh %42 : vector<2x32xf32>
    %44 = vector.extract_strided_slice %41 {offsets = [0, 0], sizes = [2, 32], strides = [1, 1]} : vector<2x96xf32> to vector<2x32xf32>
    %45 = vector.extract_strided_slice %41 {offsets = [0, 32], sizes = [2, 32], strides = [1, 1]} : vector<2x96xf32> to vector<2x32xf32>
    %46 = vector.extract_strided_slice %41 {offsets = [0, 64], sizes = [2, 32], strides = [1, 1]} : vector<2x96xf32> to vector<2x32xf32>
    %47 = arith.mulf %45, %29 : vector<2x32xf32>
    %48 = arith.mulf %44, %43 : vector<2x32xf32>
    %49 = arith.addf %47, %48 : vector<2x32xf32>
    %50 = math.tanh %49 : vector<2x32xf32>
    %51 = arith.mulf %46, %50 : vector<2x32xf32>
    %52 = tpu.concatenate %51, %27 in 1 : vector<2x32xf32>, vector<2x32xf32> -> vector<2x64xf32>
    %cst_23 = arith.constant dense<0.000000e+00> : vector<2x128xf32>
    %53 = tpu.matmul %52, %21, %cst_23 {dimension_numbers = #tpu.dot_dimension_numbers<[1], [0], [0], [1], [0, 0, 1, 1], [], []>} : vector<2x64xf32>, vector<64x128xf32>, vector<2x128xf32> -> vector<2x128xf32>
    %54 = vector.broadcast %13 : vector<1x128xf32> to vector<2x128xf32>
    %55 = arith.addf %53, %54 : vector<2x128xf32>
    %56 = vector.extract_strided_slice %55 {offsets = [0, 0], sizes = [2, 96], strides = [1, 1]} : vector<2x128xf32> to vector<2x96xf32>
    %57 = arith.negf %56 : vector<2x96xf32>
    %58 = math.exp %57 : vector<2x96xf32>
    %cst_24 = arith.constant 1.000000e+00 : f32
    %59 = vector.broadcast %cst_24 : f32 to vector<2x96xf32>
    %60 = arith.addf %59, %58 : vector<2x96xf32>
    %61 = arith.divf %59, %60 : vector<2x96xf32>
    %62 = vector.extract_strided_slice %55 {offsets = [0, 96], sizes = [2, 32], strides = [1, 1]} : vector<2x128xf32> to vector<2x32xf32>
    %63 = math.tanh %62 : vector<2x32xf32>
    %64 = vector.extract_strided_slice %61 {offsets = [0, 0], sizes = [2, 32], strides = [1, 1]} : vector<2x96xf32> to vector<2x32xf32>
    %65 = vector.extract_strided_slice %61 {offsets = [0, 32], sizes = [2, 32], strides = [1, 1]} : vector<2x96xf32> to vector<2x32xf32>
    %66 = vector.extract_strided_slice %61 {offsets = [0, 64], sizes = [2, 32], strides = [1, 1]} : vector<2x96xf32> to vector<2x32xf32>
    %67 = arith.mulf %65, %31 : vector<2x32xf32>
    %68 = arith.mulf %64, %63 : vector<2x32xf32>
    %69 = arith.addf %67, %68 : vector<2x32xf32>
    %70 = math.tanh %69 : vector<2x32xf32>
    %71 = arith.mulf %66, %70 : vector<2x32xf32>
    %72 = vector.extract_strided_slice %18 {offsets = [0, 1, 0], sizes = [2, 1, 128], strides = [1, 1, 1]} : vector<2x8x128xf32> to vector<2x1x128xf32>
    %73 = vector.shape_cast %72 : vector<2x1x128xf32> to vector<2x128xf32>
    %cst_25 = arith.constant dense<0.000000e+00> : vector<2x128xf32>
    %74 = tpu.matmul %51, %19, %cst_25 {dimension_numbers = #tpu.dot_dimension_numbers<[1], [0], [0], [1], [0, 0, 1, 1], [], []>} : vector<2x32xf32>, vector<32x128xf32>, vector<2x128xf32> -> vector<2x128xf32>
    %75 = arith.addf %73, %74 : vector<2x128xf32>
    %76 = vector.extract_strided_slice %75 {offsets = [0, 0], sizes = [2, 96], strides = [1, 1]} : vector<2x128xf32> to vector<2x96xf32>
    %77 = arith.negf %76 : vector<2x96xf32>
    %78 = math.exp %77 : vector<2x96xf32>
    %cst_26 = arith.constant 1.000000e+00 : f32
    %79 = vector.broadcast %cst_26 : f32 to vector<2x96xf32>
    %80 = arith.addf %79, %78 : vector<2x96xf32>
    %81 = arith.divf %79, %80 : vector<2x96xf32>
    %82 = vector.extract_strided_slice %75 {offsets = [0, 96], sizes = [2, 32], strides = [1, 1]} : vector<2x128xf32> to vector<2x32xf32>
    %83 = math.tanh %82 : vector<2x32xf32>
    %84 = vector.extract_strided_slice %81 {offsets = [0, 0], sizes = [2, 32], strides = [1, 1]} : vector<2x96xf32> to vector<2x32xf32>
    %85 = vector.extract_strided_slice %81 {offsets = [0, 32], sizes = [2, 32], strides = [1, 1]} : vector<2x96xf32> to vector<2x32xf32>
    %86 = vector.extract_strided_slice %81 {offsets = [0, 64], sizes = [2, 32], strides = [1, 1]} : vector<2x96xf32> to vector<2x32xf32>
    %87 = arith.mulf %85, %49 : vector<2x32xf32>
    %88 = arith.mulf %84, %83 : vector<2x32xf32>
    %89 = arith.addf %87, %88 : vector<2x32xf32>
    %90 = math.tanh %89 : vector<2x32xf32>
    %91 = arith.mulf %86, %90 : vector<2x32xf32>
    %92 = tpu.concatenate %91, %71 in 1 : vector<2x32xf32>, vector<2x32xf32> -> vector<2x64xf32>
    %cst_27 = arith.constant dense<0.000000e+00> : vector<2x128xf32>
    %93 = tpu.matmul %92, %21, %cst_27 {dimension_numbers = #tpu.dot_dimension_numbers<[1], [0], [0], [1], [0, 0, 1, 1], [], []>} : vector<2x64xf32>, vector<64x128xf32>, vector<2x128xf32> -> vector<2x128xf32>
    %94 = vector.broadcast %13 : vector<1x128xf32> to vector<2x128xf32>
    %95 = arith.addf %93, %94 : vector<2x128xf32>
    %96 = vector.extract_strided_slice %95 {offsets = [0, 0], sizes = [2, 96], strides = [1, 1]} : vector<2x128xf32> to vector<2x96xf32>
    %97 = arith.negf %96 : vector<2x96xf32>
    %98 = math.exp %97 : vector<2x96xf32>
    %cst_28 = arith.constant 1.000000e+00 : f32
    %99 = vector.broadcast %cst_28 : f32 to vector<2x96xf32>
    %100 = arith.addf %99, %98 : vector<2x96xf32>
    %101 = arith.divf %99, %100 : vector<2x96xf32>
    %102 = vector.extract_strided_slice %95 {offsets = [0, 96], sizes = [2, 32], strides = [1, 1]} : vector<2x128xf32> to vector<2x32xf32>
    %103 = math.tanh %102 : vector<2x32xf32>
    %104 = vector.extract_strided_slice %101 {offsets = [0, 0], sizes = [2, 32], strides = [1, 1]} : vector<2x96xf32> to vector<2x32xf32>
    %105 = vector.extract_strided_slice %101 {offsets = [0, 32], sizes = [2, 32], strides = [1, 1]} : vector<2x96xf32> to vector<2x32xf32>
    %106 = vector.extract_strided_slice %101 {offsets = [0, 64], sizes = [2, 32], strides = [1, 1]} : vector<2x96xf32> to vector<2x32xf32>
    %107 = arith.mulf %105, %69 : vector<2x32xf32>
    %108 = arith.mulf %104, %103 : vector<2x32xf32>
    %109 = arith.addf %107, %108 : vector<2x32xf32>
    %110 = math.tanh %109 : vector<2x32xf32>
    %111 = arith.mulf %106, %110 : vector<2x32xf32>
    %112 = vector.extract_strided_slice %18 {offsets = [0, 2, 0], sizes = [2, 1, 128], strides = [1, 1, 1]} : vector<2x8x128xf32> to vector<2x1x128xf32>
    %113 = vector.shape_cast %112 : vector<2x1x128xf32> to vector<2x128xf32>
    %cst_29 = arith.constant dense<0.000000e+00> : vector<2x128xf32>
    %114 = tpu.matmul %91, %19, %cst_29 {dimension_numbers = #tpu.dot_dimension_numbers<[1], [0], [0], [1], [0, 0, 1, 1], [], []>} : vector<2x32xf32>, vector<32x128xf32>, vector<2x128xf32> -> vector<2x128xf32>
    %115 = arith.addf %113, %114 : vector<2x128xf32>
    %116 = vector.extract_strided_slice %115 {offsets = [0, 0], sizes = [2, 96], strides = [1, 1]} : vector<2x128xf32> to vector<2x96xf32>
    %117 = arith.negf %116 : vector<2x96xf32>
    %118 = math.exp %117 : vector<2x96xf32>
    %cst_30 = arith.constant 1.000000e+00 : f32
    %119 = vector.broadcast %cst_30 : f32 to vector<2x96xf32>
    %120 = arith.addf %119, %118 : vector<2x96xf32>
    %121 = arith.divf %119, %120 : vector<2x96xf32>
    %122 = vector.extract_strided_slice %115 {offsets = [0, 96], sizes = [2, 32], strides = [1, 1]} : vector<2x128xf32> to vector<2x32xf32>
    %123 = math.tanh %122 : vector<2x32xf32>
    %124 = vector.extract_strided_slice %121 {offsets = [0, 0], sizes = [2, 32], strides = [1, 1]} : vector<2x96xf32> to vector<2x32xf32>
    %125 = vector.extract_strided_slice %121 {offsets = [0, 32], sizes = [2, 32], strides = [1, 1]} : vector<2x96xf32> to vector<2x32xf32>
    %126 = vector.extract_strided_slice %121 {offsets = [0, 64], sizes = [2, 32], strides = [1, 1]} : vector<2x96xf32> to vector<2x32xf32>
    %127 = arith.mulf %125, %89 : vector<2x32xf32>
    %128 = arith.mulf %124, %123 : vector<2x32xf32>
    %129 = arith.addf %127, %128 : vector<2x32xf32>
    %130 = math.tanh %129 : vector<2x32xf32>
    %131 = arith.mulf %126, %130 : vector<2x32xf32>
    %132 = tpu.concatenate %131, %111 in 1 : vector<2x32xf32>, vector<2x32xf32> -> vector<2x64xf32>
    %cst_31 = arith.constant dense<0.000000e+00> : vector<2x128xf32>
    %133 = tpu.matmul %132, %21, %cst_31 {dimension_numbers = #tpu.dot_dimension_numbers<[1], [0], [0], [1], [0, 0, 1, 1], [], []>} : vector<2x64xf32>, vector<64x128xf32>, vector<2x128xf32> -> vector<2x128xf32>
    %134 = vector.broadcast %13 : vector<1x128xf32> to vector<2x128xf32>
    %135 = arith.addf %133, %134 : vector<2x128xf32>
    %136 = vector.extract_strided_slice %135 {offsets = [0, 0], sizes = [2, 96], strides = [1, 1]} : vector<2x128xf32> to vector<2x96xf32>
    %137 = arith.negf %136 : vector<2x96xf32>
    %138 = math.exp %137 : vector<2x96xf32>
    %cst_32 = arith.constant 1.000000e+00 : f32
    %139 = vector.broadcast %cst_32 : f32 to vector<2x96xf32>
    %140 = arith.addf %139, %138 : vector<2x96xf32>
    %141 = arith.divf %139, %140 : vector<2x96xf32>
    %142 = vector.extract_strided_slice %135 {offsets = [0, 96], sizes = [2, 32], strides = [1, 1]} : vector<2x128xf32> to vector<2x32xf32>
    %143 = math.tanh %142 : vector<2x32xf32>
    %144 = vector.extract_strided_slice %141 {offsets = [0, 0], sizes = [2, 32], strides = [1, 1]} : vector<2x96xf32> to vector<2x32xf32>
    %145 = vector.extract_strided_slice %141 {offsets = [0, 32], sizes = [2, 32], strides = [1, 1]} : vector<2x96xf32> to vector<2x32xf32>
    %146 = vector.extract_strided_slice %141 {offsets = [0, 64], sizes = [2, 32], strides = [1, 1]} : vector<2x96xf32> to vector<2x32xf32>
    %147 = arith.mulf %145, %109 : vector<2x32xf32>
    %148 = arith.mulf %144, %143 : vector<2x32xf32>
    %149 = arith.addf %147, %148 : vector<2x32xf32>
    %150 = math.tanh %149 : vector<2x32xf32>
    %151 = arith.mulf %146, %150 : vector<2x32xf32>
    %152 = vector.extract_strided_slice %18 {offsets = [0, 3, 0], sizes = [2, 1, 128], strides = [1, 1, 1]} : vector<2x8x128xf32> to vector<2x1x128xf32>
    %153 = vector.shape_cast %152 : vector<2x1x128xf32> to vector<2x128xf32>
    %cst_33 = arith.constant dense<0.000000e+00> : vector<2x128xf32>
    %154 = tpu.matmul %131, %19, %cst_33 {dimension_numbers = #tpu.dot_dimension_numbers<[1], [0], [0], [1], [0, 0, 1, 1], [], []>} : vector<2x32xf32>, vector<32x128xf32>, vector<2x128xf32> -> vector<2x128xf32>
    %155 = arith.addf %153, %154 : vector<2x128xf32>
    %156 = vector.extract_strided_slice %155 {offsets = [0, 0], sizes = [2, 96], strides = [1, 1]} : vector<2x128xf32> to vector<2x96xf32>
    %157 = arith.negf %156 : vector<2x96xf32>
    %158 = math.exp %157 : vector<2x96xf32>
    %cst_34 = arith.constant 1.000000e+00 : f32
    %159 = vector.broadcast %cst_34 : f32 to vector<2x96xf32>
    %160 = arith.addf %159, %158 : vector<2x96xf32>
    %161 = arith.divf %159, %160 : vector<2x96xf32>
    %162 = vector.extract_strided_slice %155 {offsets = [0, 96], sizes = [2, 32], strides = [1, 1]} : vector<2x128xf32> to vector<2x32xf32>
    %163 = math.tanh %162 : vector<2x32xf32>
    %164 = vector.extract_strided_slice %161 {offsets = [0, 0], sizes = [2, 32], strides = [1, 1]} : vector<2x96xf32> to vector<2x32xf32>
    %165 = vector.extract_strided_slice %161 {offsets = [0, 32], sizes = [2, 32], strides = [1, 1]} : vector<2x96xf32> to vector<2x32xf32>
    %166 = vector.extract_strided_slice %161 {offsets = [0, 64], sizes = [2, 32], strides = [1, 1]} : vector<2x96xf32> to vector<2x32xf32>
    %167 = arith.mulf %165, %129 : vector<2x32xf32>
    %168 = arith.mulf %164, %163 : vector<2x32xf32>
    %169 = arith.addf %167, %168 : vector<2x32xf32>
    %170 = math.tanh %169 : vector<2x32xf32>
    %171 = arith.mulf %166, %170 : vector<2x32xf32>
    %172 = tpu.concatenate %171, %151 in 1 : vector<2x32xf32>, vector<2x32xf32> -> vector<2x64xf32>
    %cst_35 = arith.constant dense<0.000000e+00> : vector<2x128xf32>
    %173 = tpu.matmul %172, %21, %cst_35 {dimension_numbers = #tpu.dot_dimension_numbers<[1], [0], [0], [1], [0, 0, 1, 1], [], []>} : vector<2x64xf32>, vector<64x128xf32>, vector<2x128xf32> -> vector<2x128xf32>
    %174 = vector.broadcast %13 : vector<1x128xf32> to vector<2x128xf32>
    %175 = arith.addf %173, %174 : vector<2x128xf32>
    %176 = vector.extract_strided_slice %175 {offsets = [0, 0], sizes = [2, 96], strides = [1, 1]} : vector<2x128xf32> to vector<2x96xf32>
    %177 = arith.negf %176 : vector<2x96xf32>
    %178 = math.exp %177 : vector<2x96xf32>
    %cst_36 = arith.constant 1.000000e+00 : f32
    %179 = vector.broadcast %cst_36 : f32 to vector<2x96xf32>
    %180 = arith.addf %179, %178 : vector<2x96xf32>
    %181 = arith.divf %179, %180 : vector<2x96xf32>
    %182 = vector.extract_strided_slice %175 {offsets = [0, 96], sizes = [2, 32], strides = [1, 1]} : vector<2x128xf32> to vector<2x32xf32>
    %183 = math.tanh %182 : vector<2x32xf32>
    %184 = vector.extract_strided_slice %181 {offsets = [0, 0], sizes = [2, 32], strides = [1, 1]} : vector<2x96xf32> to vector<2x32xf32>
    %185 = vector.extract_strided_slice %181 {offsets = [0, 32], sizes = [2, 32], strides = [1, 1]} : vector<2x96xf32> to vector<2x32xf32>
    %186 = vector.extract_strided_slice %181 {offsets = [0, 64], sizes = [2, 32], strides = [1, 1]} : vector<2x96xf32> to vector<2x32xf32>
    %187 = arith.mulf %185, %149 : vector<2x32xf32>
    %188 = arith.mulf %184, %183 : vector<2x32xf32>
    %189 = arith.addf %187, %188 : vector<2x32xf32>
    %190 = math.tanh %189 : vector<2x32xf32>
    %191 = arith.mulf %186, %190 : vector<2x32xf32>
    %192 = vector.extract_strided_slice %18 {offsets = [0, 4, 0], sizes = [2, 1, 128], strides = [1, 1, 1]} : vector<2x8x128xf32> to vector<2x1x128xf32>
    %193 = vector.shape_cast %192 : vector<2x1x128xf32> to vector<2x128xf32>
    %cst_37 = arith.constant dense<0.000000e+00> : vector<2x128xf32>
    %194 = tpu.matmul %171, %19, %cst_37 {dimension_numbers = #tpu.dot_dimension_numbers<[1], [0], [0], [1], [0, 0, 1, 1], [], []>} : vector<2x32xf32>, vector<32x128xf32>, vector<2x128xf32> -> vector<2x128xf32>
    %195 = arith.addf %193, %194 : vector<2x128xf32>
    %196 = vector.extract_strided_slice %195 {offsets = [0, 0], sizes = [2, 96], strides = [1, 1]} : vector<2x128xf32> to vector<2x96xf32>
    %197 = arith.negf %196 : vector<2x96xf32>
    %198 = math.exp %197 : vector<2x96xf32>
    %cst_38 = arith.constant 1.000000e+00 : f32
    %199 = vector.broadcast %cst_38 : f32 to vector<2x96xf32>
    %200 = arith.addf %199, %198 : vector<2x96xf32>
    %201 = arith.divf %199, %200 : vector<2x96xf32>
    %202 = vector.extract_strided_slice %195 {offsets = [0, 96], sizes = [2, 32], strides = [1, 1]} : vector<2x128xf32> to vector<2x32xf32>
    %203 = math.tanh %202 : vector<2x32xf32>
    %204 = vector.extract_strided_slice %201 {offsets = [0, 0], sizes = [2, 32], strides = [1, 1]} : vector<2x96xf32> to vector<2x32xf32>
    %205 = vector.extract_strided_slice %201 {offsets = [0, 32], sizes = [2, 32], strides = [1, 1]} : vector<2x96xf32> to vector<2x32xf32>
    %206 = vector.extract_strided_slice %201 {offsets = [0, 64], sizes = [2, 32], strides = [1, 1]} : vector<2x96xf32> to vector<2x32xf32>
    %207 = arith.mulf %205, %169 : vector<2x32xf32>
    %208 = arith.mulf %204, %203 : vector<2x32xf32>
    %209 = arith.addf %207, %208 : vector<2x32xf32>
    %210 = math.tanh %209 : vector<2x32xf32>
    %211 = arith.mulf %206, %210 : vector<2x32xf32>
    %212 = tpu.concatenate %211, %191 in 1 : vector<2x32xf32>, vector<2x32xf32> -> vector<2x64xf32>
    %cst_39 = arith.constant dense<0.000000e+00> : vector<2x128xf32>
    %213 = tpu.matmul %212, %21, %cst_39 {dimension_numbers = #tpu.dot_dimension_numbers<[1], [0], [0], [1], [0, 0, 1, 1], [], []>} : vector<2x64xf32>, vector<64x128xf32>, vector<2x128xf32> -> vector<2x128xf32>
    %214 = vector.broadcast %13 : vector<1x128xf32> to vector<2x128xf32>
    %215 = arith.addf %213, %214 : vector<2x128xf32>
    %216 = vector.extract_strided_slice %215 {offsets = [0, 0], sizes = [2, 96], strides = [1, 1]} : vector<2x128xf32> to vector<2x96xf32>
    %217 = arith.negf %216 : vector<2x96xf32>
    %218 = math.exp %217 : vector<2x96xf32>
    %cst_40 = arith.constant 1.000000e+00 : f32
    %219 = vector.broadcast %cst_40 : f32 to vector<2x96xf32>
    %220 = arith.addf %219, %218 : vector<2x96xf32>
    %221 = arith.divf %219, %220 : vector<2x96xf32>
    %222 = vector.extract_strided_slice %215 {offsets = [0, 96], sizes = [2, 32], strides = [1, 1]} : vector<2x128xf32> to vector<2x32xf32>
    %223 = math.tanh %222 : vector<2x32xf32>
    %224 = vector.extract_strided_slice %221 {offsets = [0, 0], sizes = [2, 32], strides = [1, 1]} : vector<2x96xf32> to vector<2x32xf32>
    %225 = vector.extract_strided_slice %221 {offsets = [0, 32], sizes = [2, 32], strides = [1, 1]} : vector<2x96xf32> to vector<2x32xf32>
    %226 = vector.extract_strided_slice %221 {offsets = [0, 64], sizes = [2, 32], strides = [1, 1]} : vector<2x96xf32> to vector<2x32xf32>
    %227 = arith.mulf %225, %189 : vector<2x32xf32>
    %228 = arith.mulf %224, %223 : vector<2x32xf32>
    %229 = arith.addf %227, %228 : vector<2x32xf32>
    %230 = math.tanh %229 : vector<2x32xf32>
    %231 = arith.mulf %226, %230 : vector<2x32xf32>
    %232 = vector.extract_strided_slice %18 {offsets = [0, 5, 0], sizes = [2, 1, 128], strides = [1, 1, 1]} : vector<2x8x128xf32> to vector<2x1x128xf32>
    %233 = vector.shape_cast %232 : vector<2x1x128xf32> to vector<2x128xf32>
    %cst_41 = arith.constant dense<0.000000e+00> : vector<2x128xf32>
    %234 = tpu.matmul %211, %19, %cst_41 {dimension_numbers = #tpu.dot_dimension_numbers<[1], [0], [0], [1], [0, 0, 1, 1], [], []>} : vector<2x32xf32>, vector<32x128xf32>, vector<2x128xf32> -> vector<2x128xf32>
    %235 = arith.addf %233, %234 : vector<2x128xf32>
    %236 = vector.extract_strided_slice %235 {offsets = [0, 0], sizes = [2, 96], strides = [1, 1]} : vector<2x128xf32> to vector<2x96xf32>
    %237 = arith.negf %236 : vector<2x96xf32>
    %238 = math.exp %237 : vector<2x96xf32>
    %cst_42 = arith.constant 1.000000e+00 : f32
    %239 = vector.broadcast %cst_42 : f32 to vector<2x96xf32>
    %240 = arith.addf %239, %238 : vector<2x96xf32>
    %241 = arith.divf %239, %240 : vector<2x96xf32>
    %242 = vector.extract_strided_slice %235 {offsets = [0, 96], sizes = [2, 32], strides = [1, 1]} : vector<2x128xf32> to vector<2x32xf32>
    %243 = math.tanh %242 : vector<2x32xf32>
    %244 = vector.extract_strided_slice %241 {offsets = [0, 0], sizes = [2, 32], strides = [1, 1]} : vector<2x96xf32> to vector<2x32xf32>
    %245 = vector.extract_strided_slice %241 {offsets = [0, 32], sizes = [2, 32], strides = [1, 1]} : vector<2x96xf32> to vector<2x32xf32>
    %246 = vector.extract_strided_slice %241 {offsets = [0, 64], sizes = [2, 32], strides = [1, 1]} : vector<2x96xf32> to vector<2x32xf32>
    %247 = arith.mulf %245, %209 : vector<2x32xf32>
    %248 = arith.mulf %244, %243 : vector<2x32xf32>
    %249 = arith.addf %247, %248 : vector<2x32xf32>
    %250 = math.tanh %249 : vector<2x32xf32>
    %251 = arith.mulf %246, %250 : vector<2x32xf32>
    %252 = tpu.concatenate %251, %231 in 1 : vector<2x32xf32>, vector<2x32xf32> -> vector<2x64xf32>
    %cst_43 = arith.constant dense<0.000000e+00> : vector<2x128xf32>
    %253 = tpu.matmul %252, %21, %cst_43 {dimension_numbers = #tpu.dot_dimension_numbers<[1], [0], [0], [1], [0, 0, 1, 1], [], []>} : vector<2x64xf32>, vector<64x128xf32>, vector<2x128xf32> -> vector<2x128xf32>
    %254 = vector.broadcast %13 : vector<1x128xf32> to vector<2x128xf32>
    %255 = arith.addf %253, %254 : vector<2x128xf32>
    %256 = vector.extract_strided_slice %255 {offsets = [0, 0], sizes = [2, 96], strides = [1, 1]} : vector<2x128xf32> to vector<2x96xf32>
    %257 = arith.negf %256 : vector<2x96xf32>
    %258 = math.exp %257 : vector<2x96xf32>
    %cst_44 = arith.constant 1.000000e+00 : f32
    %259 = vector.broadcast %cst_44 : f32 to vector<2x96xf32>
    %260 = arith.addf %259, %258 : vector<2x96xf32>
    %261 = arith.divf %259, %260 : vector<2x96xf32>
    %262 = vector.extract_strided_slice %255 {offsets = [0, 96], sizes = [2, 32], strides = [1, 1]} : vector<2x128xf32> to vector<2x32xf32>
    %263 = math.tanh %262 : vector<2x32xf32>
    %264 = vector.extract_strided_slice %261 {offsets = [0, 0], sizes = [2, 32], strides = [1, 1]} : vector<2x96xf32> to vector<2x32xf32>
    %265 = vector.extract_strided_slice %261 {offsets = [0, 32], sizes = [2, 32], strides = [1, 1]} : vector<2x96xf32> to vector<2x32xf32>
    %266 = vector.extract_strided_slice %261 {offsets = [0, 64], sizes = [2, 32], strides = [1, 1]} : vector<2x96xf32> to vector<2x32xf32>
    %267 = arith.mulf %265, %229 : vector<2x32xf32>
    %268 = arith.mulf %264, %263 : vector<2x32xf32>
    %269 = arith.addf %267, %268 : vector<2x32xf32>
    %270 = math.tanh %269 : vector<2x32xf32>
    %271 = arith.mulf %266, %270 : vector<2x32xf32>
    %272 = vector.extract_strided_slice %18 {offsets = [0, 6, 0], sizes = [2, 1, 128], strides = [1, 1, 1]} : vector<2x8x128xf32> to vector<2x1x128xf32>
    %273 = vector.shape_cast %272 : vector<2x1x128xf32> to vector<2x128xf32>
    %cst_45 = arith.constant dense<0.000000e+00> : vector<2x128xf32>
    %274 = tpu.matmul %251, %19, %cst_45 {dimension_numbers = #tpu.dot_dimension_numbers<[1], [0], [0], [1], [0, 0, 1, 1], [], []>} : vector<2x32xf32>, vector<32x128xf32>, vector<2x128xf32> -> vector<2x128xf32>
    %275 = arith.addf %273, %274 : vector<2x128xf32>
    %276 = vector.extract_strided_slice %275 {offsets = [0, 0], sizes = [2, 96], strides = [1, 1]} : vector<2x128xf32> to vector<2x96xf32>
    %277 = arith.negf %276 : vector<2x96xf32>
    %278 = math.exp %277 : vector<2x96xf32>
    %cst_46 = arith.constant 1.000000e+00 : f32
    %279 = vector.broadcast %cst_46 : f32 to vector<2x96xf32>
    %280 = arith.addf %279, %278 : vector<2x96xf32>
    %281 = arith.divf %279, %280 : vector<2x96xf32>
    %282 = vector.extract_strided_slice %275 {offsets = [0, 96], sizes = [2, 32], strides = [1, 1]} : vector<2x128xf32> to vector<2x32xf32>
    %283 = math.tanh %282 : vector<2x32xf32>
    %284 = vector.extract_strided_slice %281 {offsets = [0, 0], sizes = [2, 32], strides = [1, 1]} : vector<2x96xf32> to vector<2x32xf32>
    %285 = vector.extract_strided_slice %281 {offsets = [0, 32], sizes = [2, 32], strides = [1, 1]} : vector<2x96xf32> to vector<2x32xf32>
    %286 = vector.extract_strided_slice %281 {offsets = [0, 64], sizes = [2, 32], strides = [1, 1]} : vector<2x96xf32> to vector<2x32xf32>
    %287 = arith.mulf %285, %249 : vector<2x32xf32>
    %288 = arith.mulf %284, %283 : vector<2x32xf32>
    %289 = arith.addf %287, %288 : vector<2x32xf32>
    %290 = math.tanh %289 : vector<2x32xf32>
    %291 = arith.mulf %286, %290 : vector<2x32xf32>
    %292 = tpu.concatenate %291, %271 in 1 : vector<2x32xf32>, vector<2x32xf32> -> vector<2x64xf32>
    %cst_47 = arith.constant dense<0.000000e+00> : vector<2x128xf32>
    %293 = tpu.matmul %292, %21, %cst_47 {dimension_numbers = #tpu.dot_dimension_numbers<[1], [0], [0], [1], [0, 0, 1, 1], [], []>} : vector<2x64xf32>, vector<64x128xf32>, vector<2x128xf32> -> vector<2x128xf32>
    %294 = vector.broadcast %13 : vector<1x128xf32> to vector<2x128xf32>
    %295 = arith.addf %293, %294 : vector<2x128xf32>
    %296 = vector.extract_strided_slice %295 {offsets = [0, 0], sizes = [2, 96], strides = [1, 1]} : vector<2x128xf32> to vector<2x96xf32>
    %297 = arith.negf %296 : vector<2x96xf32>
    %298 = math.exp %297 : vector<2x96xf32>
    %cst_48 = arith.constant 1.000000e+00 : f32
    %299 = vector.broadcast %cst_48 : f32 to vector<2x96xf32>
    %300 = arith.addf %299, %298 : vector<2x96xf32>
    %301 = arith.divf %299, %300 : vector<2x96xf32>
    %302 = vector.extract_strided_slice %295 {offsets = [0, 96], sizes = [2, 32], strides = [1, 1]} : vector<2x128xf32> to vector<2x32xf32>
    %303 = math.tanh %302 : vector<2x32xf32>
    %304 = vector.extract_strided_slice %301 {offsets = [0, 0], sizes = [2, 32], strides = [1, 1]} : vector<2x96xf32> to vector<2x32xf32>
    %305 = vector.extract_strided_slice %301 {offsets = [0, 32], sizes = [2, 32], strides = [1, 1]} : vector<2x96xf32> to vector<2x32xf32>
    %306 = vector.extract_strided_slice %301 {offsets = [0, 64], sizes = [2, 32], strides = [1, 1]} : vector<2x96xf32> to vector<2x32xf32>
    %307 = arith.mulf %305, %269 : vector<2x32xf32>
    %308 = arith.mulf %304, %303 : vector<2x32xf32>
    %309 = arith.addf %307, %308 : vector<2x32xf32>
    %310 = math.tanh %309 : vector<2x32xf32>
    %311 = arith.mulf %306, %310 : vector<2x32xf32>
    %312 = vector.extract_strided_slice %18 {offsets = [0, 7, 0], sizes = [2, 1, 128], strides = [1, 1, 1]} : vector<2x8x128xf32> to vector<2x1x128xf32>
    %313 = vector.shape_cast %312 : vector<2x1x128xf32> to vector<2x128xf32>
    %cst_49 = arith.constant dense<0.000000e+00> : vector<2x128xf32>
    %314 = tpu.matmul %291, %19, %cst_49 {dimension_numbers = #tpu.dot_dimension_numbers<[1], [0], [0], [1], [0, 0, 1, 1], [], []>} : vector<2x32xf32>, vector<32x128xf32>, vector<2x128xf32> -> vector<2x128xf32>
    %315 = arith.addf %313, %314 : vector<2x128xf32>
    %316 = vector.extract_strided_slice %315 {offsets = [0, 0], sizes = [2, 96], strides = [1, 1]} : vector<2x128xf32> to vector<2x96xf32>
    %317 = arith.negf %316 : vector<2x96xf32>
    %318 = math.exp %317 : vector<2x96xf32>
    %cst_50 = arith.constant 1.000000e+00 : f32
    %319 = vector.broadcast %cst_50 : f32 to vector<2x96xf32>
    %320 = arith.addf %319, %318 : vector<2x96xf32>
    %321 = arith.divf %319, %320 : vector<2x96xf32>
    %322 = vector.extract_strided_slice %315 {offsets = [0, 96], sizes = [2, 32], strides = [1, 1]} : vector<2x128xf32> to vector<2x32xf32>
    %323 = math.tanh %322 : vector<2x32xf32>
    %324 = vector.extract_strided_slice %321 {offsets = [0, 0], sizes = [2, 32], strides = [1, 1]} : vector<2x96xf32> to vector<2x32xf32>
    %325 = vector.extract_strided_slice %321 {offsets = [0, 32], sizes = [2, 32], strides = [1, 1]} : vector<2x96xf32> to vector<2x32xf32>
    %326 = vector.extract_strided_slice %321 {offsets = [0, 64], sizes = [2, 32], strides = [1, 1]} : vector<2x96xf32> to vector<2x32xf32>
    %327 = arith.mulf %325, %289 : vector<2x32xf32>
    %328 = arith.mulf %324, %323 : vector<2x32xf32>
    %329 = arith.addf %327, %328 : vector<2x32xf32>
    %330 = math.tanh %329 : vector<2x32xf32>
    %331 = arith.mulf %326, %330 : vector<2x32xf32>
    %332 = tpu.concatenate %331, %311 in 1 : vector<2x32xf32>, vector<2x32xf32> -> vector<2x64xf32>
    %cst_51 = arith.constant dense<0.000000e+00> : vector<2x128xf32>
    %333 = tpu.matmul %332, %21, %cst_51 {dimension_numbers = #tpu.dot_dimension_numbers<[1], [0], [0], [1], [0, 0, 1, 1], [], []>} : vector<2x64xf32>, vector<64x128xf32>, vector<2x128xf32> -> vector<2x128xf32>
    %334 = vector.broadcast %13 : vector<1x128xf32> to vector<2x128xf32>
    %335 = arith.addf %333, %334 : vector<2x128xf32>
    %336 = vector.extract_strided_slice %335 {offsets = [0, 0], sizes = [2, 96], strides = [1, 1]} : vector<2x128xf32> to vector<2x96xf32>
    %337 = arith.negf %336 : vector<2x96xf32>
    %338 = math.exp %337 : vector<2x96xf32>
    %cst_52 = arith.constant 1.000000e+00 : f32
    %339 = vector.broadcast %cst_52 : f32 to vector<2x96xf32>
    %340 = arith.addf %339, %338 : vector<2x96xf32>
    %341 = arith.divf %339, %340 : vector<2x96xf32>
    %342 = vector.extract_strided_slice %335 {offsets = [0, 96], sizes = [2, 32], strides = [1, 1]} : vector<2x128xf32> to vector<2x32xf32>
    %343 = math.tanh %342 : vector<2x32xf32>
    %344 = vector.extract_strided_slice %341 {offsets = [0, 0], sizes = [2, 32], strides = [1, 1]} : vector<2x96xf32> to vector<2x32xf32>
    %345 = vector.extract_strided_slice %341 {offsets = [0, 32], sizes = [2, 32], strides = [1, 1]} : vector<2x96xf32> to vector<2x32xf32>
    %346 = vector.extract_strided_slice %341 {offsets = [0, 64], sizes = [2, 32], strides = [1, 1]} : vector<2x96xf32> to vector<2x32xf32>
    %347 = arith.mulf %345, %309 : vector<2x32xf32>
    %348 = arith.mulf %344, %343 : vector<2x32xf32>
    %349 = arith.addf %347, %348 : vector<2x32xf32>
    %350 = math.tanh %349 : vector<2x32xf32>
    %351 = arith.mulf %346, %350 : vector<2x32xf32>
    %352 = vector.extract_strided_slice %71 {offsets = [0, 0], sizes = [1, 32], strides = [1, 1]} : vector<2x32xf32> to vector<1x32xf32>
    %353 = vector.extract_strided_slice %111 {offsets = [0, 0], sizes = [1, 32], strides = [1, 1]} : vector<2x32xf32> to vector<1x32xf32>
    %354 = vector.extract_strided_slice %151 {offsets = [0, 0], sizes = [1, 32], strides = [1, 1]} : vector<2x32xf32> to vector<1x32xf32>
    %355 = vector.extract_strided_slice %191 {offsets = [0, 0], sizes = [1, 32], strides = [1, 1]} : vector<2x32xf32> to vector<1x32xf32>
    %356 = vector.extract_strided_slice %231 {offsets = [0, 0], sizes = [1, 32], strides = [1, 1]} : vector<2x32xf32> to vector<1x32xf32>
    %357 = vector.extract_strided_slice %271 {offsets = [0, 0], sizes = [1, 32], strides = [1, 1]} : vector<2x32xf32> to vector<1x32xf32>
    %358 = vector.extract_strided_slice %311 {offsets = [0, 0], sizes = [1, 32], strides = [1, 1]} : vector<2x32xf32> to vector<1x32xf32>
    %359 = vector.extract_strided_slice %351 {offsets = [0, 0], sizes = [1, 32], strides = [1, 1]} : vector<2x32xf32> to vector<1x32xf32>
    %360 = vector.extract_strided_slice %71 {offsets = [1, 0], sizes = [1, 32], strides = [1, 1]} : vector<2x32xf32> to vector<1x32xf32>
    %361 = vector.extract_strided_slice %111 {offsets = [1, 0], sizes = [1, 32], strides = [1, 1]} : vector<2x32xf32> to vector<1x32xf32>
    %362 = vector.extract_strided_slice %151 {offsets = [1, 0], sizes = [1, 32], strides = [1, 1]} : vector<2x32xf32> to vector<1x32xf32>
    %363 = vector.extract_strided_slice %191 {offsets = [1, 0], sizes = [1, 32], strides = [1, 1]} : vector<2x32xf32> to vector<1x32xf32>
    %364 = vector.extract_strided_slice %231 {offsets = [1, 0], sizes = [1, 32], strides = [1, 1]} : vector<2x32xf32> to vector<1x32xf32>
    %365 = vector.extract_strided_slice %271 {offsets = [1, 0], sizes = [1, 32], strides = [1, 1]} : vector<2x32xf32> to vector<1x32xf32>
    %366 = vector.extract_strided_slice %311 {offsets = [1, 0], sizes = [1, 32], strides = [1, 1]} : vector<2x32xf32> to vector<1x32xf32>
    %367 = vector.extract_strided_slice %351 {offsets = [1, 0], sizes = [1, 32], strides = [1, 1]} : vector<2x32xf32> to vector<1x32xf32>
    %368 = tpu.concatenate %352, %353, %354, %355, %356, %357, %358, %359, %360, %361, %362, %363, %364, %365, %366, %367 in 0 : vector<1x32xf32>, vector<1x32xf32>, vector<1x32xf32>, vector<1x32xf32>, vector<1x32xf32>, vector<1x32xf32>, vector<1x32xf32>, vector<1x32xf32>, vector<1x32xf32>, vector<1x32xf32>, vector<1x32xf32>, vector<1x32xf32>, vector<1x32xf32>, vector<1x32xf32>, vector<1x32xf32>, vector<1x32xf32> -> vector<16x32xf32>
    %c0_53 = arith.constant 0 : index
    %c0_54 = arith.constant 0 : index
    %c0_55 = arith.constant 0 : index
    %369 = vector.load %arg15[%c0_53, %c0_54, %c0_55] : memref<2x8x32xf32, #tpu.memory_space<vmem>>, vector<2x8x32xf32>
    %370 = vector.shape_cast %369 : vector<2x8x32xf32> to vector<16x32xf32>
    %cst_56 = arith.constant dense<0.000000e+00> : vector<16x16xf32>
    %371 = tpu.matmul %368, %370, %cst_56 {dimension_numbers = #tpu.dot_dimension_numbers<[1], [1], [0], [0], [0, 0, 1, 0], [], []>} : vector<16x32xf32>, vector<16x32xf32>, vector<16x16xf32> -> vector<16x16xf32>
    %c0_57 = arith.constant 0 : index
    %c0_58 = arith.constant 0 : index
    %372 = vector.load %arg12[%c0_57, %c0_58] : memref<16x16xf32, #tpu.memory_space<vmem>>, vector<16x16xf32>
    %373 = arith.addf %371, %372 : vector<16x16xf32>
    %cst_59 = arith.constant dense<0xFF800000> : vector<16xf32>
    %374 = vector.multi_reduction <maximumf>, %373, %cst_59 [1] : vector<16x16xf32> to vector<16xf32>
    %375 = vector.shape_cast %374 : vector<16xf32> to vector<16x1xf32>
    %376 = vector.broadcast %375 : vector<16x1xf32> to vector<16x16xf32>
    %377 = arith.subf %373, %376 : vector<16x16xf32>
    %378 = math.exp %377 : vector<16x16xf32>
    %cst_60 = arith.constant dense<0.000000e+00> : vector<16xf32>
    %379 = vector.multi_reduction <add>, %378, %cst_60 [1] : vector<16x16xf32> to vector<16xf32>
    %380 = vector.shape_cast %379 : vector<16xf32> to vector<16x1xf32>
    %381 = tpu.reciprocal %380 {approx = true} : vector<16x1xf32> -> vector<16x1xf32>
    %382 = vector.broadcast %381 : vector<16x1xf32> to vector<16x16xf32>
    %383 = arith.mulf %378, %382 : vector<16x16xf32>
    %cst_61 = arith.constant dense<0.000000e+00> : vector<16x32xf32>
    %384 = tpu.matmul %383, %370, %cst_61 {dimension_numbers = #tpu.dot_dimension_numbers<[1], [0], [0], [1], [0, 0, 1, 1], [], []>} : vector<16x16xf32>, vector<16x32xf32>, vector<16x32xf32> -> vector<16x32xf32>
    %c0_62 = arith.constant 0 : index
    %c0_63 = arith.constant 0 : index
    %385 = vector.load %arg7[%c0_62, %c0_63] : memref<32x32xf32, #tpu.memory_space<vmem>>, vector<32x32xf32>
    %cst_64 = arith.constant dense<0.000000e+00> : vector<16x32xf32>
    %386 = tpu.matmul %384, %385, %cst_64 {dimension_numbers = #tpu.dot_dimension_numbers<[1], [0], [0], [1], [0, 0, 1, 1], [], []>} : vector<16x32xf32>, vector<32x32xf32>, vector<16x32xf32> -> vector<16x32xf32>
    %c0_65 = arith.constant 0 : index
    %c0_66 = arith.constant 0 : index
    %387 = vector.load %arg8[%c0_65, %c0_66] : memref<32x32xf32, #tpu.memory_space<vmem>>, vector<32x32xf32>
    %cst_67 = arith.constant dense<0.000000e+00> : vector<16x32xf32>
    %388 = tpu.matmul %368, %387, %cst_67 {dimension_numbers = #tpu.dot_dimension_numbers<[1], [0], [0], [1], [0, 0, 1, 1], [], []>} : vector<16x32xf32>, vector<32x32xf32>, vector<16x32xf32> -> vector<16x32xf32>
    %389 = arith.addf %386, %388 : vector<16x32xf32>
    %c0_68 = arith.constant 0 : index
    %c0_69 = arith.constant 0 : index
    %390 = vector.load %arg9[%c0_68, %c0_69] : memref<1x32xf32, #tpu.memory_space<vmem>>, vector<1x32xf32>
    %391 = vector.broadcast %390 : vector<1x32xf32> to vector<16x32xf32>
    %392 = arith.addf %389, %391 : vector<16x32xf32>
    %393 = math.tanh %392 : vector<16x32xf32>
    %c0_70 = arith.constant 0 : index
    %c0_71 = arith.constant 0 : index
    %394 = vector.load %arg10[%c0_70, %c0_71] : memref<32x8xf32, #tpu.memory_space<vmem>>, vector<32x8xf32>
    %cst_72 = arith.constant dense<0.000000e+00> : vector<16x8xf32>
    %395 = tpu.matmul %393, %394, %cst_72 {dimension_numbers = #tpu.dot_dimension_numbers<[1], [0], [0], [1], [0, 0, 1, 1], [], []>} : vector<16x32xf32>, vector<32x8xf32>, vector<16x8xf32> -> vector<16x8xf32>
    %c0_73 = arith.constant 0 : index
    %c0_74 = arith.constant 0 : index
    %396 = vector.load %arg11[%c0_73, %c0_74] : memref<1x8xf32, #tpu.memory_space<vmem>>, vector<1x8xf32>
    %397 = vector.broadcast %396 : vector<1x8xf32> to vector<16x8xf32>
    %398 = arith.addf %395, %397 : vector<16x8xf32>
    %cst_75 = arith.constant dense<0xFF800000> : vector<16xf32>
    %399 = vector.multi_reduction <maximumf>, %398, %cst_75 [1] : vector<16x8xf32> to vector<16xf32>
    %400 = vector.shape_cast %399 : vector<16xf32> to vector<16x1xf32>
    %401 = vector.broadcast %400 : vector<16x1xf32> to vector<16x8xf32>
    %402 = arith.subf %398, %401 : vector<16x8xf32>
    %403 = math.exp %402 : vector<16x8xf32>
    %cst_76 = arith.constant dense<0.000000e+00> : vector<16xf32>
    %404 = vector.multi_reduction <add>, %403, %cst_76 [1] : vector<16x8xf32> to vector<16xf32>
    %405 = vector.shape_cast %404 : vector<16xf32> to vector<16x1xf32>
    %406 = math.log %405 : vector<16x1xf32>
    %407 = arith.addf %406, %400 : vector<16x1xf32>
    %408 = vector.broadcast %407 : vector<16x1xf32> to vector<16x8xf32>
    %409 = arith.subf %398, %408 : vector<16x8xf32>
    %410 = vector.shape_cast %409 : vector<16x8xf32> to vector<2x8x8xf32>
    %c0_77 = arith.constant 0 : index
    %c0_78 = arith.constant 0 : index
    %c0_79 = arith.constant 0 : index
    %411 = vector.load %arg16[%c0_77, %c0_78, %c0_79] : memref<2x8x8xf32, #tpu.memory_space<vmem>>, vector<2x8x8xf32>
    tpu.vector_store %arg16[%c0_77, %c0_78, %c0_79], %410 {strides = array<i32>} : memref<2x8x8xf32, #tpu.memory_space<vmem>>, vector<2x8x8xf32>,
    %412 = vector.shape_cast %383 : vector<16x16xf32> to vector<2x8x16xf32>
    %413 = vector.extract_strided_slice %412 {offsets = [0, 0, 0], sizes = [1, 8, 8], strides = [1, 1, 1]} : vector<2x8x16xf32> to vector<1x8x8xf32>
    %414 = vector.extract_strided_slice %412 {offsets = [1, 0, 8], sizes = [1, 8, 8], strides = [1, 1, 1]} : vector<2x8x16xf32> to vector<1x8x8xf32>
    %415 = tpu.concatenate %413, %414 in 0 : vector<1x8x8xf32>, vector<1x8x8xf32> -> vector<2x8x8xf32>
    %c0_80 = arith.constant 0 : index
    %c0_81 = arith.constant 0 : index
    %c0_82 = arith.constant 0 : index
    %416 = vector.load %arg17[%c0_80, %c0_81, %c0_82] : memref<2x8x8xf32, #tpu.memory_space<vmem>>, vector<2x8x8xf32>
    tpu.vector_store %arg17[%c0_80, %c0_81, %c0_82], %415 {strides = array<i32>} : memref<2x8x8xf32, #tpu.memory_space<vmem>>, vector<2x8x8xf32>,
    %417 = vector.extract_strided_slice %331 {offsets = [0, 0], sizes = [1, 32], strides = [1, 1]} : vector<2x32xf32> to vector<1x32xf32>
    %418 = vector.extract_strided_slice %351 {offsets = [0, 0], sizes = [1, 32], strides = [1, 1]} : vector<2x32xf32> to vector<1x32xf32>
    %419 = vector.extract_strided_slice %331 {offsets = [1, 0], sizes = [1, 32], strides = [1, 1]} : vector<2x32xf32> to vector<1x32xf32>
    %420 = vector.extract_strided_slice %351 {offsets = [1, 0], sizes = [1, 32], strides = [1, 1]} : vector<2x32xf32> to vector<1x32xf32>
    %421 = tpu.concatenate %417, %418, %419, %420 in 0 : vector<1x32xf32>, vector<1x32xf32>, vector<1x32xf32>, vector<1x32xf32> -> vector<4x32xf32>
    %422 = vector.shape_cast %421 : vector<4x32xf32> to vector<2x2x32xf32>
    %c0_83 = arith.constant 0 : index
    %c0_84 = arith.constant 0 : index
    %c0_85 = arith.constant 0 : index
    %423 = vector.load %arg18[%c0_83, %c0_84, %c0_85] : memref<2x2x32xf32, #tpu.memory_space<vmem>>, vector<2x2x32xf32>
    tpu.vector_store %arg18[%c0_83, %c0_84, %c0_85], %422 {strides = array<i32>} : memref<2x2x32xf32, #tpu.memory_space<vmem>>, vector<2x2x32xf32>,
    %424 = vector.extract_strided_slice %329 {offsets = [0, 0], sizes = [1, 32], strides = [1, 1]} : vector<2x32xf32> to vector<1x32xf32>
    %425 = vector.extract_strided_slice %349 {offsets = [0, 0], sizes = [1, 32], strides = [1, 1]} : vector<2x32xf32> to vector<1x32xf32>
    %426 = vector.extract_strided_slice %329 {offsets = [1, 0], sizes = [1, 32], strides = [1, 1]} : vector<2x32xf32> to vector<1x32xf32>
    %427 = vector.extract_strided_slice %349 {offsets = [1, 0], sizes = [1, 32], strides = [1, 1]} : vector<2x32xf32> to vector<1x32xf32>
    %428 = tpu.concatenate %424, %425, %426, %427 in 0 : vector<1x32xf32>, vector<1x32xf32>, vector<1x32xf32>, vector<1x32xf32> -> vector<4x32xf32>
    %429 = vector.shape_cast %428 : vector<4x32xf32> to vector<2x2x32xf32>
    %c0_86 = arith.constant 0 : index
    %c0_87 = arith.constant 0 : index
    %c0_88 = arith.constant 0 : index
    %430 = vector.load %arg19[%c0_86, %c0_87, %c0_88] : memref<2x2x32xf32, #tpu.memory_space<vmem>>, vector<2x2x32xf32>
    tpu.vector_store %arg19[%c0_86, %c0_87, %c0_88], %429 {strides = array<i32>} : memref<2x2x32xf32, #tpu.memory_space<vmem>>, vector<2x2x32xf32>,
    return
  }
  func.func @transform_0(%arg0: i32) -> (i32, i32, i32) {
    %c0_i32 = arith.constant 0 : i32
    %c0_i32_0 = arith.constant 0 : i32
    %c0_i32_1 = arith.constant 0 : i32
    return %arg0, %c0_i32, %c0_i32_0 : i32, i32, i32
  }
  func.func @transform_1(%arg0: i32) -> (i32, i32) {
    %c0_i32 = arith.constant 0 : i32
    %c0_i32_0 = arith.constant 0 : i32
    %c0_i32_1 = arith.constant 0 : i32
    return %c0_i32, %c0_i32_0 : i32, i32
  }
  func.func @transform_2(%arg0: i32) -> (i32, i32) {
    %c0_i32 = arith.constant 0 : i32
    %c0_i32_0 = arith.constant 0 : i32
    %c0_i32_1 = arith.constant 0 : i32
    return %c0_i32, %c0_i32_0 : i32, i32
  }
  func.func @transform_3(%arg0: i32) -> (i32, i32) {
    %c0_i32 = arith.constant 0 : i32
    %c0_i32_0 = arith.constant 0 : i32
    %c0_i32_1 = arith.constant 0 : i32
    return %c0_i32, %c0_i32_0 : i32, i32
  }
  func.func @transform_4(%arg0: i32) -> (i32, i32, i32) {
    %c0_i32 = arith.constant 0 : i32
    %c0_i32_0 = arith.constant 0 : i32
    %c0_i32_1 = arith.constant 0 : i32
    %c0_i32_2 = arith.constant 0 : i32
    return %c0_i32, %c0_i32_0, %c0_i32_1 : i32, i32, i32
  }
  func.func @transform_5(%arg0: i32) -> (i32, i32, i32) {
    %c0_i32 = arith.constant 0 : i32
    %c0_i32_0 = arith.constant 0 : i32
    %c0_i32_1 = arith.constant 0 : i32
    %c0_i32_2 = arith.constant 0 : i32
    return %c0_i32, %c0_i32_0, %c0_i32_1 : i32, i32, i32
  }
  func.func @transform_6(%arg0: i32) -> (i32, i32) {
    %c0_i32 = arith.constant 0 : i32
    %c0_i32_0 = arith.constant 0 : i32
    %c0_i32_1 = arith.constant 0 : i32
    return %c0_i32, %c0_i32_0 : i32, i32
  }
  func.func @transform_7(%arg0: i32) -> (i32, i32) {
    %c0_i32 = arith.constant 0 : i32
    %c0_i32_0 = arith.constant 0 : i32
    %c0_i32_1 = arith.constant 0 : i32
    return %c0_i32, %c0_i32_0 : i32, i32
  }
  func.func @transform_8(%arg0: i32) -> (i32, i32) {
    %c0_i32 = arith.constant 0 : i32
    %c0_i32_0 = arith.constant 0 : i32
    %c0_i32_1 = arith.constant 0 : i32
    return %c0_i32, %c0_i32_0 : i32, i32
  }
  func.func @transform_9(%arg0: i32) -> (i32, i32) {
    %c0_i32 = arith.constant 0 : i32
    %c0_i32_0 = arith.constant 0 : i32
    %c0_i32_1 = arith.constant 0 : i32
    return %c0_i32, %c0_i32_0 : i32, i32
  }
  func.func @transform_10(%arg0: i32) -> (i32, i32) {
    %c0_i32 = arith.constant 0 : i32
    %c0_i32_0 = arith.constant 0 : i32
    %c0_i32_1 = arith.constant 0 : i32
    return %c0_i32, %c0_i32_0 : i32, i32
  }
  func.func @transform_11(%arg0: i32) -> (i32, i32) {
    %c0_i32 = arith.constant 0 : i32
    %c0_i32_0 = arith.constant 0 : i32
    %c0_i32_1 = arith.constant 0 : i32
    return %c0_i32, %c0_i32_0 : i32, i32
  }
  func.func @transform_12(%arg0: i32) -> (i32, i32, i32) {
    %c0_i32 = arith.constant 0 : i32
    %c0_i32_0 = arith.constant 0 : i32
    %c0_i32_1 = arith.constant 0 : i32
    return %arg0, %c0_i32, %c0_i32_0 : i32, i32, i32
  }
  func.func @transform_13(%arg0: i32) -> (i32, i32, i32) {
    %c0_i32 = arith.constant 0 : i32
    %c0_i32_0 = arith.constant 0 : i32
    %c0_i32_1 = arith.constant 0 : i32
    return %arg0, %c0_i32, %c0_i32_0 : i32, i32, i32
  }
  func.func @transform_14(%arg0: i32) -> (i32, i32, i32) {
    %c0_i32 = arith.constant 0 : i32
    %c0_i32_0 = arith.constant 0 : i32
    %c0_i32_1 = arith.constant 0 : i32
    return %arg0, %c0_i32, %c0_i32_0 : i32, i32, i32
  }
  func.func @transform_15(%arg0: i32) -> (i32, i32, i32) {
    %c0_i32 = arith.constant 0 : i32
    %c0_i32_0 = arith.constant 0 : i32
    %c0_i32_1 = arith.constant 0 : i32
    return %arg0, %c0_i32, %c0_i32_0 : i32, i32, i32
  }
  func.func @transform_16(%arg0: i32) -> (i32, i32, i32) {
    %c0_i32 = arith.constant 0 : i32
    %c0_i32_0 = arith.constant 0 : i32
    %c0_i32_1 = arith.constant 0 : i32
    return %arg0, %c0_i32, %c0_i32_0 : i32, i32, i32
  }
  func.func @transform_17(%arg0: i32) -> (i32, i32, i32) {
    %c0_i32 = arith.constant 0 : i32
    %c0_i32_0 = arith.constant 0 : i32
    %c0_i32_1 = arith.constant 0 : i32
    return %arg0, %c0_i32, %c0_i32_0 : i32, i32, i32
  }
  func.func @transform_18(%arg0: i32) -> (i32, i32, i32) {
    %c0_i32 = arith.constant 0 : i32
    %c0_i32_0 = arith.constant 0 : i32
    %c0_i32_1 = arith.constant 0 : i32
    return %arg0, %c0_i32, %c0_i32_0 : i32, i32, i32
  }
}

</mosaic_0001>

<bundles_post_ra>
// kernel: tpu_custom_call.1
= control target key start
LH: loop header
LB: loop body
LE: loop exit
PB: predicated region body
PF: predicated region fallthrough
CT: control target
= control target key end

     0   :  { %s3501_s0 = inlined_call_operand.vmem [shape: s32[2,8,1], index: 0, kind: input, shape index: {}]   ;;  %s3502_s1 = inlined_call_operand.hbm [shape: f32[8,32], index: 1, kind: input, shape index: {}]   ;;  %s3503_s2 = inlined_call_operand.vmem [shape: f32[32,128], index: 2, kind: input, shape index: {}]   ;;  %s3504_s3 = inlined_call_operand.hbm [shape: f32[32,128], index: 3, kind: input, shape index: {}]   ;;  %s3505_s4 = inlined_call_operand.hbm [shape: f32[1,64,128], index: 4, kind: input, shape index: {}]   ;;  %s3506_s5 = inlined_call_operand.hbm [shape: f32[2,1,128], index: 5, kind: input, shape index: {}]   ;;  %s3507_s6 = inlined_call_operand.hbm [shape: f32[32,32], index: 6, kind: input, shape index: {}]   ;;  %s3508_s7 = inlined_call_operand.hbm [shape: f32[32,32], index: 7, kind: input, shape index: {}]   ;;  %s3509_s8 = inlined_call_operand.vmem [shape: f32[1,32], index: 8, kind: input, shape index: {}]   ;;  %s3510_s9 = inlined_call_operand.vmem [shape: f32[32,8], index: 9, kind: input, shape index: {}]   ;;  %s3511_s10 = inlined_call_operand.vmem [shape: f32[1,8], index: 10, kind: input, shape index: {}]   ;;  %s3512_s11 = inlined_call_operand.vmem [shape: f32[16,16], index: 11, kind: input, shape index: {}]   ;;  %s3513_s12 = inlined_call_operand.vmem [shape: f32[2,2,32], index: 12, kind: input, shape index: {}]   ;;  %s3514_s13 = inlined_call_operand.vmem [shape: f32[2,2,32], index: 13, kind: input, shape index: {}]   ;;  %s3515_s14 = inlined_call_operand.hbm [shape: f32[2,8,32], index: 14, kind: input, shape index: {}]   ;;  %s3516_s15 = inlined_call_operand.hbm [shape: f32[2,8,8], index: 15, kind: output, shape index: {0}]   ;;  %s3517_s16 = inlined_call_operand.hbm [shape: f32[2,8,8], index: 16, kind: output, shape index: {1}]   ;;  %s3518_s17 = inlined_call_operand.hbm [shape: f32[2,2,32], index: 17, kind: output, shape index: {2}]   ;;  %s3519_s18 = inlined_call_operand.hbm [shape: f32[2,2,32], index: 18, kind: output, shape index: {3}]  }
   0x1   :  { %3522 = sst [smem:[#allocation27_spill]] %s3501_s0 }
   0x2   :  { %3523 = sst [smem:[#allocation28_spill]] %s3502_s1 }
   0x3   :  { %3524 = sst [smem:[#allocation29_spill]] %s3503_s2 }
   0x4   :  { %3525 = sst [smem:[#allocation30_spill]] %s3519_s18 }
   0x5   :  { %24 = vsyncpa [#allocation3], 0 }
   0x6   :  { %25 = vsyncpa [#allocation6], 0 }
   0x7   :  { %26 = vsyncpa [#allocation9], 0 }
   0x8   :  { %27 = vsyncpa [#allocation12], 0 }
   0x9   :  { %28 = vsyncpa [#allocation4], 0 }
   0xa   :  { %29 = vsyncpa [#allocation16], 0  ;;  %s50_s29 = sshll.u32 %s3504_s3, 4  ;;  %s51_s29 = int_to_ptr.hbm [resolvable:$true] %s50_s29 }
   0xb   :  { %30 = vsyncpa [#allocation19], 0  ;;  %s2774_s30 = smov [#allocation5]   ;;  %s76_s20 = sshll.u32 %s3506_s5, 4  ;;  %s77_s20 = int_to_ptr.hbm [resolvable:$true] %s76_s20 }
   0xc   :  { %s52_s0 = sshll.u32 %s2774_s30, 4  ;;  %s2775_s21 = smov 128   ;;  %s53_s0 = int_to_ptr.vmem [resolvable:$true] %s52_s0 }
   0xd   :  { %s2776_s22 = smov 8   ;;  %s2777_s2 = smov [#allocation8]  }
   0xe   :  { %58 = dma.hbm_to_vmem [thread:$0]  %s51_s29, 512, %s53_s0, [#allocation6], %s2775_s21, %s2775_s21, %s2776_s22  }
   0xf   :  { %s78_s23 = sshll.u32 %s2777_s2, 4  ;;  %s2778_s3 = smov 16   ;;  %s79_s23 = int_to_ptr.vmem [resolvable:$true] %s78_s23 }
  0x10   :  { %s2779_s24 = smov 1   ;;  %s102_s27 = sshll.u32 %s3508_s7, 4  ;;  %s103_s27 = int_to_ptr.hbm [resolvable:$true] %s102_s27 }
  0x11   :  { %84 = dma.hbm_to_vmem [thread:$0]  %s77_s20, 32, %s79_s23, [#allocation9], %s2778_s3, %s2778_s3, %s2779_s24  }
  0x12   :  { %s2780_s28 = smov [#allocation11]   ;;  %s3526_s1 = sld [smem:[#allocation28_spill]] }
  0x13   :  { %s104_s5 = sshll.u32 %s2780_s28, 4  ;;  %s2781_s29 = smov [#allocation2]   ;;  %s105_s5 = int_to_ptr.vmem [resolvable:$true] %s104_s5 }
  0x14   :  { %110 = dma.hbm_to_vmem [thread:$0]  %s103_s27, 512, %s105_s5, [#allocation12], %s2775_s21, %s2775_s21, %s2776_s22  }
  0x15   :  { %s40_s0 = sshll.u32 %s2781_s29, 4  ;;  %s63_s23 = sshll.u32 %s3505_s4, 4  ;;  %s41_s0 = int_to_ptr.vmem [resolvable:$true] %s40_s0  ;;  %s64_s23 = int_to_ptr.hbm [resolvable:$true] %s63_s23 }
  0x16   :  { %s89_s24 = sshll.u32 %s3507_s6, 4  ;;  %s2782_s25 = smov [#allocation7]   ;;  %s90_s24 = int_to_ptr.hbm [resolvable:$true] %s89_s24 }
  0x17   :  { %s65_s26 = sshll.u32 %s2782_s25, 4  ;;  %s2783_s27 = smov [#allocation10]   ;;  %s66_s26 = int_to_ptr.vmem [resolvable:$true] %s65_s26 }
  0x18   :  { %s38_s18 = sshll.u32 %s3526_s1, 4  ;;  %s91_s28 = sshll.u32 %s2783_s27, 4  ;;  %s39_s18 = int_to_ptr.hbm [resolvable:$true] %s38_s18  ;;  %s92_s28 = int_to_ptr.vmem [resolvable:$true] %s91_s28 }
  0x19   :  { %43 = dma.hbm_to_vmem [thread:$0]  %s39_s18, 128, %s41_s0, [#allocation3]  }
  0x1a   :  { %71 = dma.hbm_to_vmem [thread:$0]  %s64_s23, 1024, %s66_s26, [#allocation6], %s2775_s21, %s2775_s21, %s2776_s22  }
  0x1b   :  { %s127_s4 = sshll.u32 %s3515_s14, 4  ;;  %s2784_s6 = smov [#allocation13]   ;;  %s128_s4 = int_to_ptr.hbm [resolvable:$true] %s127_s4 }
  0x1c   :  { %97 = dma.hbm_to_vmem [thread:$0]  %s90_s24, 512, %s92_s28, [#allocation9], %s2775_s21, %s2775_s21, %s2776_s22  }
  0x1d   :  { %s129_s18 = sshll.u32 %s2784_s6, 4  ;;  %s130_s18 = int_to_ptr.vmem [resolvable:$true] %s129_s18 }
  0x1e   :  { %135 = dma.hbm_to_vmem [thread:$0]  %s128_s4, 256, %s130_s18, [#allocation12], %s2775_s21, %s2775_s21, %s2776_s22  }
  0x1f   :  { %2760 = dma.done.wait [#allocation3], 128  }
  0x20   :  { %2761 = vsyncadd [#allocation3], 4294967168 }
  0x21   :  { %2762 = dma.done.wait [#allocation6], 1536  }
  0x22   :  { %2763 = vsyncadd [#allocation6], 4294965760 }
  0x23   :  { %2764 = dma.done.wait [#allocation9], 544  }
  0x24   :  { %2765 = vsyncadd [#allocation9], 4294966752 }
  0x25   :  { %2766 = dma.done.wait [#allocation12], 768  }
  0x26   :  { %2767 = vsyncadd [#allocation12], 4294966528  ;;  %v2785_v0 = vmov 0   ;;  %s3527_s1 = sld [smem:[#allocation27_spill]]  ;;  %v180_v3 = vld [vmem:[#allocation2] sm:$0xff]  ;;  %v2935_v5 = vld [vmem:[#allocation5 + $0x10] sm:$0xff]  ;;  %v166_v15 = vlaneseq }
  0x27   :  { %2278 = vset.pattern.permute.xlu0 %v2785_v0  ;;  %203 = vmatpush.msra.mxu0 %v180_v3  ;;  %v2933_v4 = vld [vmem:[#allocation5 + $0x18] sm:$0xff]  ;;  %s3528_s23 = sld [smem:[#allocation29_spill]]  ;;  %v2941_v7 = vld [vmem:[#allocation5 + $0x8] sm:$0xff]  ;;  %v2949_v9 = vld [vmem:[%s3513_s12] sm:$0x3]  ;;  %vm269_vm0 = vcmask 1041409  }
  0x28   :  { %285 = vmatpush.msra.mxu3 %v2933_v4  ;;  %v2954_v10 = vld [vmem:[%s3513_s12 + $0x2] sm:$0x3]  ;;  %477 = vmatpush.msra.mxu2 %v2933_v4  ;;  %v2962_v13 = vld [vmem:[#allocation5] sm:$0xff]  ;;  %vm220_vm1 = vcmask 261120   ;;  %v167_v16 = vand.u32 127, %v166_v15  ;;  %vm181_vm2 = vcmask 64512  }
  0x29   :  { %v268_v12 = vrot.slane %v2954_v10, 7  ;;  %v2786_v18 = vmov 0.0   ;;  %v2984_v23 = vld [vmem:[%s3514_s13 + $0x2] sm:$0x3]  ;;  %s2787_s18 = smov 32   ;;  %vm397_vm13 = vcmask 523264  }
  0x2a   :  { %286 = vmatpush.msra.mxu3 %v2935_v5  ;;  %478 = vmatpush.msra.mxu2 %v2935_v5  ;;  %v2991_v24 = vld [vmem:[%s3514_s13] sm:$0x3]  ;;  %v2279_v29 = vld [vmem:[#allocation8] ss:$0 sm:$0xff]  ;;  %s2788_s13 = smov 64   ;;  %s2142_s14 = sshll.u32 %s3517_s16, 4  ;;  %s2143_s14 = int_to_ptr.hbm [resolvable:$true] %s2142_s14 }
  0x2b   :  { %v270_v14 = vsel %vm269_vm0, %v268_v12, %v2949_v9  ;;  %343 = vrot.lane.b32.xlu2 %v2984_v23, %s2787_s18  ;;  %s2792_s16 = smov [#allocation17]   ;;  %s2155_s20 = sshll.u32 %s3518_s17, 4  ;;  %s2156_s20 = int_to_ptr.hbm [resolvable:$true] %s2155_s20 }
  0x2c   :  { %v164_v1 = vld [vmem:[%s3527_s1] sm:$0xff]  ;;  %v165_v2 = vld [vmem:[%s3527_s1 + $0x8] sm:$0xff]  ;;  %287 = vmatpush.msra.mxu3 %v2941_v7  ;;  %479 = vmatpush.msra.mxu2 %v2941_v7  ;;  %s2789_s1 = smov 96   ;;  %s2153_s19 = sshll.u32 %s2792_s16, 4  ;;  %s2154_s19 = int_to_ptr.vmem [resolvable:$true] %s2153_s19 }
  0x2d   :  { %169 = vperm.xlu0 %2278, %v164_v1   ;;  %v216_v6 = vld [vmem:[%s3528_s23 + $0x18] sm:$0xff]  ;;  %v215_v8 = vld [vmem:[%s3528_s23 + $0x10] sm:$0xff]  ;;  %v214_v11 = vld [vmem:[%s3528_s23 + $0x8] sm:$0xff]  ;;  %s2794_s17 = smov [#allocation14]   ;;  %s2795_s7 = smov [#allocation18]  }
  0x2e   :  { %239 = vmatpush.msra.mxu1 %v216_v6  ;;  %288 = vmatpush.msra.mxu3 %v2962_v13  ;;  %v213_v22 = vld [vmem:[%s3528_s23] sm:$0xff]  ;;  %s2129_s23 = sshll.u32 %s3516_s15, 4  ;;  %s2166_s3 = sshll.u32 %s2795_s7, 4  ;;  %s2130_s23 = int_to_ptr.hbm [resolvable:$true] %s2129_s23  ;;  %s2167_s3 = int_to_ptr.vmem [resolvable:$true] %s2166_s3 }
  0x2f   :  { %2204 = vmatmul.msk.f32.vlgmr.msra.gmra.mxu3 %vm220_vm1, %v270_v14  ;;  %480 = vmatpush.msra.mxu2 %v2962_v13  ;;  %s3529_s26 = sld [smem:[#allocation30_spill]] }
  0x30   :  { %240 = vmatpush.msra.mxu1 %v215_v8 }
  0x32   :  { %241 = vmatpush.msra.mxu1 %v214_v11 }
  0x33   :  { %341 = vrot.lane.b32.xlu2 %v2991_v24, %s2787_s18 }
  0x34   :  { %242 = vmatpush.msra.mxu1 %v213_v22  ;;  %v3026_v22 = vld [vmem:[#allocation7 + $0x38] sm:$0xff] }
  0x35   :  { %172 = vperm.xlu0 %2278, %v165_v2   ;;  %409 = vmatpush.msrb.mxu3 %v3026_v22  ;;  %s2168_s27 = sshll.u32 %s3529_s26, 4  ;;  %s2169_s27 = int_to_ptr.hbm [resolvable:$true] %s2168_s27 }
  0x36   :  { %664 = vmatpush.msrb.mxu1 %v2933_v4  ;;  %597 = vmatpush.msrb.mxu0 %v3026_v22 }
  0x37   :  { %785 = vmatpush.msrb.mxu2 %v3026_v22 }
  0x38   :  { %665 = vmatpush.msrb.mxu1 %v2935_v5 }
  0x3a   :  { %666 = vmatpush.msrb.mxu1 %v2941_v7 }
  0x3c   :  { %667 = vmatpush.msrb.mxu1 %v2962_v13 }
  0x85   :  { %v344_v6 = vpop.permute.xlu2 %343 }
  0x8d   :  { %v342_v14 = vpop.permute.xlu2 %341 }
  0x9f   :  { %v170_v17 = vpop.permute.xlu0 %169 }
  0xa0   :  { %vm174_vm3 = vcmp.eq.s32.totalorder %v167_v16, %v170_v17 }
  0xa1   :  { %v2198_v19 = vsel %vm174_vm3, 1.0, %v2786_v18 }
  0xa2   :  { %2200 = vmatmul.msk.f32.vlgmr.msra.gmra.mxu0 %vm181_vm2, %v2198_v19 }
  0xa7   :  { %v173_v20 = vpop.permute.xlu0 %172 }
  0xa8   :  { %vm175_vm4 = vcmp.eq.s32.totalorder %v167_v16, %v173_v20  ;;  %v388_v20 = vrot.slane %v2949_v9, 1  ;;  %v3037_v9 = vld [vmem:[#allocation7 + $0x20] sm:$0xff] }
  0xa9   :  { %v2199_v21 = vsel %vm175_vm4, 1.0, %v2786_v18 }
  0xaa   :  { %2201 = vmatmul.msk.f32.gmra.mxu0 %vm181_vm2, %v2199_v21  ;;  %v389_v21 = vsel %vm269_vm0, %v2954_v10, %v388_v20  ;;  %v3042_v10 = vld [vmem:[#allocation7 + $0x18] sm:$0xff] }
  0xb2   :  { %v290_v28 = vpop.f32.mrf.mxu3 }
  0xb3   :  { %v294_v30 = vrot.slane %v290_v28, 1 }
 0x11f   :  { %v205_v25 = vpop.f32.mrf.mxu0 }
 0x120   :  { %2202 = vmatmul.msk.f32.vlgmr.msra.gmra.mxu1 %vm220_vm1, %v205_v25  ;;  %v3028_v25 = vld [vmem:[#allocation7 + $0x30] sm:$0xff] }
 0x121   :  { %1042 = vmatpush.msra.mxu1 %v2933_v4  ;;  %410 = vmatpush.msrb.mxu3 %v3028_v25 }
 0x122   :  { %598 = vmatpush.msrb.mxu0 %v3028_v25  ;;  %786 = vmatpush.msrb.mxu2 %v3028_v25 }
 0x123   :  { %1043 = vmatpush.msra.mxu1 %v2935_v5 }
 0x125   :  { %1044 = vmatpush.msra.mxu1 %v2941_v7 }
 0x127   :  { %v208_v26 = vpop.f32.mrf.mxu0  ;;  %1045 = vmatpush.msra.mxu1 %v2962_v13 }
 0x128   :  { %2203 = vmatmul.msk.f32.gmra.mxu1 %vm220_vm1, %v208_v26  ;;  %v3032_v26 = vld [vmem:[#allocation7 + $0x28] sm:$0xff] }
 0x129   :  { %411 = vmatpush.msrb.mxu3 %v3032_v26  ;;  %599 = vmatpush.msrb.mxu0 %v3032_v26 }
 0x12a   :  { %787 = vmatpush.msrb.mxu2 %v3032_v26 }
 0x12b   :  { %412 = vmatpush.msrb.mxu3 %v3037_v9  ;;  %600 = vmatpush.msrb.mxu0 %v3037_v9 }
 0x12c   :  { %788 = vmatpush.msrb.mxu2 %v3037_v9 }
 0x12d   :  { %413 = vmatpush.msrb.mxu3 %v3042_v10  ;;  %601 = vmatpush.msrb.mxu0 %v3042_v10 }
 0x12e   :  { %789 = vmatpush.msrb.mxu2 %v3042_v10 }
 0x19d   :  { %v244_v27 = vpop.f32.mrf.mxu1 }
 0x19e   :  { %v3004_v34 = vadd.f32 %v2279_v29, %v244_v27  ;;  %v3047_v27 = vld [vmem:[#allocation7 + $0x10] sm:$0xff] }
 0x19f   :  { %414 = vmatpush.msrb.mxu3 %v3047_v27  ;;  %602 = vmatpush.msrb.mxu0 %v3047_v27 }
 0x1a0   :  { %v297_v35 = vadd.f32 %v290_v28, %v3004_v34  ;;  %v3052_v28 = vld [vmem:[#allocation7 + $0x8] sm:$0xff]  ;;  %790 = vmatpush.msrb.mxu2 %v3047_v27 }
 0x1a1   :  { %415 = vmatpush.msrb.mxu3 %v3052_v28  ;;  %603 = vmatpush.msrb.mxu0 %v3052_v28 }
 0x1a2   :  { %v2205_v39 = vmul.f32 -1.442695, %v297_v35  ;;  %791 = vmatpush.msrb.mxu2 %v3052_v28 }
 0x1a5   :  { %v247_v31 = vpop.f32.mrf.mxu1 }
 0x1a6   :  { %v3001_v32 = vadd.f32 %v2279_v29, %v247_v31 }
 0x1a8   :  { %v298_v33 = vadd.f32 %v294_v30, %v3001_v32 }
 0x1aa   :  { %2283 = vtanh.f32 %v298_v33  ;;  %v2206_v38 = vmul.f32 -1.442695, %v298_v33 }
 0x1ab   :  { %2285 = vtanh.f32 %v297_v35 }
 0x1ac   :  { %2287 = vpow2.f32 %v2206_v38 }
 0x1ad   :  { %2289 = vpow2.f32 %v2205_v39 }
 0x1b0   :  { %v2284_v36 = vpop.eup %2283 }
 0x1b1   :  { %353 = vrot.lane.b32.xlu1 %v2284_v36, %s2787_s18  ;;  %v2286_v37 = vpop.eup %2285 }
 0x1b2   :  { %v2288_v40 = vpop.eup %2287 }
 0x1b3   :  { %v306_v41 = vadd.f32 1.0, %v2288_v40  ;;  %v2290_v42 = vpop.eup %2289 }
 0x1b4   :  { %v305_v43 = vadd.f32 1.0, %v2290_v42 }
 0x1b5   :  { %2291 = vrcp.f32 %v306_v41  ;;  %v333_v52 = vand.u32 2147483648, %v306_v41  ;;  %vm327_vm6 = vweird.f32 %v306_v41  ;;  %v331_v53 = vand.u32 2147483647, %v306_v41 }
 0x1b6   :  { %2293 = vrcp.f32 %v305_v43  ;;  %v318_v61 = vand.u32 2147483648, %v305_v43  ;;  %vm312_vm10 = vweird.f32 %v305_v43  ;;  %v316_v62 = vand.u32 2147483647, %v305_v43 }
 0x1b7   :  { %v334_v56 = vor.u32 1.1754944e-38, %v333_v52  ;;  %vm332_vm8 = vcmp.eq.f32.partialorder %v331_v53, 8.507059e+37 }
 0x1b8   :  { %v319_v0 = vor.u32 1.1754944e-38, %v318_v61  ;;  %vm317_vm12 = vcmp.eq.f32.partialorder %v316_v62, 8.507059e+37 }
 0x1b9   :  { %351 = vrot.lane.b32.xlu1 %v2286_v37, %s2787_s18  ;;  %v3065_v37 = vld [vmem:[#allocation7] sm:$0xff] }
 0x1ba   :  { %416 = vmatpush.msrb.mxu3 %v3065_v37  ;;  %604 = vmatpush.msrb.mxu0 %v3065_v37 }
 0x1bb   :  { %v2292_v44 = vpop.eup %2291  ;;  %792 = vmatpush.msrb.mxu2 %v3065_v37 }
 0x1bc   :  { %v323_v45 = vmul.f32 %v2292_v44, %v306_v41  ;;  %v2294_v47 = vpop.eup %2293  ;;  %vm328_vm5 = vweird.f32 %v2292_v44  ;;  %853 = vmatpush.msra.mxu3 %v2933_v4  ;;  %974 = vmatpush.msra.mxu0 %v3026_v22  ;;  %v3101_v41 = vld [vmem:[#allocation8 + $0x1] ss:$0 sm:$0xff] }
 0x1bd   :  { %v308_v49 = vmul.f32 %v2294_v47, %v305_v43  ;;  %vm329_vm7 = vmor %vm327_vm6, %vm328_vm5  ;;  %vm313_vm9 = vweird.f32 %v2294_v47 }
 0x1be   :  { %v324_v46 = vsub.f32 1.0, %v323_v45  ;;  %vm314_vm11 = vmor %vm312_vm10, %vm313_vm9  ;;  %854 = vmatpush.msra.mxu3 %v2935_v5  ;;  %975 = vmatpush.msra.mxu0 %v3028_v25 }
 0x1bf   :  { %v309_v51 = vsub.f32 1.0, %v308_v49 }
 0x1c0   :  { %v325_v48 = vmul.f32 %v2292_v44, %v324_v46  ;;  %855 = vmatpush.msra.mxu3 %v2941_v7  ;;  %976 = vmatpush.msra.mxu0 %v3032_v26 }
 0x1c1   :  { %v310_v55 = vmul.f32 %v2294_v47, %v309_v51  ;;  %v441_v51 = vrot.slane %v2991_v24, 1 }
 0x1c2   :  { %v326_v50 = vadd.f32 %v2292_v44, %v325_v48  ;;  %856 = vmatpush.msra.mxu3 %v2962_v13  ;;  %977 = vmatpush.msra.mxu0 %v3037_v9 }
 0x1c3   :  { %v311_v59 = vadd.f32 %v2294_v47, %v310_v55  ;;  %v442_v52 = vsel %vm269_vm0, %v2984_v23, %v441_v51 }
 0x1c4   :  { %v330_v54 = vsel %vm329_vm7, %v2292_v44, %v326_v50  ;;  %978 = vmatpush.msra.mxu0 %v3042_v10 }
 0x1c5   :  { %v3009_v57 = vsel %vm332_vm8, %v334_v56, %v330_v54  ;;  %v315_v63 = vsel %vm314_vm11, %v2294_v47, %v311_v59 }
 0x1c6   :  { %v320_v1 = vsel %vm317_vm12, %v319_v0, %v315_v63  ;;  %v348_v8 = vmul.f32 %v344_v6, %v3009_v57  ;;  %979 = vmatpush.msra.mxu0 %v3047_v27 }
 0x1c7   :  { %v347_v15 = vmul.f32 %v342_v14, %v320_v1 }
 0x1c8   :  { %980 = vmatpush.msra.mxu0 %v3052_v28 }
 0x1ca   :  { %981 = vmatpush.msra.mxu0 %v3065_v37 }
 0x223   :  { %v354_v58 = vpop.permute.xlu1 %353 }
 0x224   :  { %v358_v60 = vmul.f32 %v354_v58, %v3009_v57 }
 0x226   :  { %363 = vrot.lane.b32.xlu0 %v358_v60, %s2787_s18 }
 0x22b   :  { %v352_v2 = vpop.permute.xlu1 %351 }
 0x22c   :  { %v357_v3 = vmul.f32 %v352_v2, %v320_v1 }
 0x22e   :  { %361 = vrot.lane.b32.xlu1 %v357_v3, %s2787_s18 }
 0x298   :  { %v364_v11 = vpop.permute.xlu0 %363 }
 0x299   :  { %v3015_v12 = vadd.f32 %v364_v11, %v348_v8 }
 0x29b   :  { %2295 = vtanh.f32 %v3015_v12 }
 0x2a0   :  { %v362_v16 = vpop.permute.xlu1 %361 }
 0x2a1   :  { %v2296_v17 = vpop.eup %2295  ;;  %v3018_v18 = vadd.f32 %v362_v16, %v347_v15 }
 0x2a2   :  { %375 = vrot.lane.b32.xlu2 %v2296_v17, %s2787_s18 }
 0x2a3   :  { %2297 = vtanh.f32 %v3018_v18 }
 0x2a9   :  { %v2298_v19 = vpop.eup %2297 }
 0x2aa   :  { %373 = vrot.lane.b32.xlu0 %v2298_v19, %s2787_s18  ;;  %390 = vrot.lane.b32.xlu2 %v389_v21, %s2787_s18 }
 0x2fc   :  { %v376_v29 = vpop.permute.xlu2 %375 }
 0x2fd   :  { %v380_v30 = vmul.f32 %v376_v29, %v3009_v57 }
 0x2ff   :  { %v383_v33 = vrot.slane %v380_v30, 7 }
 0x304   :  { %v391_v38 = vpop.permute.xlu2 %390 }
 0x31c   :  { %v374_v31 = vpop.permute.xlu0 %373 }
 0x31d   :  { %v379_v35 = vmul.f32 %v374_v31, %v320_v1 }
 0x31f   :  { %v384_v36 = vsel %vm269_vm0, %v383_v33, %v379_v35 }
 0x320   :  { %385 = vrot.lane.b32.xlu1 %v384_v36, %s2788_s13 }
 0x392   :  { %v386_v39 = vpop.permute.xlu1 %385 }
 0x393   :  { %v393_v40 = vsel %vm220_vm1, %v386_v39, %v391_v38  ;;  %2209 = vmatmul.msk.f32.vlgmr.msra.gmra.mxu2 %vm220_vm1, %v386_v39 }
 0x394   :  { %2207 = vmatmul.msk.f32.vlgmr.msrb.gmra.mxu3 %vm397_vm13, %v393_v40  ;;  %1352 = vmatpush.msra.mxu2 %v3026_v22 }
 0x395   :  { %1163 = vmatpush.msrb.mxu3 %v3026_v22 }
 0x396   :  { %1353 = vmatpush.msra.mxu2 %v3028_v25 }
 0x397   :  { %1164 = vmatpush.msrb.mxu3 %v3028_v25 }
 0x398   :  { %1354 = vmatpush.msra.mxu2 %v3032_v26 }
 0x399   :  { %1165 = vmatpush.msrb.mxu3 %v3032_v26 }
 0x39a   :  { %1355 = vmatpush.msra.mxu2 %v3037_v9 }
 0x39b   :  { %1166 = vmatpush.msrb.mxu3 %v3037_v9 }
 0x39c   :  { %1356 = vmatpush.msra.mxu2 %v3042_v10 }
 0x39d   :  { %1167 = vmatpush.msrb.mxu3 %v3042_v10 }
 0x39e   :  { %1357 = vmatpush.msra.mxu2 %v3047_v27 }
 0x39f   :  { %1168 = vmatpush.msrb.mxu3 %v3047_v27 }
 0x3a0   :  { %1358 = vmatpush.msra.mxu2 %v3052_v28 }
 0x3a1   :  { %1169 = vmatpush.msrb.mxu3 %v3052_v28 }
 0x3a2   :  { %1359 = vmatpush.msra.mxu2 %v3065_v37 }
 0x3a3   :  { %1170 = vmatpush.msrb.mxu3 %v3065_v37 }
 0x416   :  { %v482_v42 = vpop.f32.mrf.mxu2 }
 0x417   :  { %v486_v43 = vrot.slane %v482_v42, 7  ;;  %v490_v44 = vadd.f32 %v482_v42, %v3001_v32  ;;  %v418_v45 = vpop.f32.mrf.mxu3 }
 0x418   :  { %v419_v46 = vadd.f32 %v3101_v41, %v418_v45 }
 0x419   :  { %v489_v47 = vadd.f32 %v486_v43, %v3004_v34  ;;  %2299 = vtanh.f32 %v490_v44  ;;  %v2211_v57 = vmul.f32 -1.442695, %v490_v44 }
 0x41a   :  { %2301 = vtanh.f32 %v419_v46  ;;  %v2208_v53 = vmul.f32 -1.442695, %v419_v46 }
 0x41b   :  { %2303 = vtanh.f32 %v489_v47  ;;  %v2210_v58 = vmul.f32 -1.442695, %v489_v47 }
 0x41c   :  { %2305 = vpow2.f32 %v2208_v53 }
 0x41f   :  { %v2300_v48 = vpop.eup %2299 }
 0x420   :  { %v2302_v49 = vpop.eup %2301  ;;  %543 = vrot.lane.b32.xlu1 %v2300_v48, %s2787_s18 }
 0x421   :  { %448 = vrot.lane.b32.xlu2 %v2302_v49, %s2787_s18  ;;  %v2304_v50 = vpop.eup %2303 }
 0x422   :  { %541 = vrot.lane.b32.xlu0 %v2304_v50, %s2787_s18  ;;  %v2306_v54 = vpop.eup %2305 }
 0x423   :  { %v424_v55 = vadd.f32 1.0, %v2306_v54 }
 0x425   :  { %2307 = vrcp.f32 %v424_v55  ;;  %v436_v1 = vand.u32 2147483648, %v424_v55  ;;  %vm430_vm15 = vweird.f32 %v424_v55  ;;  %v434_v2 = vand.u32 2147483647, %v424_v55 }
 0x426   :  { %2309 = vpow2.f32 %v2211_v57 }
 0x427   :  { %2311 = vpow2.f32 %v2210_v58  ;;  %v437_v6 = vor.u32 1.1754944e-38, %v436_v1  ;;  %vm435_vm4 = vcmp.eq.f32.partialorder %v434_v2, 8.507059e+37 }
 0x42a   :  { %443 = vrot.lane.b32.xlu0 %v442_v52, %s2787_s18  ;;  %v534_v52 = vrot.slane %v3015_v12, 7  ;;  %v533_v12 = vrot.slane %v3018_v18, 7 }
 0x42b   :  { %v2308_v56 = vpop.eup %2307 }
 0x42c   :  { %v426_v59 = vmul.f32 %v2308_v56, %v424_v55  ;;  %v2310_v61 = vpop.eup %2309  ;;  %vm431_vm14 = vweird.f32 %v2308_v56 }
 0x42d   :  { %v2312_v24 = vpop.eup %2311  ;;  %v498_v63 = vadd.f32 1.0, %v2310_v61  ;;  %vm432_vm3 = vmor %vm430_vm15, %vm431_vm14  ;;  %vm574_vm14 = vcmask 1042434  }
 0x42e   :  { %v427_v60 = vsub.f32 1.0, %v426_v59  ;;  %v497_v23 = vadd.f32 1.0, %v2312_v24 }
 0x42f   :  { %2313 = vrcp.f32 %v498_v63  ;;  %v525_v33 = vand.u32 2147483648, %v498_v63  ;;  %vm519_vm6 = vweird.f32 %v498_v63  ;;  %v523_v35 = vand.u32 2147483647, %v498_v63 }
 0x430   :  { %v428_v62 = vmul.f32 %v2308_v56, %v427_v60  ;;  %2315 = vrcp.f32 %v497_v23  ;;  %v510_v39 = vand.u32 2147483648, %v497_v23  ;;  %vm504_vm9 = vweird.f32 %v497_v23 }
 0x431   :  { %v526_v40 = vor.u32 1.1754944e-38, %v525_v33  ;;  %v508_v42 = vand.u32 2147483647, %v497_v23  ;;  %vm524_vm10 = vcmp.eq.f32.partialorder %v523_v35, 8.507059e+37 }
 0x432   :  { %v429_v0 = vadd.f32 %v2308_v56, %v428_v62  ;;  %v511_v47 = vor.u32 1.1754944e-38, %v510_v39 }
 0x433   :  { %vm509_vm12 = vcmp.eq.f32.partialorder %v508_v42, 8.507059e+37 }
 0x434   :  { %v433_v3 = vsel %vm432_vm3, %v2308_v56, %v429_v0 }
 0x435   :  { %v438_v11 = vsel %vm435_vm4, %v437_v6, %v433_v3  ;;  %v2314_v14 = vpop.eup %2313 }
 0x436   :  { %v2316_v16 = vpop.eup %2315  ;;  %v515_v17 = vmul.f32 %v2314_v14, %v498_v63  ;;  %vm520_vm5 = vweird.f32 %v2314_v14 }
 0x437   :  { %v500_v19 = vmul.f32 %v2316_v16, %v497_v23  ;;  %vm521_vm7 = vmor %vm519_vm6, %vm520_vm5  ;;  %vm505_vm8 = vweird.f32 %v2316_v16 }
 0x438   :  { %v516_v20 = vsub.f32 1.0, %v515_v17  ;;  %vm506_vm11 = vmor %vm504_vm9, %vm505_vm8 }
 0x439   :  { %v501_v21 = vsub.f32 1.0, %v500_v19 }
 0x43a   :  { %v517_v29 = vmul.f32 %v2314_v14, %v516_v20 }
 0x43b   :  { %v502_v30 = vmul.f32 %v2316_v16, %v501_v21 }
 0x43c   :  { %v518_v31 = vadd.f32 %v2314_v14, %v517_v29 }
 0x43d   :  { %v503_v36 = vadd.f32 %v2316_v16, %v502_v30 }
 0x43e   :  { %v522_v38 = vsel %vm521_vm7, %v2314_v14, %v518_v31 }
 0x43f   :  { %v527_v44 = vsel %vm524_vm10, %v526_v40, %v522_v38  ;;  %v507_v45 = vsel %vm506_vm11, %v2316_v16, %v503_v36 }
 0x440   :  { %v512_v49 = vsel %vm509_vm12, %v511_v47, %v507_v45  ;;  %v538_v53 = vmul.f32 %v534_v52, %v527_v44 }
 0x441   :  { %v537_v61 = vmul.f32 %v533_v12, %v512_v49 }
 0x47b   :  { %v449_v8 = vpop.permute.xlu2 %448 }
 0x47c   :  { %v451_v15 = vmul.f32 %v449_v8, %v438_v11 }
 0x47e   :  { %453 = vrot.lane.b32.xlu0 %v451_v15, %s2787_s18 }
 0x492   :  { %v544_v43 = vpop.permute.xlu1 %543 }
 0x493   :  { %v548_v46 = vmul.f32 %v544_v43, %v527_v44 }
 0x494   :  { %v542_v48 = vpop.permute.xlu0 %541 }
 0x495   :  { %553 = vrot.lane.b32.xlu2 %v548_v46, %s2787_s18  ;;  %v547_v50 = vmul.f32 %v542_v48, %v512_v49 }
 0x497   :  { %551 = vrot.lane.b32.xlu1 %v547_v50, %s2787_s18 }
 0x49c   :  { %v444_v51 = vpop.permute.xlu0 %443 }
 0x49d   :  { %v446_v54 = vmul.f32 %v444_v51, %v438_v11 }
 0x4ef   :  { %v554_v55 = vpop.permute.xlu2 %553 }
 0x4f0   :  { %v3117_v56 = vadd.f32 %v554_v55, %v538_v53  ;;  %v454_v57 = vpop.permute.xlu0 %453 }
 0x4f1   :  { %v3119_v58 = vadd.f32 %v454_v57, %v446_v54 }
 0x4f2   :  { %2317 = vtanh.f32 %v3117_v56 }
 0x4f3   :  { %2319 = vtanh.f32 %v3119_v58 }
 0x4f8   :  { %v2318_v59 = vpop.eup %2317 }
 0x4f9   :  { %v2320_v60 = vpop.eup %2319  ;;  %565 = vrot.lane.b32.xlu2 %v2318_v59, %s2787_s18 }
 0x4fa   :  { %459 = vrot.lane.b32.xlu0 %v2320_v60, %s2787_s18 }
 0x509   :  { %v552_v62 = vpop.permute.xlu1 %551 }
 0x50a   :  { %v3126_v24 = vadd.f32 %v552_v62, %v537_v61 }
 0x50c   :  { %2321 = vtanh.f32 %v3126_v24 }
 0x512   :  { %v2322_v63 = vpop.eup %2321 }
 0x513   :  { %563 = vrot.lane.b32.xlu1 %v2322_v63, %s2787_s18 }
 0x553   :  { %v566_v2 = vpop.permute.xlu2 %565 }
 0x554   :  { %v570_v3 = vmul.f32 %v566_v2, %v527_v44 }
 0x556   :  { %v573_v6 = vrot.slane %v570_v3, 7 }
 0x56c   :  { %v460_v0 = vpop.permute.xlu0 %459 }
 0x56d   :  { %v3130_v23 = vmul.f32 %v460_v0, %v438_v11 }
 0x56f   :  { %v580_v1 = vrot.slane %v3130_v23, 7 }
 0x571   :  { %581 = vrot.lane.b32.xlu2 %v580_v1, %s2789_s1 }
 0x585   :  { %v564_v18 = vpop.permute.xlu1 %563 }
 0x586   :  { %v569_v8 = vmul.f32 %v564_v18, %v512_v49 }
 0x588   :  { %v646_v14 = vrot.slane %v569_v8, 1  ;;  %v575_v15 = vsel %vm574_vm14, %v573_v6, %v569_v8 }
 0x589   :  { %576 = vrot.lane.b32.xlu1 %v575_v15, %s2788_s13 }
 0x58a   :  { %v647_v16 = vsel %vm269_vm0, %v570_v3, %v646_v14 }
 0x58b   :  { %648 = vrot.lane.b32.xlu0 %v647_v16, %s2788_s13 }
 0x5cb   :  { %v582_v11 = vpop.permute.xlu2 %581 }
 0x5fb   :  { %v577_v17 = vpop.permute.xlu1 %576 }
 0x5fc   :  { %v584_v19 = vsel %vm220_vm1, %v577_v17, %v582_v11 }
 0x5fd   :  { %v586_v20 = vrot.slane %v584_v19, 1  ;;  %v649_v21 = vpop.permute.xlu0 %648 }
 0x5fe   :  { %2214 = vmatmul.msk.f32.vlgmr.msrb.gmra.mxu1 %vm220_vm1, %v649_v21 }
 0x5ff   :  { %2212 = vmatmul.msk.f32.vlgmr.msrb.gmra.mxu0 %vm397_vm13, %v586_v20  ;;  %1231 = vmatpush.msrb.mxu1 %v2933_v4 }
 0x600   :  { %1420 = vmatpush.msrb.mxu0 %v2933_v4 }
 0x601   :  { %1232 = vmatpush.msrb.mxu1 %v2935_v5 }
 0x602   :  { %1421 = vmatpush.msrb.mxu0 %v2935_v5 }
 0x603   :  { %1233 = vmatpush.msrb.mxu1 %v2941_v7 }
 0x604   :  { %1422 = vmatpush.msrb.mxu0 %v2941_v7 }
 0x605   :  { %1234 = vmatpush.msrb.mxu1 %v2962_v13 }
 0x606   :  { %1423 = vmatpush.msrb.mxu0 %v2962_v13 }
 0x67b   :  { %v669_v29 = vpop.f32.mrf.mxu1 }
 0x67c   :  { %v673_v30 = vrot.slane %v669_v29, 6  ;;  %v674_v31 = vrot.slane %v669_v29, 7  ;;  %v606_v33 = vpop.f32.mrf.mxu0 }
 0x67d   :  { %v607_v35 = vadd.f32 %v3101_v41, %v606_v33 }
 0x67e   :  { %v677_v36 = vadd.f32 %v673_v30, %v3004_v34  ;;  %v678_v38 = vadd.f32 %v674_v31, %v3001_v32 }
 0x67f   :  { %2323 = vtanh.f32 %v607_v35  ;;  %v2213_v46 = vmul.f32 -1.442695, %v607_v35 }
 0x680   :  { %2325 = vtanh.f32 %v677_v36  ;;  %v2216_v43 = vmul.f32 -1.442695, %v678_v38  ;;  %v2215_v48 = vmul.f32 -1.442695, %v677_v36 }
 0x681   :  { %2327 = vtanh.f32 %v678_v38 }
 0x682   :  { %2329 = vpow2.f32 %v2216_v43  ;;  %v722_v43 = vrot.slane %v3117_v56, 7 }
 0x685   :  { %v2324_v39 = vpop.eup %2323 }
 0x686   :  { %v2326_v40 = vpop.eup %2325  ;;  %631 = vrot.lane.b32.xlu0 %v2324_v39, %s2787_s18 }
 0x687   :  { %v2328_v42 = vpop.eup %2327  ;;  %729 = vrot.lane.b32.xlu1 %v2326_v40, %s2787_s18 }
 0x688   :  { %731 = vrot.lane.b32.xlu2 %v2328_v42, %s2787_s18  ;;  %v2330_v44 = vpop.eup %2329 }
 0x689   :  { %v686_v45 = vadd.f32 1.0, %v2330_v44 }
 0x68b   :  { %2331 = vrcp.f32 %v686_v45  ;;  %v713_v59 = vand.u32 2147483648, %v686_v45  ;;  %vm707_vm3 = vweird.f32 %v686_v45  ;;  %v711_v60 = vand.u32 2147483647, %v686_v45 }
 0x68c   :  { %2333 = vpow2.f32 %v2213_v46 }
 0x68d   :  { %2335 = vpow2.f32 %v2215_v48  ;;  %v714_v61 = vor.u32 1.1754944e-38, %v713_v59  ;;  %vm712_vm5 = vcmp.eq.f32.partialorder %v711_v60, 8.507059e+37  ;;  %v721_v48 = vrot.slane %v3126_v24, 7 }
 0x691   :  { %v2332_v47 = vpop.eup %2331 }
 0x692   :  { %v703_v49 = vmul.f32 %v2332_v47, %v686_v45  ;;  %v2334_v51 = vpop.eup %2333  ;;  %vm708_vm15 = vweird.f32 %v2332_v47 }
 0x693   :  { %v2336_v52 = vpop.eup %2335  ;;  %v612_v54 = vadd.f32 1.0, %v2334_v51  ;;  %vm709_vm4 = vmor %vm707_vm3, %vm708_vm15  ;;  %vm762_vm15 = vcmask 1043459  }
 0x694   :  { %v704_v50 = vsub.f32 1.0, %v703_v49  ;;  %v685_v55 = vadd.f32 1.0, %v2336_v52 }
 0x695   :  { %2337 = vrcp.f32 %v612_v54  ;;  %v624_v11 = vand.u32 2147483648, %v612_v54  ;;  %vm618_vm8 = vweird.f32 %v612_v54  ;;  %v622_v19 = vand.u32 2147483647, %v612_v54 }
 0x696   :  { %v705_v53 = vmul.f32 %v2332_v47, %v704_v50  ;;  %2339 = vrcp.f32 %v685_v55  ;;  %v698_v20 = vand.u32 2147483648, %v685_v55  ;;  %vm692_vm10 = vweird.f32 %v685_v55 }
 0x697   :  { %v696_v21 = vand.u32 2147483647, %v685_v55  ;;  %v625_v30 = vor.u32 1.1754944e-38, %v624_v11  ;;  %vm623_vm12 = vcmp.eq.f32.partialorder %v622_v19, 8.507059e+37 }
 0x698   :  { %v706_v57 = vadd.f32 %v2332_v47, %v705_v53  ;;  %v699_v33 = vor.u32 1.1754944e-38, %v698_v20 }
 0x699   :  { %vm697_vm14 = vcmp.eq.f32.partialorder %v696_v21, 8.507059e+37 }
 0x69a   :  { %v710_v12 = vsel %vm709_vm4, %v2332_v47, %v706_v57 }
 0x69b   :  { %v2338_v62 = vpop.eup %2337  ;;  %v715_v0 = vsel %vm712_vm5, %v714_v61, %v710_v12 }
 0x69c   :  { %v2340_v1 = vpop.eup %2339  ;;  %v614_v3 = vmul.f32 %v2338_v62, %v612_v54  ;;  %vm619_vm6 = vweird.f32 %v2338_v62  ;;  %v726_v44 = vmul.f32 %v722_v43, %v715_v0 }
 0x69d   :  { %v688_v18 = vmul.f32 %v2340_v1, %v685_v55  ;;  %vm693_vm7 = vweird.f32 %v2340_v1  ;;  %vm620_vm9 = vmor %vm618_vm8, %vm619_vm6 }
 0x69e   :  { %v615_v6 = vsub.f32 1.0, %v614_v3  ;;  %vm694_vm11 = vmor %vm692_vm10, %vm693_vm7 }
 0x69f   :  { %v689_v8 = vsub.f32 1.0, %v688_v18 }
 0x6a0   :  { %v616_v14 = vmul.f32 %v2338_v62, %v615_v6 }
 0x6a1   :  { %v690_v15 = vmul.f32 %v2340_v1, %v689_v8 }
 0x6a2   :  { %v617_v16 = vadd.f32 %v2338_v62, %v616_v14 }
 0x6a3   :  { %v691_v17 = vadd.f32 %v2340_v1, %v690_v15 }
 0x6a4   :  { %v621_v29 = vsel %vm620_vm9, %v2338_v62, %v617_v16 }
 0x6a5   :  { %v695_v31 = vsel %vm694_vm11, %v2340_v1, %v691_v17  ;;  %v626_v35 = vsel %vm623_vm12, %v625_v30, %v621_v29 }
 0x6a6   :  { %v700_v40 = vsel %vm697_vm14, %v699_v33, %v695_v31  ;;  %v629_v49 = vmul.f32 %v626_v35, %v3119_v58 }
 0x6a7   :  { %v725_v51 = vmul.f32 %v721_v48, %v700_v40 }
 0x6e2   :  { %v732_v63 = vpop.permute.xlu2 %731 }
 0x6e3   :  { %v736_v2 = vmul.f32 %v732_v63, %v715_v0 }
 0x6e5   :  { %741 = vrot.lane.b32.xlu2 %v736_v2, %s2787_s18 }
 0x6f8   :  { %v632_v36 = vpop.permute.xlu0 %631 }
 0x6f9   :  { %v634_v38 = vmul.f32 %v632_v36, %v626_v35  ;;  %v730_v39 = vpop.permute.xlu1 %729 }
 0x6fa   :  { %v735_v42 = vmul.f32 %v730_v39, %v700_v40 }
 0x6fb   :  { %636 = vrot.lane.b32.xlu0 %v634_v38, %s2787_s18 }
 0x6fc   :  { %739 = vrot.lane.b32.xlu1 %v735_v42, %s2787_s18 }
 0x73f   :  { %v742_v45 = vpop.permute.xlu2 %741 }
 0x740   :  { %v3158_v46 = vadd.f32 %v742_v45, %v726_v44 }
 0x742   :  { %2341 = vtanh.f32 %v3158_v46 }
 0x748   :  { %v2342_v47 = vpop.eup %2341 }
 0x749   :  { %753 = vrot.lane.b32.xlu2 %v2342_v47, %s2787_s18 }
 0x76d   :  { %v637_v50 = vpop.permute.xlu0 %636 }
 0x76e   :  { %v3164_v52 = vadd.f32 %v637_v50, %v629_v49  ;;  %v740_v53 = vpop.permute.xlu1 %739 }
 0x76f   :  { %v3166_v54 = vadd.f32 %v740_v53, %v725_v51 }
 0x770   :  { %2343 = vtanh.f32 %v3164_v52 }
 0x771   :  { %2345 = vtanh.f32 %v3166_v54 }
 0x776   :  { %v2344_v56 = vpop.eup %2343 }
 0x777   :  { %v2346_v55 = vpop.eup %2345  ;;  %642 = vrot.lane.b32.xlu0 %v2344_v56, %s2787_s18 }
 0x778   :  { %751 = vrot.lane.b32.xlu1 %v2346_v55, %s2787_s18 }
 0x7a3   :  { %v754_v24 = vpop.permute.xlu2 %753 }
 0x7a4   :  { %v758_v57 = vmul.f32 %v754_v24, %v715_v0 }
 0x7a6   :  { %v761_v12 = vrot.slane %v758_v57, 7  ;;  %v835_v63 = vrot.slane %v758_v57, 1 }
 0x7e9   :  { %v643_v58 = vpop.permute.xlu0 %642 }
 0x7ea   :  { %v3172_v59 = vmul.f32 %v643_v58, %v626_v35  ;;  %v752_v60 = vpop.permute.xlu1 %751 }
 0x7eb   :  { %v757_v61 = vmul.f32 %v752_v60, %v700_v40 }
 0x7ec   :  { %v768_v62 = vrot.slane %v3172_v59, 6 }
 0x7ed   :  { %v834_v1 = vrot.slane %v757_v61, 2  ;;  %v763_v2 = vsel %vm762_vm15, %v761_v12, %v757_v61 }
 0x7ee   :  { %764 = vrot.lane.b32.xlu1 %v763_v2, %s2788_s13  ;;  %769 = vrot.lane.b32.xlu2 %v768_v62, %s2789_s1 }
 0x7ef   :  { %v836_v3 = vsel %vm269_vm0, %v835_v63, %v834_v1 }
 0x7f0   :  { %837 = vrot.lane.b32.xlu0 %v836_v3, %s2788_s13 }
 0x848   :  { %v770_v0 = vpop.permute.xlu2 %769 }
 0x860   :  { %v765_v18 = vpop.permute.xlu1 %764 }
 0x861   :  { %v772_v6 = vsel %vm220_vm1, %v765_v18, %v770_v0 }
 0x862   :  { %v774_v8 = vrot.slane %v772_v6, 2  ;;  %v838_v14 = vpop.permute.xlu0 %837 }
 0x863   :  { %2219 = vmatmul.msk.f32.vlgmr.msra.gmra.mxu3 %vm220_vm1, %v838_v14 }
 0x864   :  { %2217 = vmatmul.msk.f32.vlgmr.msrb.gmra.mxu2 %vm397_vm13, %v774_v8  ;;  %1609 = vmatpush.msra.mxu3 %v2933_v4 }
 0x866   :  { %1610 = vmatpush.msra.mxu3 %v2935_v5 }
 0x868   :  { %1611 = vmatpush.msra.mxu3 %v2941_v7 }
 0x86a   :  { %1612 = vmatpush.msra.mxu3 %v2962_v13 }
 0x8e6   :  { %v858_v15 = vpop.f32.mrf.mxu3 }
 0x8e7   :  { %v862_v16 = vrot.slane %v858_v15, 5  ;;  %v863_v11 = vrot.slane %v858_v15, 6  ;;  %v794_v17 = vpop.f32.mrf.mxu2 }
 0x8e8   :  { %v795_v19 = vadd.f32 %v3101_v41, %v794_v17 }
 0x8e9   :  { %v866_v20 = vadd.f32 %v862_v16, %v3004_v34  ;;  %v867_v21 = vadd.f32 %v863_v11, %v3001_v32 }
 0x8ea   :  { %2347 = vtanh.f32 %v795_v19  ;;  %v2218_v31 = vmul.f32 -1.442695, %v795_v19 }
 0x8eb   :  { %2349 = vtanh.f32 %v866_v20  ;;  %v2221_v7 = vmul.f32 -1.442695, %v867_v21  ;;  %v2220_v35 = vmul.f32 -1.442695, %v866_v20 }
 0x8ec   :  { %2351 = vtanh.f32 %v867_v21 }
 0x8ed   :  { %2353 = vpow2.f32 %v2221_v7 }
 0x8f0   :  { %v2348_v4 = vpop.eup %2347 }
 0x8f1   :  { %v2350_v29 = vpop.eup %2349  ;;  %819 = vrot.lane.b32.xlu0 %v2348_v4, %s2787_s18  ;;  %v911_v4 = vrot.slane %v3158_v46, 7 }
 0x8f2   :  { %v2352_v5 = vpop.eup %2351  ;;  %918 = vrot.lane.b32.xlu1 %v2350_v29, %s2787_s18 }
 0x8f3   :  { %920 = vrot.lane.b32.xlu2 %v2352_v5, %s2787_s18  ;;  %v2354_v13 = vpop.eup %2353 }
 0x8f4   :  { %v875_v30 = vadd.f32 1.0, %v2354_v13 }
 0x8f6   :  { %2355 = vrcp.f32 %v875_v30  ;;  %v902_v47 = vand.u32 2147483648, %v875_v30  ;;  %vm896_vm4 = vweird.f32 %v875_v30  ;;  %v900_v48 = vand.u32 2147483647, %v875_v30 }
 0x8f7   :  { %2357 = vpow2.f32 %v2218_v31 }
 0x8f8   :  { %2359 = vpow2.f32 %v2220_v35  ;;  %v903_v50 = vor.u32 1.1754944e-38, %v902_v47  ;;  %vm901_vm6 = vcmp.eq.f32.partialorder %v900_v48, 8.507059e+37 }
 0x8fc   :  { %v2356_v33 = vpop.eup %2355 }
 0x8fd   :  { %v892_v36 = vmul.f32 %v2356_v33, %v875_v30  ;;  %v2358_v39 = vpop.eup %2357  ;;  %vm897_vm3 = vweird.f32 %v2356_v33  ;;  %v910_v30 = vrot.slane %v3166_v54, 7 }
 0x8fe   :  { %v2360_v40 = vpop.eup %2359  ;;  %v800_v43 = vadd.f32 1.0, %v2358_v39  ;;  %vm898_vm5 = vmor %vm896_vm4, %vm897_vm3  ;;  %vm1722_vm3 = vcmask 1040384   ;;  %vm951_vm4 = vcmask 1044484  }
 0x8ff   :  { %v893_v38 = vsub.f32 1.0, %v892_v36  ;;  %v874_v44 = vadd.f32 1.0, %v2360_v40 }
 0x900   :  { %2361 = vrcp.f32 %v800_v43  ;;  %v812_v1 = vand.u32 2147483648, %v800_v43  ;;  %vm806_vm9 = vweird.f32 %v800_v43  ;;  %v810_v3 = vand.u32 2147483647, %v800_v43 }
 0x901   :  { %v894_v42 = vmul.f32 %v2356_v33, %v893_v38  ;;  %2363 = vrcp.f32 %v874_v44  ;;  %v887_v0 = vand.u32 2147483648, %v874_v44  ;;  %vm881_vm11 = vweird.f32 %v874_v44 }
 0x902   :  { %v885_v18 = vand.u32 2147483647, %v874_v44  ;;  %v813_v8 = vor.u32 1.1754944e-38, %v812_v1  ;;  %vm811_vm14 = vcmp.eq.f32.partialorder %v810_v3, 8.507059e+37 }
 0x903   :  { %v895_v45 = vadd.f32 %v2356_v33, %v894_v42  ;;  %v888_v15 = vor.u32 1.1754944e-38, %v887_v0 }
 0x904   :  { %vm886_vm15 = vcmp.eq.f32.partialorder %v885_v18, 8.507059e+37 }
 0x905   :  { %v899_v49 = vsel %vm898_vm5, %v2356_v33, %v895_v45  ;;  %vm1815_vm5 = vcmask 1041408  }
 0x906   :  { %v2362_v51 = vpop.eup %2361  ;;  %v904_v56 = vsel %vm901_vm6, %v903_v50, %v899_v49 }
 0x907   :  { %v2364_v55 = vpop.eup %2363  ;;  %v802_v57 = vmul.f32 %v2362_v51, %v800_v43  ;;  %vm807_vm7 = vweird.f32 %v2362_v51  ;;  %v915_v29 = vmul.f32 %v911_v4, %v904_v56 }
 0x908   :  { %v877_v58 = vmul.f32 %v2364_v55, %v874_v44  ;;  %vm882_vm8 = vweird.f32 %v2364_v55  ;;  %vm808_vm10 = vmor %vm806_vm9, %vm807_vm7  ;;  %v1800_v44 = vrot.slane %v3130_v23, 1 }
 0x909   :  { %v803_v60 = vsub.f32 1.0, %v802_v57  ;;  %vm883_vm12 = vmor %vm881_vm11, %vm882_vm8 }
 0x90a   :  { %v878_v12 = vsub.f32 1.0, %v877_v58  ;;  %v1827_v50 = vsel %vm1722_vm3, %v1800_v44, %v3172_v59 }
 0x90b   :  { %v804_v61 = vmul.f32 %v2362_v51, %v803_v60 }
 0x90c   :  { %v879_v62 = vmul.f32 %v2364_v55, %v878_v12 }
 0x90d   :  { %v805_v63 = vadd.f32 %v2362_v51, %v804_v61 }
 0x90e   :  { %v880_v2 = vadd.f32 %v2364_v55, %v879_v62 }
 0x90f   :  { %v809_v6 = vsel %vm808_vm10, %v2362_v51, %v805_v63 }
 0x910   :  { %v884_v14 = vsel %vm883_vm12, %v2364_v55, %v880_v2  ;;  %v814_v16 = vsel %vm811_vm14, %v813_v8, %v809_v6 }
 0x911   :  { %v889_v20 = vsel %vm886_vm15, %v888_v15, %v884_v14  ;;  %v817_v31 = vmul.f32 %v814_v16, %v3164_v52  ;;  %v1785_v52 = vrot.slane %v3172_v59, 7 }
 0x912   :  { %v914_v35 = vmul.f32 %v910_v30, %v889_v20 }
 0x94d   :  { %v921_v53 = vpop.permute.xlu2 %920 }
 0x94e   :  { %v925_v24 = vmul.f32 %v921_v53, %v904_v56 }
 0x950   :  { %930 = vrot.lane.b32.xlu2 %v925_v24, %s2787_s18 }
 0x963   :  { %v820_v11 = vpop.permute.xlu0 %819 }
 0x964   :  { %v822_v17 = vmul.f32 %v820_v11, %v814_v16  ;;  %v919_v19 = vpop.permute.xlu1 %918 }
 0x965   :  { %v924_v21 = vmul.f32 %v919_v19, %v889_v20 }
 0x966   :  { %824 = vrot.lane.b32.xlu0 %v822_v17, %s2787_s18 }
 0x967   :  { %928 = vrot.lane.b32.xlu1 %v924_v21, %s2787_s18 }
 0x9aa   :  { %v931_v5 = vpop.permute.xlu2 %930 }
 0x9ab   :  { %v3196_v7 = vadd.f32 %v931_v5, %v915_v29 }
 0x9ad   :  { %2365 = vtanh.f32 %v3196_v7 }
 0x9b3   :  { %v2366_v13 = vpop.eup %2365 }
 0x9b4   :  { %942 = vrot.lane.b32.xlu2 %v2366_v13, %s2787_s18 }
 0x9d8   :  { %v825_v33 = vpop.permute.xlu0 %824 }
 0x9d9   :  { %v3202_v36 = vadd.f32 %v825_v33, %v817_v31  ;;  %v929_v38 = vpop.permute.xlu1 %928 }
 0x9da   :  { %v3204_v39 = vadd.f32 %v929_v38, %v914_v35 }
 0x9db   :  { %2367 = vtanh.f32 %v3202_v36 }
 0x9dc   :  { %2369 = vtanh.f32 %v3204_v39 }
 0x9e1   :  { %v2368_v46 = vpop.eup %2367 }
 0x9e2   :  { %v2370_v40 = vpop.eup %2369  ;;  %830 = vrot.lane.b32.xlu0 %v2368_v46, %s2787_s18 }
 0x9e3   :  { %940 = vrot.lane.b32.xlu1 %v2370_v40, %s2787_s18 }
 0xa0e   :  { %v943_v54 = vpop.permute.xlu2 %942 }
 0xa0f   :  { %v947_v42 = vmul.f32 %v943_v54, %v904_v56  ;;  %v1814_v56 = vsel %vm1722_vm3, %v3130_v23, %v1785_v52 }
 0xa11   :  { %v950_v48 = vrot.slane %v947_v42, 7  ;;  %v1024_v24 = vrot.slane %v947_v42, 2 }
 0xa54   :  { %v831_v43 = vpop.permute.xlu0 %830 }
 0xa55   :  { %v833_v45 = vmul.f32 %v831_v43, %v814_v16  ;;  %v941_v47 = vpop.permute.xlu1 %940 }
 0xa56   :  { %v946_v49 = vmul.f32 %v941_v47, %v889_v20 }
 0xa57   :  { %v1787_v51 = vrot.slane %v833_v45, 6  ;;  %v1802_v53 = vrot.slane %v833_v45, 7  ;;  %v957_v55 = vrot.slane %v833_v45, 5 }
 0xa58   :  { %v1023_v57 = vrot.slane %v946_v49, 3  ;;  %v952_v58 = vsel %vm951_vm4, %v950_v48, %v946_v49 }
 0xa59   :  { %v3217_v60 = vsel %vm1815_vm5, %v1814_v56, %v1787_v51  ;;  %v3220_v12 = vsel %vm1815_vm5, %v1827_v50, %v1802_v53  ;;  %953 = vrot.lane.b32.xlu1 %v952_v58, %s2788_s13  ;;  %958 = vrot.lane.b32.xlu2 %v957_v55, %s2789_s1 }
 0xa5a   :  { %v1025_v59 = vsel %vm269_vm0, %v1024_v24, %v1023_v57 }
 0xa5b   :  { %1026 = vrot.lane.b32.xlu0 %v1025_v59, %s2788_s13 }
 0xab3   :  { %v959_v61 = vpop.permute.xlu2 %958 }
 0xacb   :  { %v954_v62 = vpop.permute.xlu1 %953 }
 0xacc   :  { %v961_v23 = vsel %vm220_vm1, %v954_v62, %v959_v61 }
 0xacd   :  { %v963_v63 = vrot.slane %v961_v23, 3  ;;  %v1027_v1 = vpop.permute.xlu0 %1026 }
 0xace   :  { %2224 = vmatmul.msk.f32.vlgmr.msra.gmra.mxu1 %vm220_vm1, %v1027_v1 }
 0xacf   :  { %2222 = vmatmul.msk.f32.vlgmr.msra.gmra.mxu0 %vm397_vm13, %v963_v63  ;;  %1541 = vmatpush.msra.mxu1 %v3026_v22 }
 0xad0   :  { %1736 = vmatpush.msra.mxu0 %v3026_v22 }
 0xad1   :  { %1542 = vmatpush.msra.mxu1 %v3028_v25 }
 0xad2   :  { %1737 = vmatpush.msra.mxu0 %v3028_v25 }
 0xad3   :  { %1543 = vmatpush.msra.mxu1 %v3032_v26 }
 0xad4   :  { %1738 = vmatpush.msra.mxu0 %v3032_v26 }
 0xad5   :  { %1544 = vmatpush.msra.mxu1 %v3037_v9 }
 0xad6   :  { %1739 = vmatpush.msra.mxu0 %v3037_v9 }
 0xad7   :  { %1545 = vmatpush.msra.mxu1 %v3042_v10 }
 0xad8   :  { %1740 = vmatpush.msra.mxu0 %v3042_v10 }
 0xad9   :  { %1546 = vmatpush.msra.mxu1 %v3047_v27 }
 0xada   :  { %1741 = vmatpush.msra.mxu0 %v3047_v27 }
 0xadb   :  { %1547 = vmatpush.msra.mxu1 %v3052_v28 }
 0xadc   :  { %1742 = vmatpush.msra.mxu0 %v3052_v28 }
 0xadd   :  { %1548 = vmatpush.msra.mxu1 %v3065_v37 }
 0xade   :  { %1743 = vmatpush.msra.mxu0 %v3065_v37 }
 0xb4b   :  { %v1047_v22 = vpop.f32.mrf.mxu1 }
 0xb4c   :  { %v1051_v25 = vrot.slane %v1047_v22, 4  ;;  %v1052_v26 = vrot.slane %v1047_v22, 5  ;;  %v983_v9 = vpop.f32.mrf.mxu0 }
 0xb4d   :  { %v984_v2 = vadd.f32 %v3101_v41, %v983_v9  ;;  %v1100_v9 = vrot.slane %v3196_v7, 7 }
 0xb4e   :  { %v1055_v10 = vadd.f32 %v1051_v25, %v3004_v34  ;;  %v1056_v3 = vadd.f32 %v1052_v26, %v3001_v32  ;;  %v1099_v26 = vrot.slane %v3204_v39, 7 }
 0xb4f   :  { %2371 = vtanh.f32 %v984_v2  ;;  %v2223_v37 = vmul.f32 -1.442695, %v984_v2 }
 0xb50   :  { %2373 = vtanh.f32 %v1055_v10  ;;  %v2225_v8 = vmul.f32 -1.442695, %v1055_v10  ;;  %v2226_v14 = vmul.f32 -1.442695, %v1056_v3 }
 0xb51   :  { %2375 = vtanh.f32 %v1056_v3 }
 0xb52   :  { %2377 = vpow2.f32 %v2223_v37 }
 0xb55   :  { %v2372_v27 = vpop.eup %2371 }
 0xb56   :  { %v2374_v0 = vpop.eup %2373  ;;  %1008 = vrot.lane.b32.xlu2 %v2372_v27, %s2787_s18 }
 0xb57   :  { %v2376_v28 = vpop.eup %2375  ;;  %1107 = vrot.lane.b32.xlu0 %v2374_v0, %s2787_s18 }
 0xb58   :  { %1109 = vrot.lane.b32.xlu1 %v2376_v28, %s2787_s18  ;;  %v2378_v18 = vpop.eup %2377 }
 0xb59   :  { %v989_v41 = vadd.f32 1.0, %v2378_v18 }
 0xb5b   :  { %2379 = vrcp.f32 %v989_v41  ;;  %v1001_v29 = vand.u32 2147483648, %v989_v41  ;;  %vm995_vm7 = vweird.f32 %v989_v41  ;;  %v999_v5 = vand.u32 2147483647, %v989_v41 }
 0xb5c   :  { %2381 = vpow2.f32 %v2225_v8 }
 0xb5d   :  { %2383 = vpow2.f32 %v2226_v14  ;;  %v1002_v30 = vor.u32 1.1754944e-38, %v1001_v29  ;;  %vm1000_vm9 = vcmp.eq.f32.partialorder %v999_v5, 8.507059e+37 }
 0xb61   :  { %v2380_v6 = vpop.eup %2379 }
 0xb62   :  { %v991_v15 = vmul.f32 %v2380_v6, %v989_v41  ;;  %v2382_v17 = vpop.eup %2381  ;;  %vm996_vm6 = vweird.f32 %v2380_v6 }
 0xb63   :  { %v2384_v19 = vpop.eup %2383  ;;  %v1063_v20 = vadd.f32 1.0, %v2382_v17  ;;  %vm997_vm8 = vmor %vm995_vm7, %vm996_vm6 }
 0xb64   :  { %v992_v16 = vsub.f32 1.0, %v991_v15  ;;  %v1064_v4 = vadd.f32 1.0, %v2384_v19 }
 0xb65   :  { %2385 = vrcp.f32 %v1063_v20  ;;  %v1076_v48 = vand.u32 2147483648, %v1063_v20  ;;  %vm1070_vm12 = vweird.f32 %v1063_v20  ;;  %v1074_v50 = vand.u32 2147483647, %v1063_v20 }
 0xb66   :  { %v993_v11 = vmul.f32 %v2380_v6, %v992_v16  ;;  %2387 = vrcp.f32 %v1064_v4  ;;  %v1091_v49 = vand.u32 2147483648, %v1064_v4  ;;  %vm1085_vm14 = vweird.f32 %v1064_v4 }
 0xb67   :  { %v1089_v51 = vand.u32 2147483647, %v1064_v4  ;;  %v1077_v56 = vor.u32 1.1754944e-38, %v1076_v48  ;;  %vm1075_vm6 = vcmp.eq.f32.partialorder %v1074_v50, 8.507059e+37 }
 0xb68   :  { %v994_v21 = vadd.f32 %v2380_v6, %v993_v11  ;;  %v1092_v24 = vor.u32 1.1754944e-38, %v1091_v49 }
 0xb69   :  { %vm1090_vm7 = vcmp.eq.f32.partialorder %v1089_v51, 8.507059e+37 }
 0xb6a   :  { %v998_v13 = vsel %vm997_vm8, %v2380_v6, %v994_v21  ;;  %vm1817_vm8 = vcmask 1042432  }
 0xb6b   :  { %v1003_v33 = vsel %vm1000_vm9, %v1002_v30, %v998_v13  ;;  %v2386_v38 = vpop.eup %2385  ;;  %vm1140_vm9 = vcmask 1045509  }
 0xb6c   :  { %v2388_v46 = vpop.eup %2387  ;;  %v1066_v40 = vmul.f32 %v2386_v38, %v1063_v20  ;;  %vm1071_vm10 = vweird.f32 %v2386_v38  ;;  %v1006_v63 = vmul.f32 %v1003_v33, %v3202_v36 }
 0xb6d   :  { %v1081_v54 = vmul.f32 %v2388_v46, %v1064_v4  ;;  %vm1086_vm11 = vweird.f32 %v2388_v46  ;;  %vm1072_vm15 = vmor %vm1070_vm12, %vm1071_vm10 }
 0xb6e   :  { %v1067_v42 = vsub.f32 1.0, %v1066_v40  ;;  %vm1087_vm4 = vmor %vm1085_vm14, %vm1086_vm11 }
 0xb6f   :  { %v1082_v52 = vsub.f32 1.0, %v1081_v54  ;;  %v3286_v54 = vld [vmem:[#allocation8 + $0x1] ss:$0 sm:$0xff] }
 0xb70   :  { %v1068_v43 = vmul.f32 %v2386_v38, %v1067_v42 }
 0xb71   :  { %v1083_v44 = vmul.f32 %v2388_v46, %v1082_v52 }
 0xb72   :  { %v1069_v45 = vadd.f32 %v2386_v38, %v1068_v43 }
 0xb73   :  { %v1084_v47 = vadd.f32 %v2388_v46, %v1083_v44 }
 0xb74   :  { %v1073_v53 = vsel %vm1072_vm15, %v2386_v38, %v1069_v45 }
 0xb75   :  { %v1088_v55 = vsel %vm1087_vm4, %v2388_v46, %v1084_v47  ;;  %v1078_v58 = vsel %vm1075_vm6, %v1077_v56, %v1073_v53 }
 0xb76   :  { %v1093_v61 = vsel %vm1090_vm7, %v1092_v24, %v1088_v55  ;;  %v1103_v2 = vmul.f32 %v1099_v26, %v1078_v58 }
 0xb77   :  { %v1104_v10 = vmul.f32 %v1100_v9, %v1093_v61 }
 0xbb0   :  { %v1009_v31 = vpop.permute.xlu2 %1008 }
 0xbb1   :  { %v1011_v35 = vmul.f32 %v1009_v31, %v1003_v33 }
 0xbb3   :  { %1013 = vrot.lane.b32.xlu2 %v1011_v35, %s2787_s18 }
 0xbc9   :  { %v1108_v57 = vpop.permute.xlu0 %1107 }
 0xbca   :  { %v1110_v59 = vpop.permute.xlu1 %1109  ;;  %v1113_v62 = vmul.f32 %v1108_v57, %v1078_v58 }
 0xbcb   :  { %v1114_v23 = vmul.f32 %v1110_v59, %v1093_v61 }
 0xbcc   :  { %1117 = vrot.lane.b32.xlu0 %v1113_v62, %s2787_s18 }
 0xbcd   :  { %1119 = vrot.lane.b32.xlu1 %v1114_v23, %s2787_s18 }
 0xc0d   :  { %v1014_v1 = vpop.permute.xlu2 %1013 }
 0xc0e   :  { %v3255_v22 = vadd.f32 %v1014_v1, %v1006_v63 }
 0xc10   :  { %2389 = vtanh.f32 %v3255_v22 }
 0xc16   :  { %v2390_v25 = vpop.eup %2389 }
 0xc17   :  { %1019 = vrot.lane.b32.xlu2 %v2390_v25, %s2787_s18 }
 0xc3e   :  { %v1118_v3 = vpop.permute.xlu0 %1117 }
 0xc3f   :  { %v1120_v27 = vpop.permute.xlu1 %1119  ;;  %v3261_v0 = vadd.f32 %v1118_v3, %v1103_v2 }
 0xc40   :  { %v3263_v28 = vadd.f32 %v1120_v27, %v1104_v10 }
 0xc41   :  { %2391 = vtanh.f32 %v3261_v0 }
 0xc42   :  { %2393 = vtanh.f32 %v3263_v28 }
 0xc47   :  { %v2392_v36 = vpop.eup %2391 }
 0xc48   :  { %v2394_v37 = vpop.eup %2393  ;;  %1129 = vrot.lane.b32.xlu0 %v2392_v36, %s2787_s18 }
 0xc49   :  { %1131 = vrot.lane.b32.xlu1 %v2394_v37, %s2787_s18 }
 0xc71   :  { %v1020_v39 = vpop.permute.xlu2 %1019 }
 0xc72   :  { %v1022_v7 = vmul.f32 %v1020_v39, %v1003_v33 }
 0xc74   :  { %v1789_v18 = vrot.slane %v1022_v7, 5  ;;  %v1804_v41 = vrot.slane %v1022_v7, 6  ;;  %v1146_v6 = vrot.slane %v1022_v7, 4 }
 0xc76   :  { %v3271_v8 = vsel %vm1817_vm8, %v3217_v60, %v1789_v18  ;;  %v3275_v14 = vsel %vm1817_vm8, %v3220_v12, %v1804_v41  ;;  %1147 = vrot.lane.b32.xlu2 %v1146_v6, %s2789_s1 }
 0xcba   :  { %v1130_v15 = vpop.permute.xlu0 %1129 }
 0xcbb   :  { %v1132_v16 = vpop.permute.xlu1 %1131  ;;  %v1135_v11 = vmul.f32 %v1130_v15, %v1078_v58 }
 0xcbc   :  { %v1136_v17 = vmul.f32 %v1132_v16, %v1093_v61 }
 0xcbd   :  { %v1212_v19 = vrot.slane %v1135_v11, 4 }
 0xcbe   :  { %v1139_v20 = vrot.slane %v1136_v17, 7  ;;  %v1213_v21 = vrot.slane %v1136_v17, 3 }
 0xcc0   :  { %v1214_v4 = vsel %vm269_vm0, %v1213_v21, %v1212_v19  ;;  %v1141_v29 = vsel %vm1140_vm9, %v1139_v20, %v1135_v11 }
 0xcc1   :  { %1215 = vrot.lane.b32.xlu0 %v1214_v4, %s2788_s13  ;;  %1142 = vrot.lane.b32.xlu1 %v1141_v29, %s2788_s13 }
 0xcd0   :  { %v1148_v60 = vpop.permute.xlu2 %1147 }
 0xd33   :  { %v1216_v12 = vpop.permute.xlu0 %1215  ;;  %v1143_v5 = vpop.permute.xlu1 %1142 }
 0xd34   :  { %v1150_v13 = vsel %vm220_vm1, %v1143_v5, %v1148_v60  ;;  %2229 = vmatmul.msk.f32.vlgmr.msrb.gmra.mxu1 %vm220_vm1, %v1216_v12 }
 0xd35   :  { %v1152_v30 = vrot.slane %v1150_v13, 4 }
 0xd37   :  { %2227 = vmatmul.msk.f32.vlgmr.msrb.gmra.mxu3 %vm397_vm13, %v1152_v30 }
 0xdb1   :  { %v1236_v31 = vpop.f32.mrf.mxu1 }
 0xdb2   :  { %v1240_v33 = vrot.slane %v1236_v31, 3  ;;  %v1241_v35 = vrot.slane %v1236_v31, 4 }
 0xdb4   :  { %v1244_v38 = vadd.f32 %v1240_v33, %v3004_v34  ;;  %v1245_v46 = vadd.f32 %v1241_v35, %v3001_v32 }
 0xdb6   :  { %2395 = vtanh.f32 %v1244_v38  ;;  %v2230_v49 = vmul.f32 -1.442695, %v1244_v38  ;;  %v2231_v50 = vmul.f32 -1.442695, %v1245_v46  ;;  %v1288_v38 = vrot.slane %v3261_v0, 7 }
 0xdb7   :  { %2397 = vtanh.f32 %v1245_v46  ;;  %v1289_v46 = vrot.slane %v3263_v28, 7 }
 0xdba   :  { %v1172_v40 = vpop.f32.mrf.mxu3 }
 0xdbb   :  { %v1173_v42 = vadd.f32 %v3286_v54, %v1172_v40 }
 0xdbc   :  { %v2396_v52 = vpop.eup %2395 }
 0xdbd   :  { %v2398_v43 = vpop.eup %2397  ;;  %2399 = vtanh.f32 %v1173_v42  ;;  %1296 = vrot.lane.b32.xlu0 %v2396_v52, %s2787_s18  ;;  %v2228_v45 = vmul.f32 -1.442695, %v1173_v42 }
 0xdbe   :  { %1298 = vrot.lane.b32.xlu1 %v2398_v43, %s2787_s18 }
 0xdbf   :  { %2401 = vpow2.f32 %v2228_v45 }
 0xdc3   :  { %v2400_v44 = vpop.eup %2399 }
 0xdc4   :  { %1197 = vrot.lane.b32.xlu2 %v2400_v44, %s2787_s18 }
 0xdc5   :  { %v2402_v47 = vpop.eup %2401 }
 0xdc6   :  { %v1178_v48 = vadd.f32 1.0, %v2402_v47 }
 0xdc8   :  { %2403 = vrcp.f32 %v1178_v48  ;;  %v1190_v62 = vand.u32 2147483648, %v1178_v48  ;;  %vm1184_vm11 = vweird.f32 %v1178_v48  ;;  %v1188_v63 = vand.u32 2147483647, %v1178_v48 }
 0xdc9   :  { %2405 = vpow2.f32 %v2230_v49 }
 0xdca   :  { %2407 = vpow2.f32 %v2231_v50  ;;  %v1191_v26 = vor.u32 1.1754944e-38, %v1190_v62  ;;  %vm1189_vm14 = vcmp.eq.f32.partialorder %v1188_v63, 8.507059e+37 }
 0xdce   :  { %v2404_v51 = vpop.eup %2403 }
 0xdcf   :  { %v1180_v53 = vmul.f32 %v2404_v51, %v1178_v48  ;;  %v2406_v55 = vpop.eup %2405  ;;  %vm1185_vm10 = vweird.f32 %v2404_v51 }
 0xdd0   :  { %v2408_v56 = vpop.eup %2407  ;;  %v1252_v24 = vadd.f32 1.0, %v2406_v55  ;;  %vm1186_vm12 = vmor %vm1184_vm11, %vm1185_vm10 }
 0xdd1   :  { %v1181_v57 = vsub.f32 1.0, %v1180_v53  ;;  %v1253_v58 = vadd.f32 1.0, %v2408_v56 }
 0xdd2   :  { %2409 = vrcp.f32 %v1252_v24  ;;  %v1265_v41 = vand.u32 2147483648, %v1252_v24  ;;  %vm1259_vm6 = vweird.f32 %v1252_v24  ;;  %v1263_v15 = vand.u32 2147483647, %v1252_v24 }
 0xdd3   :  { %v1182_v59 = vmul.f32 %v2404_v51, %v1181_v57  ;;  %2411 = vrcp.f32 %v1253_v58  ;;  %v1280_v16 = vand.u32 2147483648, %v1253_v58  ;;  %vm1274_vm9 = vweird.f32 %v1253_v58 }
 0xdd4   :  { %v1278_v11 = vand.u32 2147483647, %v1253_v58  ;;  %v1266_v19 = vor.u32 1.1754944e-38, %v1265_v41  ;;  %vm1264_vm11 = vcmp.eq.f32.partialorder %v1263_v15, 8.507059e+37 }
 0xdd5   :  { %v1183_v61 = vadd.f32 %v2404_v51, %v1182_v59  ;;  %v1281_v21 = vor.u32 1.1754944e-38, %v1280_v16 }
 0xdd7   :  { %v1187_v25 = vsel %vm1186_vm12, %v2404_v51, %v1183_v61  ;;  %vm1279_vm12 = vcmp.eq.f32.partialorder %v1278_v11, 8.507059e+37 }
 0xdd8   :  { %v2410_v23 = vpop.eup %2409  ;;  %v1192_v3 = vsel %vm1189_vm14, %v1191_v26, %v1187_v25  ;;  %vm1819_vm14 = vcmask 1043456  }
 0xdd9   :  { %v2412_v1 = vpop.eup %2411  ;;  %v1255_v9 = vmul.f32 %v2410_v23, %v1252_v24  ;;  %vm1260_vm15 = vweird.f32 %v2410_v23  ;;  %v1195_v30 = vmul.f32 %v1192_v3, %v3255_v22 }
 0xdda   :  { %v1270_v2 = vmul.f32 %v2412_v1, %v1253_v58  ;;  %vm1275_vm4 = vweird.f32 %v2412_v1  ;;  %vm1261_vm7 = vmor %vm1259_vm6, %vm1260_vm15  ;;  %vm1329_vm15 = vcmask 1046534  }
 0xddb   :  { %v1256_v36 = vsub.f32 1.0, %v1255_v9  ;;  %vm1276_vm10 = vmor %vm1274_vm9, %vm1275_vm4 }
 0xddc   :  { %v1271_v37 = vsub.f32 1.0, %v1270_v2 }
 0xddd   :  { %v1257_v39 = vmul.f32 %v2410_v23, %v1256_v36 }
 0xdde   :  { %v1272_v7 = vmul.f32 %v2412_v1, %v1271_v37 }
 0xddf   :  { %v1258_v18 = vadd.f32 %v2410_v23, %v1257_v39 }
 0xde0   :  { %v1273_v6 = vadd.f32 %v2412_v1, %v1272_v7 }
 0xde1   :  { %v1262_v17 = vsel %vm1261_vm7, %v2410_v23, %v1258_v18 }
 0xde2   :  { %v1277_v20 = vsel %vm1276_vm10, %v2412_v1, %v1273_v6  ;;  %v1267_v29 = vsel %vm1264_vm11, %v1266_v19, %v1262_v17 }
 0xde3   :  { %v1282_v12 = vsel %vm1279_vm12, %v1281_v21, %v1277_v20  ;;  %v1292_v40 = vmul.f32 %v1288_v38, %v1267_v29 }
 0xde4   :  { %v1293_v52 = vmul.f32 %v1289_v46, %v1282_v12 }
 0xe1e   :  { %v1198_v10 = vpop.permute.xlu2 %1197 }
 0xe1f   :  { %v1200_v27 = vmul.f32 %v1198_v10, %v1192_v3 }
 0xe21   :  { %1202 = vrot.lane.b32.xlu2 %v1200_v27, %s2787_s18 }
 0xe2f   :  { %v1297_v4 = vpop.permute.xlu0 %1296 }
 0xe30   :  { %v1302_v60 = vmul.f32 %v1297_v4, %v1267_v29  ;;  %v1299_v5 = vpop.permute.xlu1 %1298 }
 0xe31   :  { %v1303_v13 = vmul.f32 %v1299_v5, %v1282_v12 }
 0xe32   :  { %1306 = vrot.lane.b32.xlu0 %v1302_v60, %s2787_s18 }
 0xe33   :  { %1308 = vrot.lane.b32.xlu1 %v1303_v13, %s2787_s18 }
 0xe7b   :  { %v1203_v31 = vpop.permute.xlu2 %1202 }
 0xe7c   :  { %v3296_v33 = vadd.f32 %v1203_v31, %v1195_v30 }
 0xe7e   :  { %2413 = vtanh.f32 %v3296_v33 }
 0xe84   :  { %v2414_v35 = vpop.eup %2413 }
 0xe85   :  { %1208 = vrot.lane.b32.xlu2 %v2414_v35, %s2787_s18 }
 0xea4   :  { %v1307_v42 = vpop.permute.xlu0 %1306 }
 0xea5   :  { %v3302_v43 = vadd.f32 %v1307_v42, %v1292_v40  ;;  %v1309_v44 = vpop.permute.xlu1 %1308 }
 0xea6   :  { %v3304_v45 = vadd.f32 %v1309_v44, %v1293_v52 }
 0xea7   :  { %2415 = vtanh.f32 %v3302_v43 }
 0xea8   :  { %2417 = vtanh.f32 %v3304_v45 }
 0xead   :  { %v2416_v22 = vpop.eup %2415 }
 0xeae   :  { %v2418_v47 = vpop.eup %2417  ;;  %1318 = vrot.lane.b32.xlu0 %v2416_v22, %s2787_s18 }
 0xeaf   :  { %1320 = vrot.lane.b32.xlu1 %v2418_v47, %s2787_s18 }
 0xedf   :  { %v1209_v0 = vpop.permute.xlu2 %1208 }
 0xee0   :  { %v1211_v28 = vmul.f32 %v1209_v0, %v1192_v3 }
 0xee2   :  { %v1791_v48 = vrot.slane %v1211_v28, 4  ;;  %v1806_v49 = vrot.slane %v1211_v28, 5  ;;  %v1335_v50 = vrot.slane %v1211_v28, 3 }
 0xee4   :  { %1336 = vrot.lane.b32.xlu2 %v1335_v50, %s2789_s1  ;;  %v3312_v51 = vsel %vm1819_vm14, %v3275_v14, %v1806_v49  ;;  %v3315_v53 = vsel %vm1819_vm14, %v3271_v8, %v1791_v48 }
 0xf20   :  { %v1319_v55 = vpop.permute.xlu0 %1318 }
 0xf21   :  { %v1324_v56 = vmul.f32 %v1319_v55, %v1267_v29  ;;  %v1321_v24 = vpop.permute.xlu1 %1320 }
 0xf22   :  { %v1325_v57 = vmul.f32 %v1321_v24, %v1282_v12 }
 0xf23   :  { %v1401_v58 = vrot.slane %v1324_v56, 5 }
 0xf24   :  { %v1328_v59 = vrot.slane %v1325_v57, 7  ;;  %v1402_v61 = vrot.slane %v1325_v57, 4 }
 0xf26   :  { %v1403_v62 = vsel %vm269_vm0, %v1402_v61, %v1401_v58  ;;  %v1330_v23 = vsel %vm1329_vm15, %v1328_v59, %v1324_v56 }
 0xf27   :  { %1404 = vrot.lane.b32.xlu0 %v1403_v62, %s2788_s13  ;;  %1331 = vrot.lane.b32.xlu1 %v1330_v23, %s2788_s13 }
 0xf3e   :  { %v1337_v14 = vpop.permute.xlu2 %1336 }
 0xf99   :  { %v1405_v63 = vpop.permute.xlu0 %1404  ;;  %v1332_v1 = vpop.permute.xlu1 %1331 }
 0xf9a   :  { %v1339_v8 = vsel %vm220_vm1, %v1332_v1, %v1337_v14  ;;  %2234 = vmatmul.msk.f32.vlgmr.msrb.gmra.mxu0 %vm220_vm1, %v1405_v63 }
 0xf9b   :  { %v1341_v25 = vrot.slane %v1339_v8, 5 }
 0xf9d   :  { %2232 = vmatmul.msk.f32.vlgmr.msra.gmra.mxu2 %vm397_vm13, %v1341_v25  ;;  %v1478_v25 = vrot.slane %v3304_v45, 7 }
0x1017   :  { %v1425_v26 = vpop.f32.mrf.mxu0 }
0x1018   :  { %v1429_v9 = vrot.slane %v1425_v26, 2  ;;  %v1430_v2 = vrot.slane %v1425_v26, 3 }
0x101a   :  { %v1433_v10 = vadd.f32 %v1429_v9, %v3004_v34  ;;  %v1434_v3 = vadd.f32 %v1430_v2, %v3001_v32 }
0x101c   :  { %2419 = vtanh.f32 %v1433_v10  ;;  %v2236_v18 = vmul.f32 -1.442695, %v1434_v3  ;;  %v2235_v16 = vmul.f32 -1.442695, %v1433_v10 }
0x101d   :  { %2421 = vtanh.f32 %v1434_v3  ;;  %v1477_v3 = vrot.slane %v3302_v43, 7 }
0x1020   :  { %v1361_v27 = vpop.f32.mrf.mxu2 }
0x1021   :  { %v1362_v36 = vadd.f32 %v3286_v54, %v1361_v27 }
0x1022   :  { %v2420_v37 = vpop.eup %2419 }
0x1023   :  { %v2422_v39 = vpop.eup %2421  ;;  %2423 = vtanh.f32 %v1362_v36  ;;  %1485 = vrot.lane.b32.xlu1 %v2420_v37, %s2787_s18  ;;  %v2233_v17 = vmul.f32 -1.442695, %v1362_v36 }
0x1024   :  { %1487 = vrot.lane.b32.xlu2 %v2422_v39, %s2787_s18  ;;  %2425 = vpow2.f32 %v2236_v18 }
0x1029   :  { %v2424_v7 = vpop.eup %2423 }
0x102a   :  { %1386 = vrot.lane.b32.xlu0 %v2424_v7, %s2787_s18  ;;  %v2426_v41 = vpop.eup %2425 }
0x102b   :  { %v1442_v6 = vadd.f32 1.0, %v2426_v41 }
0x102d   :  { %2427 = vrcp.f32 %v1442_v6  ;;  %v1469_v60 = vand.u32 2147483648, %v1442_v6  ;;  %vm1463_vm6 = vweird.f32 %v1442_v6  ;;  %v1467_v5 = vand.u32 2147483647, %v1442_v6 }
0x102e   :  { %2429 = vpow2.f32 %v2235_v16 }
0x102f   :  { %2431 = vpow2.f32 %v2233_v17  ;;  %v1470_v31 = vor.u32 1.1754944e-38, %v1469_v60  ;;  %vm1468_vm9 = vcmp.eq.f32.partialorder %v1467_v5, 8.507059e+37 }
0x1033   :  { %v2428_v15 = vpop.eup %2427 }
0x1034   :  { %v1459_v11 = vmul.f32 %v2428_v15, %v1442_v6  ;;  %v2430_v20 = vpop.eup %2429  ;;  %vm1464_vm4 = vweird.f32 %v2428_v15 }
0x1035   :  { %v1441_v4 = vadd.f32 1.0, %v2430_v20  ;;  %v2432_v12 = vpop.eup %2431  ;;  %vm1465_vm7 = vmor %vm1463_vm6, %vm1464_vm4 }
0x1036   :  { %v1460_v19 = vsub.f32 1.0, %v1459_v11  ;;  %v1367_v30 = vadd.f32 1.0, %v2432_v12 }
0x1037   :  { %2433 = vrcp.f32 %v1441_v4  ;;  %v1454_v48 = vand.u32 2147483648, %v1441_v4  ;;  %vm1448_vm11 = vweird.f32 %v1441_v4  ;;  %v1452_v49 = vand.u32 2147483647, %v1441_v4 }
0x1038   :  { %v1461_v21 = vmul.f32 %v2428_v15, %v1460_v19  ;;  %2435 = vrcp.f32 %v1367_v30  ;;  %v1379_v61 = vand.u32 2147483648, %v1367_v30  ;;  %vm1373_vm4 = vweird.f32 %v1367_v30 }
0x1039   :  { %v1455_v56 = vor.u32 1.1754944e-38, %v1454_v48  ;;  %vm1453_vm14 = vcmp.eq.f32.partialorder %v1452_v49, 8.507059e+37  ;;  %v1377_v62 = vand.u32 2147483647, %v1367_v30 }
0x103a   :  { %v1462_v29 = vadd.f32 %v2428_v15, %v1461_v21  ;;  %v1380_v14 = vor.u32 1.1754944e-38, %v1379_v61 }
0x103c   :  { %v1466_v13 = vsel %vm1465_vm7, %v2428_v15, %v1462_v29  ;;  %vm1378_vm7 = vcmp.eq.f32.partialorder %v1377_v62, 8.507059e+37 }
0x103d   :  { %v1471_v38 = vsel %vm1468_vm9, %v1470_v31, %v1466_v13  ;;  %v2434_v46 = vpop.eup %2433  ;;  %vm1518_vm9 = vcmask 1047559  }
0x103e   :  { %v1444_v42 = vmul.f32 %v2434_v46, %v1441_v4  ;;  %v2436_v52 = vpop.eup %2435  ;;  %vm1449_vm10 = vweird.f32 %v2434_v46  ;;  %v1482_v26 = vmul.f32 %v1478_v25, %v1471_v38 }
0x103f   :  { %v1369_v22 = vmul.f32 %v2436_v52, %v1367_v30  ;;  %vm1450_vm12 = vmor %vm1448_vm11, %vm1449_vm10  ;;  %vm1374_vm15 = vweird.f32 %v2436_v52  ;;  %vm1821_vm10 = vcmask 1044480  }
0x1040   :  { %v1445_v44 = vsub.f32 1.0, %v1444_v42  ;;  %vm1375_vm6 = vmor %vm1373_vm4, %vm1374_vm15 }
0x1041   :  { %v1370_v0 = vsub.f32 1.0, %v1369_v22 }
0x1042   :  { %v1446_v47 = vmul.f32 %v2434_v46, %v1445_v44 }
0x1043   :  { %v1371_v50 = vmul.f32 %v2436_v52, %v1370_v0 }
0x1044   :  { %v1447_v28 = vadd.f32 %v2434_v46, %v1446_v47 }
0x1045   :  { %v1372_v58 = vadd.f32 %v2436_v52, %v1371_v50 }
0x1046   :  { %v1451_v55 = vsel %vm1450_vm12, %v2434_v46, %v1447_v28 }
0x1047   :  { %v1456_v24 = vsel %vm1453_vm14, %v1455_v56, %v1451_v55  ;;  %v1376_v23 = vsel %vm1375_vm6, %v2436_v52, %v1372_v58 }
0x1048   :  { %v1381_v1 = vsel %vm1378_vm7, %v1380_v14, %v1376_v23  ;;  %v1481_v27 = vmul.f32 %v1477_v3, %v1456_v24 }
0x1049   :  { %v1384_v39 = vmul.f32 %v1381_v1, %v3296_v33 }
0x107e   :  { %v1488_v35 = vpop.permute.xlu2 %1487 }
0x107f   :  { %v1492_v40 = vmul.f32 %v1488_v35, %v1471_v38 }
0x1081   :  { %1497 = vrot.lane.b32.xlu2 %v1492_v40, %s2787_s18 }
0x1095   :  { %v1486_v57 = vpop.permute.xlu1 %1485 }
0x1096   :  { %v1491_v59 = vmul.f32 %v1486_v57, %v1456_v24 }
0x1098   :  { %1495 = vrot.lane.b32.xlu1 %v1491_v59, %s2787_s18 }
0x109c   :  { %v1387_v63 = vpop.permute.xlu0 %1386 }
0x109d   :  { %v1389_v8 = vmul.f32 %v1387_v63, %v1381_v1 }
0x109f   :  { %1391 = vrot.lane.b32.xlu0 %v1389_v8, %s2787_s18 }
0x10db   :  { %v1498_v9 = vpop.permute.xlu2 %1497 }
0x10dc   :  { %v3333_v2 = vadd.f32 %v1498_v9, %v1482_v26 }
0x10de   :  { %2437 = vtanh.f32 %v3333_v2 }
0x10e4   :  { %v2438_v10 = vpop.eup %2437 }
0x10e5   :  { %1509 = vrot.lane.b32.xlu2 %v2438_v10, %s2787_s18 }
0x110a   :  { %v1496_v36 = vpop.permute.xlu1 %1495 }
0x110b   :  { %v3338_v37 = vadd.f32 %v1496_v36, %v1481_v27 }
0x110d   :  { %2439 = vtanh.f32 %v3338_v37 }
0x1111   :  { %v1392_v45 = vpop.permute.xlu0 %1391 }
0x1112   :  { %v3342_v7 = vadd.f32 %v1392_v45, %v1384_v39 }
0x1113   :  { %v2440_v18 = vpop.eup %2439 }
0x1114   :  { %2441 = vtanh.f32 %v3342_v7  ;;  %1507 = vrot.lane.b32.xlu1 %v2440_v18, %s2787_s18 }
0x111a   :  { %v2442_v41 = vpop.eup %2441 }
0x111b   :  { %1397 = vrot.lane.b32.xlu0 %v2442_v41, %s2787_s18 }
0x113f   :  { %v1510_v43 = vpop.permute.xlu2 %1509 }
0x1140   :  { %v1514_v6 = vmul.f32 %v1510_v43, %v1471_v38 }
0x1142   :  { %v1517_v16 = vrot.slane %v1514_v6, 7  ;;  %v1591_v17 = vrot.slane %v1514_v6, 5 }
0x1186   :  { %v1508_v15 = vpop.permute.xlu1 %1507 }
0x1187   :  { %v1513_v11 = vmul.f32 %v1508_v15, %v1456_v24 }
0x1189   :  { %v1590_v19 = vrot.slane %v1513_v11, 6  ;;  %v1519_v33 = vsel %vm1518_vm9, %v1517_v16, %v1513_v11 }
0x118a   :  { %1520 = vrot.lane.b32.xlu2 %v1519_v33, %s2788_s13 }
0x118b   :  { %v1592_v20 = vsel %vm269_vm0, %v1591_v17, %v1590_v19 }
0x118c   :  { %1593 = vrot.lane.b32.xlu1 %v1592_v20, %s2788_s13 }
0x118d   :  { %v1398_v21 = vpop.permute.xlu0 %1397 }
0x118e   :  { %v1400_v4 = vmul.f32 %v1398_v21, %v1381_v1 }
0x1190   :  { %v1793_v29 = vrot.slane %v1400_v4, 3  ;;  %v1808_v60 = vrot.slane %v1400_v4, 4  ;;  %v1524_v12 = vrot.slane %v1400_v4, 2 }
0x1192   :  { %1525 = vrot.lane.b32.xlu0 %v1524_v12, %s2789_s1  ;;  %v3352_v5 = vsel %vm1821_vm10, %v3312_v51, %v1808_v60  ;;  %v3355_v13 = vsel %vm1821_vm10, %v3315_v53, %v1793_v29 }
0x11e4   :  { %v1521_v31 = vpop.permute.xlu2 %1520 }
0x11fe   :  { %v1594_v30 = vpop.permute.xlu1 %1593 }
0x11ff   :  { %2239 = vmatmul.msk.f32.vlgmr.msra.gmra.mxu3 %vm220_vm1, %v1594_v30 }
0x1204   :  { %v1526_v35 = vpop.permute.xlu0 %1525 }
0x1205   :  { %v1528_v38 = vsel %vm220_vm1, %v1521_v31, %v1526_v35  ;;  %v1667_v35 = vrot.slane %v3333_v2, 7 }
0x1206   :  { %v1530_v46 = vrot.slane %v1528_v38, 6 }
0x1208   :  { %2237 = vmatmul.msk.f32.vlgmr.msra.gmra.mxu1 %vm397_vm13, %v1530_v46 }
0x1282   :  { %v1614_v40 = vpop.f32.mrf.mxu3 }
0x1283   :  { %v1618_v42 = vrot.slane %v1614_v40, 1  ;;  %v1619_v52 = vrot.slane %v1614_v40, 2 }
0x1285   :  { %v1622_v44 = vadd.f32 %v1618_v42, %v3004_v34  ;;  %v1623_v51 = vadd.f32 %v1619_v52, %v3001_v32  ;;  %v1550_v22 = vpop.f32.mrf.mxu1  ;;  %v1666_v52 = vrot.slane %v3338_v37, 7 }
0x1286   :  { %v1551_v53 = vadd.f32 %v3286_v54, %v1550_v22 }
0x1287   :  { %2443 = vtanh.f32 %v1622_v44  ;;  %v2241_v48 = vmul.f32 -1.442695, %v1623_v51  ;;  %v2240_v50 = vmul.f32 -1.442695, %v1622_v44 }
0x1288   :  { %2445 = vtanh.f32 %v1623_v51  ;;  %v2238_v56 = vmul.f32 -1.442695, %v1551_v53 }
0x1289   :  { %2447 = vtanh.f32 %v1551_v53 }
0x128a   :  { %2449 = vpow2.f32 %v2241_v48 }
0x128d   :  { %v2444_v47 = vpop.eup %2443 }
0x128e   :  { %v2446_v0 = vpop.eup %2445  ;;  %1674 = vrot.lane.b32.xlu0 %v2444_v47, %s2787_s18 }
0x128f   :  { %1676 = vrot.lane.b32.xlu2 %v2446_v0, %s2787_s18  ;;  %v2448_v28 = vpop.eup %2447 }
0x1290   :  { %1575 = vrot.lane.b32.xlu1 %v2448_v28, %s2787_s18  ;;  %v2450_v34 = vpop.eup %2449 }
0x1291   :  { %v1631_v49 = vadd.f32 1.0, %v2450_v34 }
0x1293   :  { %2451 = vrcp.f32 %v1631_v49  ;;  %v1658_v23 = vand.u32 2147483648, %v1631_v49  ;;  %vm1652_vm11 = vweird.f32 %v1631_v49  ;;  %v1656_v14 = vand.u32 2147483647, %v1631_v49 }
0x1294   :  { %2453 = vpow2.f32 %v2240_v50 }
0x1295   :  { %2455 = vpow2.f32 %v2238_v56  ;;  %v1659_v8 = vor.u32 1.1754944e-38, %v1658_v23  ;;  %vm1657_vm14 = vcmp.eq.f32.partialorder %v1656_v14, 8.507059e+37 }
0x1299   :  { %v2452_v32 = vpop.eup %2451 }
0x129a   :  { %v1648_v55 = vmul.f32 %v2452_v32, %v1631_v49  ;;  %v2454_v57 = vpop.eup %2453  ;;  %vm1653_vm0 = vweird.f32 %v2452_v32 }
0x129b   :  { %v1630_v59 = vadd.f32 1.0, %v2454_v57  ;;  %v2456_v61 = vpop.eup %2455  ;;  %vm1654_vm12 = vmor %vm1652_vm11, %vm1653_vm0 }
0x129c   :  { %v1649_v24 = vsub.f32 1.0, %v1648_v55  ;;  %v1556_v63 = vadd.f32 1.0, %v2456_v61 }
0x129d   :  { %2457 = vrcp.f32 %v1630_v59  ;;  %v1643_v43 = vand.u32 2147483648, %v1630_v59  ;;  %vm1637_vm4 = vweird.f32 %v1630_v59  ;;  %v1641_v15 = vand.u32 2147483647, %v1630_v59 }
0x129e   :  { %v1650_v58 = vmul.f32 %v2452_v32, %v1649_v24  ;;  %2459 = vrcp.f32 %v1556_v63  ;;  %v1568_v19 = vand.u32 2147483648, %v1556_v63  ;;  %vm1562_vm10 = vweird.f32 %v1556_v63 }
0x129f   :  { %v1644_v11 = vor.u32 1.1754944e-38, %v1643_v43  ;;  %vm1642_vm9 = vcmp.eq.f32.partialorder %v1641_v15, 8.507059e+37  ;;  %v1566_v21 = vand.u32 2147483647, %v1556_v63 }
0x12a0   :  { %v1651_v62 = vadd.f32 %v2452_v32, %v1650_v58  ;;  %v1569_v60 = vor.u32 1.1754944e-38, %v1568_v19 }
0x12a1   :  { %vm1567_vm11 = vcmp.eq.f32.partialorder %v1566_v21, 8.507059e+37 }
0x12a2   :  { %v1655_v1 = vsel %vm1654_vm12, %v2452_v32, %v1651_v62  ;;  %vm1823_vm12 = vcmask 1045504  }
0x12a3   :  { %v1660_v25 = vsel %vm1657_vm14, %v1659_v8, %v1655_v1  ;;  %v2458_v9 = vpop.eup %2457 }
0x12a4   :  { %v1633_v3 = vmul.f32 %v2458_v9, %v1630_v59  ;;  %v2460_v27 = vpop.eup %2459  ;;  %vm1638_vm15 = vweird.f32 %v2458_v9  ;;  %v1671_v38 = vmul.f32 %v1667_v35, %v1660_v25 }
0x12a5   :  { %v1558_v39 = vmul.f32 %v2460_v27, %v1556_v63  ;;  %vm1639_vm6 = vmor %vm1637_vm4, %vm1638_vm15  ;;  %vm1563_vm7 = vweird.f32 %v2460_v27 }
0x12a6   :  { %v1634_v36 = vsub.f32 1.0, %v1633_v3  ;;  %vm1564_vm0 = vmor %vm1562_vm10, %vm1563_vm7 }
0x12a7   :  { %v1559_v18 = vsub.f32 1.0, %v1558_v39 }
0x12a8   :  { %v1635_v45 = vmul.f32 %v2458_v9, %v1634_v36 }
0x12a9   :  { %v1560_v6 = vmul.f32 %v2460_v27, %v1559_v18 }
0x12aa   :  { %v1636_v41 = vadd.f32 %v2458_v9, %v1635_v45 }
0x12ab   :  { %v1561_v17 = vadd.f32 %v2460_v27, %v1560_v6 }
0x12ac   :  { %v1640_v16 = vsel %vm1639_vm6, %v2458_v9, %v1636_v41  ;;  %vm1825_vm6 = vcmask 1046528  }
0x12ad   :  { %v1645_v20 = vsel %vm1642_vm9, %v1644_v11, %v1640_v16  ;;  %v1565_v29 = vsel %vm1564_vm0, %v2460_v27, %v1561_v17 }
0x12ae   :  { %v1570_v30 = vsel %vm1567_vm11, %v1569_v60, %v1565_v29  ;;  %v1670_v44 = vmul.f32 %v1666_v52, %v1645_v20 }
0x12af   :  { %v1573_v53 = vmul.f32 %v1570_v30, %v3342_v7 }
0x12e9   :  { %v1677_v26 = vpop.permute.xlu2 %1676 }
0x12ea   :  { %v1681_v10 = vmul.f32 %v1677_v26, %v1660_v25 }
0x12ec   :  { %1686 = vrot.lane.b32.xlu2 %v1681_v10, %s2787_s18 }
0x1300   :  { %v1675_v33 = vpop.permute.xlu0 %1674 }
0x1301   :  { %v1680_v4 = vmul.f32 %v1675_v33, %v1645_v20 }
0x1302   :  { %v1576_v12 = vpop.permute.xlu1 %1575 }
0x1303   :  { %1684 = vrot.lane.b32.xlu0 %v1680_v4, %s2787_s18  ;;  %v1578_v31 = vmul.f32 %v1576_v12, %v1570_v30 }
0x1305   :  { %1580 = vrot.lane.b32.xlu1 %v1578_v31, %s2787_s18 }
0x1346   :  { %v1687_v46 = vpop.permute.xlu2 %1686 }
0x1347   :  { %v3370_v40 = vadd.f32 %v1687_v46, %v1671_v38 }
0x1349   :  { %2461 = vtanh.f32 %v3370_v40  ;;  %v2101_v21 = vrot.slane %v3370_v40, 5 }
0x134f   :  { %v2462_v42 = vpop.eup %2461 }
0x1350   :  { %1698 = vrot.lane.b32.xlu2 %v2462_v42, %s2787_s18 }
0x1375   :  { %v1685_v51 = vpop.permute.xlu0 %1684 }
0x1376   :  { %v3375_v22 = vadd.f32 %v1685_v51, %v1670_v44 }
0x1377   :  { %v1581_v2 = vpop.permute.xlu1 %1580 }
0x1378   :  { %2463 = vtanh.f32 %v3375_v22  ;;  %v1583_v47 = vadd.f32 %v1581_v2, %v1573_v53  ;;  %v2095_v33 = vrot.slane %v3375_v22, 7 }
0x137a   :  { %2465 = vtanh.f32 %v1583_v47 }
0x137e   :  { %v2464_v0 = vpop.eup %2463 }
0x137f   :  { %1696 = vrot.lane.b32.xlu0 %v2464_v0, %s2787_s18 }
0x1380   :  { %v2466_v28 = vpop.eup %2465 }
0x1381   :  { %1586 = vrot.lane.b32.xlu1 %v2466_v28, %s2787_s18 }
0x13aa   :  { %v1699_v48 = vpop.permute.xlu2 %1698 }
0x13ab   :  { %v3381_v34 = vmul.f32 %v1699_v48, %v1660_v25 }
0x13ad   :  { %v1706_v37 = vrot.slane %v3381_v34, 7  ;;  %v2071_v40 = vrot.slane %v3381_v34, 5 }
0x13af   :  { %1709 = vrot.lane.b32.xlu2 %v1706_v37, %s2788_s13  ;;  %v1835_v37 = vld [vmem:[#allocation13 + $0x8] sm:$0xff] }
0x13b0   :  { %2244 = vmatpush.xpose.msk.msrb.mxu2 %vm220_vm1, %v1835_v37  ;;  %1920 = vmatpush.msrb.mxu3 %v1835_v37 }
0x13f1   :  { %v1697_v49 = vpop.permute.xlu0 %1696 }
0x13f2   :  { %v3385_v32 = vmul.f32 %v1697_v49, %v1645_v20  ;;  %v1936_v49 = vld [vmem:[#allocation11 + $0x18] sm:$0xff] }
0x13f3   :  { %v1587_v7 = vpop.permute.xlu1 %1586  ;;  %1949 = vmatpush.msrb.mxu1 %v1936_v49 }
0x13f4   :  { %1707 = vrot.lane.b32.xlu1 %v3385_v32, %s2788_s13  ;;  %v1589_v50 = vmul.f32 %v1587_v7, %v1570_v30  ;;  %v2067_v38 = vrot.slane %v3385_v32, 7  ;;  %v1935_v32 = vld [vmem:[#allocation11 + $0x10] sm:$0xff]  ;;  %v1834_v7 = vld [vmem:[#allocation13] sm:$0xff] }
0x13f5   :  { %1950 = vmatpush.msrb.mxu1 %v1935_v32  ;;  %1921 = vmatpush.msrb.mxu3 %v1834_v7 }
0x13f6   :  { %v1795_v55 = vrot.slane %v1589_v50, 2  ;;  %v1810_v56 = vrot.slane %v1589_v50, 3  ;;  %v1714_v24 = vrot.slane %v1589_v50, 1  ;;  %v1934_v50 = vld [vmem:[#allocation11 + $0x8] sm:$0xff]  ;;  %2245 = vmatpush.xpose.msk.msrb.mxu2 %vm220_vm1, %v1834_v7 }
0x13f7   :  { %1951 = vmatpush.msrb.mxu1 %v1934_v50 }
0x13f8   :  { %1715 = vrot.lane.b32.xlu0 %v1714_v24, %s2789_s1  ;;  %v1832_v57 = vsel %vm1823_vm12, %v3352_v5, %v1810_v56  ;;  %v1824_v58 = vsel %vm1823_vm12, %v3355_v13, %v1795_v55  ;;  %v1933_v55 = vld [vmem:[#allocation11] sm:$0xff] }
0x13f9   :  { %1952 = vmatpush.msrb.mxu1 %v1933_v55 }
0x1409   :  { %v1710_v59 = vpop.permute.xlu2 %1709 }
0x1466   :  { %v1708_v61 = vpop.permute.xlu1 %1707 }
0x146a   :  { %v1716_v62 = vpop.permute.xlu0 %1715 }
0x146b   :  { %v1718_v23 = vsel %vm220_vm1, %v1708_v61, %v1716_v62  ;;  %v1719_v14 = vsel %vm220_vm1, %v1710_v59, %v1716_v62  ;;  %v1837_v62 = vld [vmem:[%s3512_s11 + $0x8] sm:$0xff] }
0x146c   :  { %v1723_v63 = vrot.slane %v1718_v23, 7  ;;  %v1724_v1 = vrot.slane %v1719_v14, 7 }
0x146e   :  { %v1725_v8 = vsel %vm1722_vm3, %v1723_v63, %v1724_v1 }
0x146f   :  { %2242 = vmatmul.msk.f32.vlgmr.msra.gmra.mxu0 %vm397_vm13, %v1725_v8 }
0x14ec   :  { %v1745_v25 = vpop.f32.mrf.mxu0 }
0x14ed   :  { %v1746_v26 = vadd.f32 %v3286_v54, %v1745_v25 }
0x14ef   :  { %2467 = vtanh.f32 %v1746_v26  ;;  %v2243_v13 = vmul.f32 -1.442695, %v1746_v26 }
0x14f1   :  { %2469 = vpow2.f32 %v2243_v13 }
0x14f5   :  { %v2468_v5 = vpop.eup %2467 }
0x14f6   :  { %1770 = vrot.lane.b32.xlu1 %v2468_v5, %s2787_s18 }
0x14f7   :  { %v2470_v9 = vpop.eup %2469 }
0x14f8   :  { %v1751_v10 = vadd.f32 1.0, %v2470_v9 }
0x14fa   :  { %2471 = vrcp.f32 %v1751_v10  ;;  %v1763_v18 = vand.u32 2147483648, %v1751_v10  ;;  %vm1757_vm13 = vweird.f32 %v1751_v10  ;;  %v1761_v41 = vand.u32 2147483647, %v1751_v10 }
0x14fc   :  { %v1764_v43 = vor.u32 1.1754944e-38, %v1763_v18  ;;  %vm1762_vm4 = vcmp.eq.f32.partialorder %v1761_v41, 8.507059e+37  ;;  %v1929_v18 = vld [vmem:[#allocation10] sm:$0xff] }
0x1500   :  { %v2472_v3 = vpop.eup %2471 }
0x1501   :  { %v1753_v27 = vmul.f32 %v2472_v3, %v1751_v10  ;;  %vm1758_vm14 = vweird.f32 %v2472_v3 }
0x1502   :  { %vm1759_vm15 = vmor %vm1757_vm13, %vm1758_vm14 }
0x1503   :  { %v1754_v36 = vsub.f32 1.0, %v1753_v27 }
0x1505   :  { %v1755_v39 = vmul.f32 %v2472_v3, %v1754_v36  ;;  %v1932_v36 = vld [vmem:[#allocation10 + $0x18] sm:$0xff] }
0x1506   :  { %1978 = vmatpush.msrb.mxu0 %v1932_v36 }
0x1507   :  { %v1756_v45 = vadd.f32 %v2472_v3, %v1755_v39  ;;  %v1931_v39 = vld [vmem:[#allocation10 + $0x10] sm:$0xff] }
0x1508   :  { %1979 = vmatpush.msrb.mxu0 %v1931_v39 }
0x1509   :  { %v1760_v54 = vsel %vm1759_vm15, %v2472_v3, %v1756_v45  ;;  %v1930_v45 = vld [vmem:[#allocation10 + $0x8] sm:$0xff] }
0x150a   :  { %v1765_v15 = vsel %vm1762_vm4, %v1764_v43, %v1760_v54  ;;  %1980 = vmatpush.msrb.mxu0 %v1930_v45 }
0x150b   :  { %v1768_v11 = vmul.f32 %v1765_v15, %v1583_v47 }
0x150c   :  { %1981 = vmatpush.msrb.mxu0 %v1929_v18 }
0x1568   :  { %v1771_v6 = vpop.permute.xlu1 %1770 }
0x1569   :  { %v1773_v16 = vmul.f32 %v1771_v6, %v1765_v15 }
0x156b   :  { %1775 = vrot.lane.b32.xlu2 %v1773_v16, %s2787_s18 }
0x15c5   :  { %v1776_v17 = vpop.permute.xlu2 %1775 }
0x15c6   :  { %v1778_v19 = vadd.f32 %v1776_v17, %v1768_v11  ;;  %v2000_v11 = vld [vmem:[%s3510_s9 + $0x18] sm:$0xff] }
0x15c7   :  { %2023 = vmatpush.msra.mxu2 %v2000_v11 }
0x15c8   :  { %2473 = vtanh.f32 %v1778_v19  ;;  %v2098_v20 = vrot.slane %v1778_v19, 7  ;;  %v2103_v4 = vrot.slane %v1778_v19, 6 }
0x15ca   :  { %v2105_v29 = vsel %vm1722_vm3, %v2095_v33, %v2098_v20  ;;  %v1999_v33 = vld [vmem:[%s3510_s9 + $0x10] sm:$0xff]  ;;  %v1998_v20 = vld [vmem:[%s3510_s9 + $0x8] sm:$0xff] }
0x15cb   :  { %v2106_v60 = vsel %vm1815_vm5, %v2105_v29, %v2101_v21  ;;  %2024 = vmatpush.msra.mxu2 %v1999_v33  ;;  %v1997_v21 = vld [vmem:[%s3510_s9] sm:$0xff] }
0x15cc   :  { %v2107_v12 = vsel %vm1817_vm8, %v2106_v60, %v2103_v4  ;;  %v2281_v29 = vld [vmem:[%s3509_s8] ss:$0 sm:$0xff]  ;;  %s2790_s8 = smov 120  }
0x15cd   :  { %v2109_v48 = vrot.slane %v2107_v12, 2  ;;  %2025 = vmatpush.msra.mxu2 %v1998_v20 }
0x15ce   :  { %v2474_v30 = vpop.eup %2473 }
0x15cf   :  { %1781 = vrot.lane.b32.xlu0 %v2474_v30, %s2787_s18  ;;  %2026 = vmatpush.msra.mxu2 %v1997_v21 }
0x1641   :  { %v1782_v31 = vpop.permute.xlu0 %1781 }
0x1642   :  { %v1784_v35 = vmul.f32 %v1782_v31, %v1765_v15 }
0x1644   :  { %v2069_v46 = vrot.slane %v1784_v35, 7  ;;  %v1812_v42 = vrot.slane %v1784_v35, 2  ;;  %v1798_v52 = vrot.slane %v1784_v35, 1  ;;  %v2073_v44 = vrot.slane %v1784_v35, 6 }
0x1646   :  { %v2075_v51 = vsel %vm1722_vm3, %v2067_v38, %v2069_v46  ;;  %v1833_v22 = vsel %vm1825_vm6, %v1832_v57, %v1812_v42  ;;  %v1826_v53 = vsel %vm1825_vm6, %v1824_v58, %v1798_v52  ;;  %v1836_v57 = vld [vmem:[%s3512_s11] sm:$0xff]  ;;  %vm1877_vm3 = vcmask 130048  }
0x1647   :  { %1842 = vrot.lane.b32.xlu2 %v1833_v22, %s2788_s13  ;;  %1840 = vrot.lane.b32.xlu1 %v1826_v53, %s2788_s13  ;;  %v2076_v2 = vsel %vm1815_vm5, %v2075_v51, %v2071_v40  ;;  %v2282_v40 = vld [vmem:[%s3511_s10] ss:$0 sm:$0xff]  ;;  %s2791_s10 = smov [#allocation15]  }
0x1648   :  { %v2077_v47 = vsel %vm1817_vm8, %v2076_v2, %v2073_v44  ;;  %s2140_s30 = sshll.u32 %s2791_s10, 4  ;;  %s2141_s30 = int_to_ptr.vmem [resolvable:$true] %s2140_s30 }
0x1649   :  { %v2079_v0 = vrot.slane %v2077_v47, 2  ;;  %2080 = vst [vmem:[#allocation1] ss:$4 sm:$0xff] %v2077_v47 }
0x164b   :  { %2083 = vst [vmem:[#allocation1 + $0x20] ss:$4 sm:$0xff] %v2079_v0 }
0x1650   :  { %v3412_v28 = vld.sshfl [vmem:[#allocation1] sm:$0xff pattern:$0x73625140] }
0x1651   :  { %2110 = vst [vmem:[#allocation1] ss:$4 sm:$0xff] %v2107_v12 }
0x1652   :  { %v3414_v34 = vld.sshfl [vmem:[#allocation1 + $0x20] sm:$0xff pattern:$0x73625140] }
0x1653   :  { %2113 = vst [vmem:[#allocation1 + $0x20] ss:$4 sm:$0xff] %v2109_v48 }
0x1658   :  { %v2111_v0 = vld.sshfl [vmem:[#allocation1] sm:$0xff pattern:$0x73625140] }
0x16a1   :  { %v1843_v24 = vpop.permute.xlu2 %1842 }
0x16b9   :  { %v1841_v56 = vpop.permute.xlu1 %1840 }
0x16ba   :  { %2246 = vmatmul.msk.f32.vlgmr.msrb.gmra.mxu2 %vm220_vm1, %v1841_v56  ;;  %2250 = vmatmul.msk.f32.vlgmr.msrb.gmra.mxu1 %vm220_vm1, %v1841_v56 }
0x16c2   :  { %2247 = vmatmul.msk.f32.gmra.mxu2 %vm220_vm1, %v1843_v24  ;;  %2251 = vmatmul.msk.f32.gmra.mxu1 %vm220_vm1, %v1843_v24 }
0x1737   :  { %v1954_v4 = vpop.f32.mrf.mxu1 }
0x173d   :  { %v1871_v58 = vpop.f32.mrf.mxu2 }
0x173e   :  { %v1872_v59 = vadd.f32 %v1871_v58, %v1836_v57 }
0x173f   :  { %v1957_v31 = vpop.f32.mrf.mxu1 }
0x1740   :  { %v1878_v61 = vsel %vm1877_vm3, %v1872_v59, -inf }
0x1741   :  { %1879 = vmax.xlane.f32.xlu0 %v1878_v61  ;;  %v2114_v61 = vld.sshfl [vmem:[#allocation1 + $0x20] sm:$0xff pattern:$0x73625140] }
0x1745   :  { %v1874_v23 = vpop.f32.mrf.mxu2 }
0x1746   :  { %v1875_v14 = vadd.f32 %v1874_v23, %v1837_v62 }
0x1748   :  { %v1881_v63 = vsel %vm1877_vm3, %v1875_v14, -inf }
0x1749   :  { %1882 = vmax.xlane.f32.xlu1 %v1881_v63 }
0x17b4   :  { %v1880_v1 = vpop.xlane.xlu0 %1879 }
0x17b5   :  { %v1884_v8 = vsub.f32 %v1872_v59, %v1880_v1 }
0x17b7   :  { %v1886_v25 = vmul.f32 1.442695, %v1884_v8 }
0x17b9   :  { %2475 = vpow2.f32 %v1886_v25 }
0x17bc   :  { %v1883_v26 = vpop.xlane.xlu1 %1882 }
0x17bd   :  { %v1885_v5 = vsub.f32 %v1875_v14, %v1883_v26 }
0x17bf   :  { %v2476_v13 = vpop.eup %2475  ;;  %v1888_v9 = vmul.f32 1.442695, %v1885_v5 }
0x17c0   :  { %v1890_v10 = vsel %vm1877_vm3, %v2476_v13, 0.0 }
0x17c1   :  { %2477 = vpow2.f32 %v1888_v9  ;;  %1891 = vadd.xlane.f32.xlu2 %v1890_v10 }
0x17c7   :  { %v2478_v3 = vpop.eup %2477 }
0x17c8   :  { %v1893_v27 = vsel %vm1877_vm3, %v2478_v3, 0.0 }
0x17c9   :  { %1894 = vadd.xlane.f32.xlu2 %v1893_v27 }
0x1834   :  { %v1892_v41 = vpop.xlane.xlu2 %1891 }
0x1835   :  { %2479 = vrcp.f32 %v1892_v41 }
0x183b   :  { %v2480_v54 = vpop.eup %2479 }
0x183c   :  { %v1898_v43 = vmul.f32 %v2480_v54, %v2476_v13  ;;  %v1895_v6 = vpop.xlane.xlu2 %1894 }
0x183d   :  { %2481 = vrcp.f32 %v1895_v6 }
0x183e   :  { %2065 = vst.msk [vmem:[#allocation15] sm:$0xff] %vm181_vm2, %v1898_v43  ;;  %2248 = vmatmul.msk.f32.vlgmr.msrb.gmra.mxu3 %vm1877_vm3, %v1898_v43 }
0x1843   :  { %v2482_v15 = vpop.eup %2481 }
0x1844   :  { %v1899_v16 = vmul.f32 %v2482_v15, %v2478_v3 }
0x1846   :  { %2249 = vmatmul.msk.f32.gmra.mxu3 %vm1877_vm3, %v1899_v16 }
0x18c1   :  { %v1923_v17 = vpop.f32.mrf.mxu3 }
0x18c2   :  { %2252 = vmatmul.msk.f32.vlgmr.msrb.gmra.mxu0 %vm220_vm1, %v1923_v17 }
0x18c9   :  { %v1926_v19 = vpop.f32.mrf.mxu3 }
0x18ca   :  { %2253 = vmatmul.msk.f32.gmra.mxu0 %vm220_vm1, %v1926_v19 }
0x193f   :  { %v1983_v60 = vpop.f32.mrf.mxu0 }
0x1940   :  { %v1984_v12 = vadd.f32 %v1983_v60, %v1954_v4 }
0x1942   :  { %v1993_v30 = vadd.f32 %v2281_v29, %v1984_v12 }
0x1944   :  { %2483 = vtanh.f32 %v1993_v30 }
0x1947   :  { %v1986_v35 = vpop.f32.mrf.mxu0 }
0x1948   :  { %v1987_v38 = vadd.f32 %v1986_v35, %v1957_v31 }
0x194a   :  { %v2484_v46 = vpop.eup %2483  ;;  %v1994_v42 = vadd.f32 %v2281_v29, %v1987_v38 }
0x194b   :  { %2254 = vmatmul.msk.f32.vlgmr.msra.gmra.mxu2 %vm220_vm1, %v2484_v46 }
0x194c   :  { %2485 = vtanh.f32 %v1994_v42 }
0x1952   :  { %v2486_v52 = vpop.eup %2485 }
0x1953   :  { %2255 = vmatmul.msk.f32.gmra.mxu2 %vm220_vm1, %v2486_v52  ;;  %vm2091_vm1 = vcmask 254976  }
0x19ce   :  { %v2028_v44 = vpop.f32.mrf.mxu2 }
0x19cf   :  { %v2029_v51 = vadd.f32 %v2282_v40, %v2028_v44 }
0x19d1   :  { %v2034_v22 = vsel %vm181_vm2, %v2029_v51, -inf }
0x19d2   :  { %2035 = vmax.xlane.f32.xlu0 %v2034_v22 }
0x19d6   :  { %v2031_v53 = vpop.f32.mrf.mxu2 }
0x19d7   :  { %v3458_v2 = vadd.f32 %v2282_v40, %v2031_v53 }
0x19d9   :  { %v2037_v47 = vsel %vm181_vm2, %v3458_v2, -inf }
0x19da   :  { %2038 = vmax.xlane.f32.xlu1 %v2037_v47 }
0x19e6   :  { %2087 = vrot.lane.b32.xlu0 %v3414_v34, %s2788_s13 }
0x19f3   :  { %2062 = vrot.lane.b32.xlu1 %v1899_v16, %s2790_s8 }
0x19fb   :  { %2115 = vrot.lane.b32.xlu1 %v2111_v0, %s2789_s1 }
0x1a45   :  { %v2036_v48 = vpop.xlane.xlu0 %2035 }
0x1a46   :  { %v2040_v37 = vsub.f32 %v2029_v51, %v2036_v48 }
0x1a48   :  { %v2042_v49 = vmul.f32 1.442695, %v2040_v37 }
0x1a4a   :  { %2487 = vpow2.f32 %v2042_v49 }
0x1a4d   :  { %v2039_v32 = vpop.xlane.xlu1 %2038 }
0x1a4e   :  { %v2041_v7 = vsub.f32 %v3458_v2, %v2039_v32 }
0x1a50   :  { %v2488_v50 = vpop.eup %2487  ;;  %v2044_v55 = vmul.f32 1.442695, %v2041_v7 }
0x1a51   :  { %v2046_v56 = vsel %vm181_vm2, %v2488_v50, 0.0 }
0x1a52   :  { %2489 = vpow2.f32 %v2044_v55  ;;  %2047 = vadd.xlane.f32.xlu2 %v2046_v56 }
0x1a58   :  { %v2490_v34 = vpop.eup %2489  ;;  %v2088_v24 = vpop.permute.xlu0 %2087 }
0x1a59   :  { %2093 = vst.msk [vmem:[#allocation17 + $0x2] sm:$0x3] %vm2091_vm1, %v2088_v24  ;;  %v2049_v57 = vsel %vm181_vm2, %v2490_v34, 0.0 }
0x1a5a   :  { %2050 = vadd.xlane.f32.xlu0 %v2049_v57 }
0x1a65   :  { %v2063_v58 = vpop.permute.xlu1 %2062 }
0x1a66   :  { %2066 = vst.msk [vmem:[#allocation15 + $0x8] sm:$0xff] %vm181_vm2, %v2063_v58 }
0x1a67   :  { %2148 = dma.vmem_to_hbm [thread:$0]  %s2141_s30, 256, %s2143_s14, [#allocation16], %s2775_s21, %s2775_s21, %s2776_s22  }
0x1a6a   :  { %2085 = vrot.lane.b32.xlu2 %v3412_v28, %s2788_s13  ;;  %s2793_s13 = smov 2  }
0x1a6d   :  { %v2116_v59 = vpop.permute.xlu1 %2115 }
0x1a6e   :  { %2121 = vst.msk [vmem:[#allocation18] sm:$0x3] %vm2091_vm1, %v2116_v59  ;;  %2117 = vrot.lane.b32.xlu0 %v2114_v61, %s2789_s1  ;;  %s2127_s1 = sshll.u32 %s2794_s17, 4  ;;  %s2128_s1 = int_to_ptr.vmem [resolvable:$true] %s2127_s1 }
0x1ac5   :  { %v2048_v62 = vpop.xlane.xlu2 %2047 }
0x1ac6   :  { %2491 = vlog2.f32 %v2048_v62 }
0x1acc   :  { %v2492_v23 = vpop.eup %2491 }
0x1acd   :  { %v2053_v14 = vmul.f32 0.6931472, %v2492_v23  ;;  %v2051_v63 = vpop.xlane.xlu0 %2050  ;;  %v2086_v28 = vpop.permute.xlu2 %2085 }
0x1ace   :  { %2493 = vlog2.f32 %v2051_v63  ;;  %2092 = vst.msk [vmem:[#allocation17] sm:$0x3] %vm2091_vm1, %v2086_v28 }
0x1acf   :  { %v2056_v1 = vadd.f32 %v2053_v14, %v2036_v48  ;;  %2161 = dma.vmem_to_hbm [thread:$0]  %s2154_s19, 64, %s2156_s20, [#allocation16], %s2787_s18, %s2787_s18, %s2793_s13  }
0x1ad1   :  { %v2058_v8 = vsub.f32 %v2029_v51, %v2056_v1 }
0x1ad3   :  { %2060 = vst.msk [vmem:[#allocation14] sm:$0xff] %vm181_vm2, %v2058_v8 }
0x1ad4   :  { %v2494_v25 = vpop.eup %2493 }
0x1ad5   :  { %v2055_v26 = vmul.f32 0.6931472, %v2494_v25 }
0x1ad7   :  { %v2057_v5 = vadd.f32 %v2055_v26, %v2039_v32 }
0x1ad9   :  { %v2059_v13 = vsub.f32 %v3458_v2, %v2057_v5 }
0x1adb   :  { %2061 = vst.msk [vmem:[#allocation14 + $0x8] sm:$0xff] %vm181_vm2, %v2059_v13 }
0x1adc   :  { %2135 = dma.vmem_to_hbm [thread:$0]  %s2128_s1, 256, %s2130_s23, [#allocation4], %s2775_s21, %s2775_s21, %s2776_s22  }
0x1ae0   :  { %v2118_v9 = vpop.permute.xlu0 %2117 }
0x1ae1   :  { %2122 = vst.msk [vmem:[#allocation18 + $0x2] sm:$0x3] %vm2091_vm1, %v2118_v9 }
0x1ae2   :  { %2174 = dma.vmem_to_hbm [thread:$0]  %s2167_s3, 64, %s2169_s27, [#allocation19], %s2787_s18, %s2787_s18, %s2793_s13  }
0x1ae3   :  { %2768 = dma.done.wait [#allocation4], 256  }
0x1ae4   :  { %2769 = vsyncadd [#allocation4], 4294967040 }
0x1ae5   :  { %2770 = dma.done.wait [#allocation16], 320  }
0x1ae6   :  { %2771 = vsyncadd [#allocation16], 4294966976 }
0x1ae7   :  { %2772 = dma.done.wait [#allocation19], 64  }
0x1ae8   :  { %2773 = vsyncadd [#allocation19], 4294967232 }
0x1ae9   :  { %2191 = vsyncpa [#allocation3], 1 }
0x1aea   :  { %2192 = vsyncpa [#allocation6], 1 }
0x1aeb   :  { %2193 = vsyncpa [#allocation9], 1 }
0x1aec   :  { %2194 = vsyncpa [#allocation12], 1 }
0x1aed   :  { %2195 = vsyncpa [#allocation4], 1 }
0x1aee   :  { %2196 = vsyncpa [#allocation16], 1 }
0x1aef   :  { %2197 = vsyncpa [#allocation19], 1 }

</bundles_post_ra>
